<compile_context>
chip_gen: v6e
topology: v6e:2x2x1
jax: 0.10.0
libtpu: 0.0.40
codegen_flags: <defaults>
</compile_context>

<pallas_src>
import math
import functools

import jax
import jax.numpy as jnp
from jax.experimental import pallas as pl
from jax.experimental.pallas import tpu as pltpu


# ----------------------------------------------------------------------------
# Kernel
# ----------------------------------------------------------------------------
def _height_mlp_kernel(num_encoding, D, D_pad, pos_channel, pos_pad,
                       act_dtype, matmul_dtype,
                       xy_ref, w0, w1, w2, w3, w4, w5, w6, w7, bias_ref,
                       out_ref, cat_ref):
    """One column tile: xy_ref (2, TM) -> out_ref (1, TM).

    Weights are (out, in) and pre-cast to matmul_dtype.  bias_ref is (D, 8)
    f32 (cols 0..6 = layers 0..6, [0, 7] = final scalar bias).  cat_ref is a
    (D_pad + pos_pad, TM) VMEM slab: rows [0:D) hold feature_z, rows
    [D_pad : D_pad + pos_channel) hold the positional encoding, remaining rows
    are zeroed alignment padding (matching zero weight columns).
    """
    x = xy_ref[...].astype(jnp.float32)                       # (2, TM)
    tm = cat_ref.shape[1]

    # zero the alignment-pad rows so the zero-padded weight columns never see
    # uninitialised VMEM (0 * NaN would poison the dot)
    if D_pad > D:
        cat_ref[D:D_pad, :] = jnp.zeros((D_pad - D, tm), cat_ref.dtype)
    if pos_pad > pos_channel:
        cat_ref[D_pad + pos_channel:, :] = jnp.zeros(
            (pos_pad - pos_channel, tm), cat_ref.dtype)

    # --- positional encoding written feature-major into the concat slab -----
    base = D_pad
    cat_ref[base:base + 2, :] = x.astype(cat_ref.dtype)
    t = x * 3.14159                                            # matches the PyTorch spec
    for i in range(num_encoding):
        ti = t * (2.0 ** i)                                    # EUP sin/cos per octave
        cat_ref[base + 2 + 4 * i: base + 4 + 4 * i, :] = jnp.sin(ti).astype(cat_ref.dtype)
        cat_ref[base + 4 + 4 * i: base + 6 + 4 * i, :] = jnp.cos(ti).astype(cat_ref.dtype)

    enc = cat_ref[base:, :]                                    # (pos_pad, TM)

    def mm(w_ref, rhs):                                        # MXU dot, f32 accumulate
        return jnp.dot(w_ref[...], rhs.astype(matmul_dtype),
                       preferred_element_type=jnp.float32)

    def bias(i):
        return bias_ref[:, i:i + 1]                            # (D, 1) f32

    # --- height_layer_0: 4 x (Linear + ReLU) --------------------------------
    h = jnp.maximum(mm(w0, enc) + bias(0), 0.0).astype(act_dtype)
    h = jnp.maximum(mm(w1, h) + bias(1), 0.0).astype(act_dtype)
    h = jnp.maximum(mm(w2, h) + bias(2), 0.0).astype(act_dtype)
    h = jnp.maximum(mm(w3, h) + bias(3), 0.0).astype(act_dtype)

    # --- skip concat [feature_z, enc] realised in-place -> ONE fused dot ----
    cat_ref[0:D, :] = h
    h = jnp.maximum(mm(w4, cat_ref[...]) + bias(4), 0.0).astype(act_dtype)
    h = jnp.maximum(mm(w5, h) + bias(5), 0.0).astype(act_dtype)
    h = jnp.maximum(mm(w6, h) + bias(6), 0.0)                  # f32, feeds VPU reduce

    # final Linear(D, 1): VPU multiply + sublane reduce (no N=1 MXU pass);
    # result is a lane-dense (1, TM) row matching the output block
    out = jnp.sum(w7[...] * h, axis=0, keepdims=True) + bias_ref[0:1, 7:8]
    out_ref[...] = out.astype(out_ref.dtype)


# ----------------------------------------------------------------------------
# Wrapper
# ----------------------------------------------------------------------------
def _round_up(x, m):
    return (x + m - 1) // m * m


def _sublane(dtype):
    return 8 * (4 // jnp.dtype(dtype).itemsize)


def _default_act_dtype():
    # v5e has no bf16 VPU/EUP -> keep activations f32 there; bf16 elsewhere.
    try:
        kind = jax.devices()[0].device_kind.lower()
    except Exception:
        kind = ""
    if "v5 lite" in kind or "v5lite" in kind or "v5e" in kind:
        return jnp.float32
    return jnp.bfloat16


def height_mlp_pallas(norm_xy, params, num_encoding, *, tile_m=None,
                      matmul_dtype=jnp.bfloat16, act_dtype=None):
    """norm_xy: (..., 2) float32.  params: list of 8 (W, b), W is (in, out).

    matmul_dtype: MXU operand dtype (bf16 default on all generations, f32 acc).
    act_dtype:    inter-layer activation / enc-slab dtype (auto: bf16 on
                  v6e/v7x, f32 on v5e).
    """
    if act_dtype is None:
        act_dtype = _default_act_dtype()

    orig_shape = norm_xy.shape
    pos_channel = 2 * (2 * num_encoding + 1)
    D = params[0][0].shape[1]

    sub = max(_sublane(act_dtype), _sublane(matmul_dtype))
    D_pad = _round_up(D, sub)
    pos_pad = _round_up(pos_channel, sub)
    K_full = D_pad + pos_pad

    x = norm_xy.reshape(-1, 2).astype(jnp.float32)
    n = x.shape[0]
    if tile_m is None:
        # >= 4 grid steps when N allows (2 per TensorCore on v7x), lane-dense
        # tiles; raise explicitly to 8192-16384 for huge N on v5e/v6e.
        tile_m = max(256, min(4096, pl.next_power_of_2(pl.cdiv(max(n, 1), 4))))
    n_pad = pl.cdiv(n, tile_m) * tile_m

    # transpose then pad along lanes; under jit this fuses into one producer
    x_t = x.T                                                   # (2, n)
    if n_pad != n:
        x_t = jnp.pad(x_t, ((0, 0), (0, n_pad - n)))

    def w_t(i):                                                 # (out, in) f32
        return params[i][0].T.astype(jnp.float32)

    # layer-0 weight: pad the pos_channel input columns to pos_pad
    w0 = jnp.zeros((D, pos_pad), jnp.float32).at[:, :pos_channel].set(w_t(0))
    # layer-4 weight: scatter [feature | enc] columns into the fused K layout
    w4_src = w_t(4)                                             # (D, D + pos_channel)
    w4 = (jnp.zeros((D, K_full), jnp.float32)
          .at[:, :D].set(w4_src[:, :D])
          .at[:, D_pad:D_pad + pos_channel].set(w4_src[:, D:]))

    weights = [w.astype(matmul_dtype)
               for w in (w0, w_t(1), w_t(2), w_t(3), w4, w_t(5), w_t(6))]
    w7 = params[7][0].astype(jnp.float32)                       # (D, 1) VPU path

    # pack all biases into one (D, 8) input: cols 0..6 = layers 0..6,
    # [0, 7] = final scalar bias
    bias_cols = [params[i][1].reshape(D).astype(jnp.float32) for i in range(7)]
    last_col = jnp.zeros((D,), jnp.float32).at[0].set(
        params[7][1].astype(jnp.float32).reshape(()))
    bias_pack = jnp.stack(bias_cols + [last_col], axis=1)       # (D, 8)

    flat = weights + [w7, bias_pack]

    kernel = functools.partial(_height_mlp_kernel, num_encoding, D, D_pad,
                               pos_channel, pos_pad, act_dtype, matmul_dtype)

    grid = (n_pad // tile_m,)
    in_specs = [pl.BlockSpec((2, tile_m), lambda i: (0, i))]
    in_specs += [pl.BlockSpec(a.shape, lambda i: (0, 0)) for a in flat]

    out = pl.pallas_call(
        kernel,
        out_shape=jax.ShapeDtypeStruct((1, n_pad), jnp.float32),
        grid=grid,
        in_specs=in_specs,
        out_specs=pl.BlockSpec((1, tile_m), lambda i: (0, i)),
        scratch_shapes=[pltpu.VMEM((K_full, tile_m), act_dtype)],
        compiler_params=pltpu.CompilerParams(
            dimension_semantics=("parallel",)),
    )(x_t, *flat)

    return out[0, :n].reshape(orig_shape[:-1] + (1,))


# ----------------------------------------------------------------------------
# Deterministic parameter init (PyTorch nn.Linear-style uniform)
# ----------------------------------------------------------------------------
def init_params(key, num_encoding, num_width):
    pos_channel = 2 * (2 * num_encoding + 1)
    D = num_width
    layer_dims = [
        # height_layer_0
        (pos_channel, D), (D, D), (D, D), (D, D),
        # height_layer_1
        (D + pos_channel, D), (D, D), (D, D), (D, 1),
    ]
    params = []
    for (fan_in, fan_out) in layer_dims:
        key, kw, kb = jax.random.split(key, 3)
        bound = 1.0 / math.sqrt(fan_in)
        w = jax.random.uniform(kw, (fan_in, fan_out), jnp.float32, -bound, bound)
        b = jax.random.uniform(kb, (fan_out,), jnp.float32, -bound, bound)
        params.append((w, b))
    return params


# ----------------------------------------------------------------------------
# Pure-JAX reference (mirrors the PyTorch forward exactly)
# ----------------------------------------------------------------------------
def height_mlp_ref(norm_xy, params, num_encoding):
    x = norm_xy.astype(jnp.float32)
    parts = [x]
    for i in range(num_encoding):
        t = (2.0 ** i) * x * 3.14159
        parts.append(jnp.sin(t))
        parts.append(jnp.cos(t))
    enc = jnp.concatenate(parts, axis=-1)
    h = enc
    for li in range(4):
        w, b = params[li]
        h = jnp.maximum(h @ w + b, 0.0)
    h = jnp.concatenate([h, enc], axis=-1)
    for li in range(4, 8):
        w, b = params[li]
        h = h @ w + b
        if li < 7:
            h = jnp.maximum(h, 0.0)
    return h


# ----------------------------------------------------------------------------
if __name__ == "__main__":
    num_encoding = 4   # L
    num_width = 32     # D

    key = jax.random.PRNGKey(0)
    kp, kx1, kx2 = jax.random.split(key, 3)
    params = init_params(kp, num_encoding, num_width)

    # default fast path: bf16 MXU operands (all generations), auto activation dtype
    fwd = jax.jit(functools.partial(height_mlp_pallas, num_encoding=num_encoding))
    # full-f32 path for tight numerical checks
    fwd_f32 = jax.jit(functools.partial(height_mlp_pallas, num_encoding=num_encoding,
                                        matmul_dtype=jnp.float32,
                                        act_dtype=jnp.float32))

    # 4096 points -> 4 grid steps (>= 2 per TensorCore on v7x)
    norm_xy = jax.random.uniform(kx1, (2, 2048, 2), jnp.float32, -1.0, 1.0)
    ref = height_mlp_ref(norm_xy, params, num_encoding)

    out = jax.block_until_ready(fwd(norm_xy, params))
    assert out.shape == (2, 2048, 1), out.shape
    assert jnp.allclose(out, ref, atol=5e-2, rtol=5e-2), (
        float(jnp.max(jnp.abs(out - ref))))

    out_f32 = jax.block_until_ready(fwd_f32(norm_xy, params))
    assert jnp.allclose(out_f32, ref, atol=1e-4, rtol=1e-4), (
        float(jnp.max(jnp.abs(out_f32 - ref))))

    # ragged point count exercising the lane-padding path
    norm_xy2 = jax.random.uniform(kx2, (3, 77, 2), jnp.float32, -1.0, 1.0)
    out2 = jax.block_until_ready(fwd_f32(norm_xy2, params))
    ref2 = height_mlp_ref(norm_xy2, params, num_encoding)
    assert out2.shape == (3, 77, 1), out2.shape
    assert jnp.allclose(out2, ref2, atol=1e-4, rtol=1e-4), (
        float(jnp.max(jnp.abs(out2 - ref2))))

    print("KERNEL_OK")
</pallas_src>

<mosaic_0001>
module attributes {stable_mosaic.version = 11 : i64} {
  func.func @_height_mlp_kernel(%arg0: i32, %arg1: memref<2x1024xf32, #tpu.memory_space<vmem>>, %arg2: memref<32x32xbf16, #tpu.memory_space<vmem>>, %arg3: memref<32x32xbf16, #tpu.memory_space<vmem>>, %arg4: memref<32x32xbf16, #tpu.memory_space<vmem>>, %arg5: memref<32x32xbf16, #tpu.memory_space<vmem>>, %arg6: memref<32x64xbf16, #tpu.memory_space<vmem>>, %arg7: memref<32x32xbf16, #tpu.memory_space<vmem>>, %arg8: memref<32x32xbf16, #tpu.memory_space<vmem>>, %arg9: memref<32x1xf32, #tpu.memory_space<vmem>>, %arg10: memref<32x8xf32, #tpu.memory_space<vmem>>, %arg11: memref<1x1024xf32, #tpu.memory_space<vmem>>, %arg12: memref<64x1024xbf16, #tpu.memory_space<vmem>>) attributes {dimension_semantics = [#tpu.dimension_semantics<parallel>], iteration_bounds = array<i64: 4>, scalar_prefetch = 0 : i64, scratch_operands = 1 : i64, tpu.core_type = #tpu.core_type<tc>, window_params = [{transform_indices = @transform_0, window_bounds = array<i64: 2, 1024>}, {pipeline_mode = #tpu.pipeline_mode<synchronous>, transform_indices = @transform_1, window_bounds = array<i64: 32, 32>}, {pipeline_mode = #tpu.pipeline_mode<synchronous>, transform_indices = @transform_2, window_bounds = array<i64: 32, 32>}, {pipeline_mode = #tpu.pipeline_mode<synchronous>, transform_indices = @transform_3, window_bounds = array<i64: 32, 32>}, {pipeline_mode = #tpu.pipeline_mode<synchronous>, transform_indices = @transform_4, window_bounds = array<i64: 32, 32>}, {pipeline_mode = #tpu.pipeline_mode<synchronous>, transform_indices = @transform_5, window_bounds = array<i64: 32, 64>}, {pipeline_mode = #tpu.pipeline_mode<synchronous>, transform_indices = @transform_6, window_bounds = array<i64: 32, 32>}, {pipeline_mode = #tpu.pipeline_mode<synchronous>, transform_indices = @transform_7, window_bounds = array<i64: 32, 32>}, {pipeline_mode = #tpu.pipeline_mode<synchronous>, transform_indices = @transform_8, window_bounds = array<i64: 32, 1>}, {pipeline_mode = #tpu.pipeline_mode<synchronous>, transform_indices = @transform_9, window_bounds = array<i64: 32, 8>}, {transform_indices = @transform_10, window_bounds = array<i64: 1, 1024>}]} {
    %c0 = arith.constant 0 : index
    %c0_0 = arith.constant 0 : index
    %0 = vector.load %arg1[%c0, %c0_0] : memref<2x1024xf32, #tpu.memory_space<vmem>>, vector<2x1024xf32>
    %cst = arith.constant 0.000000e+00 : bf16
    %1 = vector.broadcast %cst : bf16 to vector<14x1024xbf16>
    %c50 = arith.constant 50 : index
    %c0_1 = arith.constant 0 : index
    %2 = vector.load %arg12[%c50, %c0_1] : memref<64x1024xbf16, #tpu.memory_space<vmem>>, vector<14x1024xbf16>
    tpu.vector_store %arg12[%c50, %c0_1], %1 {strides = array<i32>} : memref<64x1024xbf16, #tpu.memory_space<vmem>>, vector<14x1024xbf16>,
    %3 = arith.truncf %0 : vector<2x1024xf32> to vector<2x1024xbf16>
    %c32 = arith.constant 32 : index
    %c0_2 = arith.constant 0 : index
    %4 = vector.load %arg12[%c32, %c0_2] : memref<64x1024xbf16, #tpu.memory_space<vmem>>, vector<2x1024xbf16>
    tpu.vector_store %arg12[%c32, %c0_2], %3 {strides = array<i32>} : memref<64x1024xbf16, #tpu.memory_space<vmem>>, vector<2x1024xbf16>,
    %cst_3 = arith.constant 3.141590e+00 : f32
    %5 = vector.broadcast %cst_3 : f32 to vector<2x1024xf32>
    %6 = arith.mulf %0, %5 : vector<2x1024xf32>
    %cst_4 = arith.constant 1.000000e+00 : f32
    %7 = vector.broadcast %cst_4 : f32 to vector<2x1024xf32>
    %8 = arith.mulf %6, %7 : vector<2x1024xf32>
    %9 = math.sin %8 : vector<2x1024xf32>
    %10 = arith.truncf %9 : vector<2x1024xf32> to vector<2x1024xbf16>
    %c34 = arith.constant 34 : index
    %c0_5 = arith.constant 0 : index
    %11 = vector.load %arg12[%c34, %c0_5] : memref<64x1024xbf16, #tpu.memory_space<vmem>>, vector<2x1024xbf16>
    tpu.vector_store %arg12[%c34, %c0_5], %10 {strides = array<i32>} : memref<64x1024xbf16, #tpu.memory_space<vmem>>, vector<2x1024xbf16>,
    %12 = math.cos %8 : vector<2x1024xf32>
    %13 = arith.truncf %12 : vector<2x1024xf32> to vector<2x1024xbf16>
    %c36 = arith.constant 36 : index
    %c0_6 = arith.constant 0 : index
    %14 = vector.load %arg12[%c36, %c0_6] : memref<64x1024xbf16, #tpu.memory_space<vmem>>, vector<2x1024xbf16>
    tpu.vector_store %arg12[%c36, %c0_6], %13 {strides = array<i32>} : memref<64x1024xbf16, #tpu.memory_space<vmem>>, vector<2x1024xbf16>,
    %cst_7 = arith.constant 2.000000e+00 : f32
    %15 = vector.broadcast %cst_7 : f32 to vector<2x1024xf32>
    %16 = arith.mulf %6, %15 : vector<2x1024xf32>
    %17 = math.sin %16 : vector<2x1024xf32>
    %18 = arith.truncf %17 : vector<2x1024xf32> to vector<2x1024xbf16>
    %c38 = arith.constant 38 : index
    %c0_8 = arith.constant 0 : index
    %19 = vector.load %arg12[%c38, %c0_8] : memref<64x1024xbf16, #tpu.memory_space<vmem>>, vector<2x1024xbf16>
    tpu.vector_store %arg12[%c38, %c0_8], %18 {strides = array<i32>} : memref<64x1024xbf16, #tpu.memory_space<vmem>>, vector<2x1024xbf16>,
    %20 = math.cos %16 : vector<2x1024xf32>
    %21 = arith.truncf %20 : vector<2x1024xf32> to vector<2x1024xbf16>
    %c40 = arith.constant 40 : index
    %c0_9 = arith.constant 0 : index
    %22 = vector.load %arg12[%c40, %c0_9] : memref<64x1024xbf16, #tpu.memory_space<vmem>>, vector<2x1024xbf16>
    tpu.vector_store %arg12[%c40, %c0_9], %21 {strides = array<i32>} : memref<64x1024xbf16, #tpu.memory_space<vmem>>, vector<2x1024xbf16>,
    %cst_10 = arith.constant 4.000000e+00 : f32
    %23 = vector.broadcast %cst_10 : f32 to vector<2x1024xf32>
    %24 = arith.mulf %6, %23 : vector<2x1024xf32>
    %25 = math.sin %24 : vector<2x1024xf32>
    %26 = arith.truncf %25 : vector<2x1024xf32> to vector<2x1024xbf16>
    %c42 = arith.constant 42 : index
    %c0_11 = arith.constant 0 : index
    %27 = vector.load %arg12[%c42, %c0_11] : memref<64x1024xbf16, #tpu.memory_space<vmem>>, vector<2x1024xbf16>
    tpu.vector_store %arg12[%c42, %c0_11], %26 {strides = array<i32>} : memref<64x1024xbf16, #tpu.memory_space<vmem>>, vector<2x1024xbf16>,
    %28 = math.cos %24 : vector<2x1024xf32>
    %29 = arith.truncf %28 : vector<2x1024xf32> to vector<2x1024xbf16>
    %c44 = arith.constant 44 : index
    %c0_12 = arith.constant 0 : index
    %30 = vector.load %arg12[%c44, %c0_12] : memref<64x1024xbf16, #tpu.memory_space<vmem>>, vector<2x1024xbf16>
    tpu.vector_store %arg12[%c44, %c0_12], %29 {strides = array<i32>} : memref<64x1024xbf16, #tpu.memory_space<vmem>>, vector<2x1024xbf16>,
    %cst_13 = arith.constant 8.000000e+00 : f32
    %31 = vector.broadcast %cst_13 : f32 to vector<2x1024xf32>
    %32 = arith.mulf %6, %31 : vector<2x1024xf32>
    %33 = math.sin %32 : vector<2x1024xf32>
    %34 = arith.truncf %33 : vector<2x1024xf32> to vector<2x1024xbf16>
    %c46 = arith.constant 46 : index
    %c0_14 = arith.constant 0 : index
    %35 = vector.load %arg12[%c46, %c0_14] : memref<64x1024xbf16, #tpu.memory_space<vmem>>, vector<2x1024xbf16>
    tpu.vector_store %arg12[%c46, %c0_14], %34 {strides = array<i32>} : memref<64x1024xbf16, #tpu.memory_space<vmem>>, vector<2x1024xbf16>,
    %36 = math.cos %32 : vector<2x1024xf32>
    %37 = arith.truncf %36 : vector<2x1024xf32> to vector<2x1024xbf16>
    %c48 = arith.constant 48 : index
    %c0_15 = arith.constant 0 : index
    %38 = vector.load %arg12[%c48, %c0_15] : memref<64x1024xbf16, #tpu.memory_space<vmem>>, vector<2x1024xbf16>
    tpu.vector_store %arg12[%c48, %c0_15], %37 {strides = array<i32>} : memref<64x1024xbf16, #tpu.memory_space<vmem>>, vector<2x1024xbf16>,
    %c32_16 = arith.constant 32 : index
    %c0_17 = arith.constant 0 : index
    %39 = vector.load %arg12[%c32_16, %c0_17] : memref<64x1024xbf16, #tpu.memory_space<vmem>>, vector<32x1024xbf16>
    %c0_18 = arith.constant 0 : index
    %c0_19 = arith.constant 0 : index
    %40 = vector.load %arg2[%c0_18, %c0_19] : memref<32x32xbf16, #tpu.memory_space<vmem>>, vector<32x32xbf16>
    %cst_20 = arith.constant dense<0.000000e+00> : vector<32x1024xf32>
    %41 = tpu.matmul %40, %39, %cst_20 {dimension_numbers = #tpu.dot_dimension_numbers<[1], [0], [0], [1], [0, 0, 1, 1], [], []>} : vector<32x32xbf16>, vector<32x1024xbf16>, vector<32x1024xf32> -> vector<32x1024xf32>
    %c0_21 = arith.constant 0 : index
    %c0_22 = arith.constant 0 : index
    %42 = vector.load %arg10[%c0_21, %c0_22] : memref<32x8xf32, #tpu.memory_space<vmem>>, vector<32x1xf32>
    %43 = vector.broadcast %42 : vector<32x1xf32> to vector<32x1024xf32>
    %44 = arith.addf %41, %43 : vector<32x1024xf32>
    %cst_23 = arith.constant 0.000000e+00 : f32
    %45 = vector.broadcast %cst_23 : f32 to vector<32x1024xf32>
    %46 = arith.maximumf %44, %45 : vector<32x1024xf32>
    %47 = arith.truncf %46 : vector<32x1024xf32> to vector<32x1024xbf16>
    %c0_24 = arith.constant 0 : index
    %c0_25 = arith.constant 0 : index
    %48 = vector.load %arg3[%c0_24, %c0_25] : memref<32x32xbf16, #tpu.memory_space<vmem>>, vector<32x32xbf16>
    %cst_26 = arith.constant dense<0.000000e+00> : vector<32x1024xf32>
    %49 = tpu.matmul %48, %47, %cst_26 {dimension_numbers = #tpu.dot_dimension_numbers<[1], [0], [0], [1], [0, 0, 1, 1], [], []>} : vector<32x32xbf16>, vector<32x1024xbf16>, vector<32x1024xf32> -> vector<32x1024xf32>
    %c0_27 = arith.constant 0 : index
    %c1 = arith.constant 1 : index
    %50 = vector.load %arg10[%c0_27, %c1] : memref<32x8xf32, #tpu.memory_space<vmem>>, vector<32x1xf32>
    %51 = vector.broadcast %50 : vector<32x1xf32> to vector<32x1024xf32>
    %52 = arith.addf %49, %51 : vector<32x1024xf32>
    %cst_28 = arith.constant 0.000000e+00 : f32
    %53 = vector.broadcast %cst_28 : f32 to vector<32x1024xf32>
    %54 = arith.maximumf %52, %53 : vector<32x1024xf32>
    %55 = arith.truncf %54 : vector<32x1024xf32> to vector<32x1024xbf16>
    %c0_29 = arith.constant 0 : index
    %c0_30 = arith.constant 0 : index
    %56 = vector.load %arg4[%c0_29, %c0_30] : memref<32x32xbf16, #tpu.memory_space<vmem>>, vector<32x32xbf16>
    %cst_31 = arith.constant dense<0.000000e+00> : vector<32x1024xf32>
    %57 = tpu.matmul %56, %55, %cst_31 {dimension_numbers = #tpu.dot_dimension_numbers<[1], [0], [0], [1], [0, 0, 1, 1], [], []>} : vector<32x32xbf16>, vector<32x1024xbf16>, vector<32x1024xf32> -> vector<32x1024xf32>
    %c0_32 = arith.constant 0 : index
    %c2 = arith.constant 2 : index
    %58 = vector.load %arg10[%c0_32, %c2] : memref<32x8xf32, #tpu.memory_space<vmem>>, vector<32x1xf32>
    %59 = vector.broadcast %58 : vector<32x1xf32> to vector<32x1024xf32>
    %60 = arith.addf %57, %59 : vector<32x1024xf32>
    %cst_33 = arith.constant 0.000000e+00 : f32
    %61 = vector.broadcast %cst_33 : f32 to vector<32x1024xf32>
    %62 = arith.maximumf %60, %61 : vector<32x1024xf32>
    %63 = arith.truncf %62 : vector<32x1024xf32> to vector<32x1024xbf16>
    %c0_34 = arith.constant 0 : index
    %c0_35 = arith.constant 0 : index
    %64 = vector.load %arg5[%c0_34, %c0_35] : memref<32x32xbf16, #tpu.memory_space<vmem>>, vector<32x32xbf16>
    %cst_36 = arith.constant dense<0.000000e+00> : vector<32x1024xf32>
    %65 = tpu.matmul %64, %63, %cst_36 {dimension_numbers = #tpu.dot_dimension_numbers<[1], [0], [0], [1], [0, 0, 1, 1], [], []>} : vector<32x32xbf16>, vector<32x1024xbf16>, vector<32x1024xf32> -> vector<32x1024xf32>
    %c0_37 = arith.constant 0 : index
    %c3 = arith.constant 3 : index
    %66 = vector.load %arg10[%c0_37, %c3] : memref<32x8xf32, #tpu.memory_space<vmem>>, vector<32x1xf32>
    %67 = vector.broadcast %66 : vector<32x1xf32> to vector<32x1024xf32>
    %68 = arith.addf %65, %67 : vector<32x1024xf32>
    %cst_38 = arith.constant 0.000000e+00 : f32
    %69 = vector.broadcast %cst_38 : f32 to vector<32x1024xf32>
    %70 = arith.maximumf %68, %69 : vector<32x1024xf32>
    %71 = arith.truncf %70 : vector<32x1024xf32> to vector<32x1024xbf16>
    %c0_39 = arith.constant 0 : index
    %c0_40 = arith.constant 0 : index
    %72 = vector.load %arg12[%c0_39, %c0_40] : memref<64x1024xbf16, #tpu.memory_space<vmem>>, vector<32x1024xbf16>
    tpu.vector_store %arg12[%c0_39, %c0_40], %71 {strides = array<i32>} : memref<64x1024xbf16, #tpu.memory_space<vmem>>, vector<32x1024xbf16>,
    %c0_41 = arith.constant 0 : index
    %c0_42 = arith.constant 0 : index
    %73 = vector.load %arg12[%c0_41, %c0_42] : memref<64x1024xbf16, #tpu.memory_space<vmem>>, vector<64x1024xbf16>
    %c0_43 = arith.constant 0 : index
    %c0_44 = arith.constant 0 : index
    %74 = vector.load %arg6[%c0_43, %c0_44] : memref<32x64xbf16, #tpu.memory_space<vmem>>, vector<32x64xbf16>
    %cst_45 = arith.constant dense<0.000000e+00> : vector<32x1024xf32>
    %75 = tpu.matmul %74, %73, %cst_45 {dimension_numbers = #tpu.dot_dimension_numbers<[1], [0], [0], [1], [0, 0, 1, 1], [], []>} : vector<32x64xbf16>, vector<64x1024xbf16>, vector<32x1024xf32> -> vector<32x1024xf32>
    %c0_46 = arith.constant 0 : index
    %c4 = arith.constant 4 : index
    %76 = vector.load %arg10[%c0_46, %c4] : memref<32x8xf32, #tpu.memory_space<vmem>>, vector<32x1xf32>
    %77 = vector.broadcast %76 : vector<32x1xf32> to vector<32x1024xf32>
    %78 = arith.addf %75, %77 : vector<32x1024xf32>
    %cst_47 = arith.constant 0.000000e+00 : f32
    %79 = vector.broadcast %cst_47 : f32 to vector<32x1024xf32>
    %80 = arith.maximumf %78, %79 : vector<32x1024xf32>
    %81 = arith.truncf %80 : vector<32x1024xf32> to vector<32x1024xbf16>
    %c0_48 = arith.constant 0 : index
    %c0_49 = arith.constant 0 : index
    %82 = vector.load %arg7[%c0_48, %c0_49] : memref<32x32xbf16, #tpu.memory_space<vmem>>, vector<32x32xbf16>
    %cst_50 = arith.constant dense<0.000000e+00> : vector<32x1024xf32>
    %83 = tpu.matmul %82, %81, %cst_50 {dimension_numbers = #tpu.dot_dimension_numbers<[1], [0], [0], [1], [0, 0, 1, 1], [], []>} : vector<32x32xbf16>, vector<32x1024xbf16>, vector<32x1024xf32> -> vector<32x1024xf32>
    %c0_51 = arith.constant 0 : index
    %c5 = arith.constant 5 : index
    %84 = vector.load %arg10[%c0_51, %c5] : memref<32x8xf32, #tpu.memory_space<vmem>>, vector<32x1xf32>
    %85 = vector.broadcast %84 : vector<32x1xf32> to vector<32x1024xf32>
    %86 = arith.addf %83, %85 : vector<32x1024xf32>
    %cst_52 = arith.constant 0.000000e+00 : f32
    %87 = vector.broadcast %cst_52 : f32 to vector<32x1024xf32>
    %88 = arith.maximumf %86, %87 : vector<32x1024xf32>
    %89 = arith.truncf %88 : vector<32x1024xf32> to vector<32x1024xbf16>
    %c0_53 = arith.constant 0 : index
    %c0_54 = arith.constant 0 : index
    %90 = vector.load %arg8[%c0_53, %c0_54] : memref<32x32xbf16, #tpu.memory_space<vmem>>, vector<32x32xbf16>
    %cst_55 = arith.constant dense<0.000000e+00> : vector<32x1024xf32>
    %91 = tpu.matmul %90, %89, %cst_55 {dimension_numbers = #tpu.dot_dimension_numbers<[1], [0], [0], [1], [0, 0, 1, 1], [], []>} : vector<32x32xbf16>, vector<32x1024xbf16>, vector<32x1024xf32> -> vector<32x1024xf32>
    %c0_56 = arith.constant 0 : index
    %c6 = arith.constant 6 : index
    %92 = vector.load %arg10[%c0_56, %c6] : memref<32x8xf32, #tpu.memory_space<vmem>>, vector<32x1xf32>
    %93 = vector.broadcast %92 : vector<32x1xf32> to vector<32x1024xf32>
    %94 = arith.addf %91, %93 : vector<32x1024xf32>
    %cst_57 = arith.constant 0.000000e+00 : f32
    %95 = vector.broadcast %cst_57 : f32 to vector<32x1024xf32>
    %96 = arith.maximumf %94, %95 : vector<32x1024xf32>
    %c0_58 = arith.constant 0 : index
    %c0_59 = arith.constant 0 : index
    %97 = vector.load %arg9[%c0_58, %c0_59] : memref<32x1xf32, #tpu.memory_space<vmem>>, vector<32x1xf32>
    %98 = vector.broadcast %97 : vector<32x1xf32> to vector<32x1024xf32>
    %99 = arith.mulf %98, %96 : vector<32x1024xf32>
    %cst_60 = arith.constant dense<0.000000e+00> : vector<1024xf32>
    %100 = vector.multi_reduction <add>, %99, %cst_60 [0] : vector<32x1024xf32> to vector<1024xf32>
    %101 = vector.shape_cast %100 : vector<1024xf32> to vector<1x1024xf32>
    %c0_61 = arith.constant 0 : index
    %c7 = arith.constant 7 : index
    %102 = vector.load %arg10[%c0_61, %c7] : memref<32x8xf32, #tpu.memory_space<vmem>>, vector<1x1xf32>
    %103 = vector.broadcast %102 : vector<1x1xf32> to vector<1x1024xf32>
    %104 = arith.addf %101, %103 : vector<1x1024xf32>
    %c0_62 = arith.constant 0 : index
    %c0_63 = arith.constant 0 : index
    %105 = vector.load %arg11[%c0_62, %c0_63] : memref<1x1024xf32, #tpu.memory_space<vmem>>, vector<1x1024xf32>
    tpu.vector_store %arg11[%c0_62, %c0_63], %104 {strides = array<i32>} : memref<1x1024xf32, #tpu.memory_space<vmem>>, vector<1x1024xf32>,
    return
  }
  func.func @transform_0(%arg0: i32) -> (i32, i32) {
    %c0_i32 = arith.constant 0 : i32
    %c0_i32_0 = arith.constant 0 : i32
    return %c0_i32, %arg0 : i32, i32
  }
  func.func @transform_1(%arg0: i32) -> (i32, i32) {
    %c0_i32 = arith.constant 0 : i32
    %c0_i32_0 = arith.constant 0 : i32
    %c0_i32_1 = arith.constant 0 : i32
    return %c0_i32, %c0_i32_0 : i32, i32
  }
  func.func @transform_2(%arg0: i32) -> (i32, i32) {
    %c0_i32 = arith.constant 0 : i32
    %c0_i32_0 = arith.constant 0 : i32
    %c0_i32_1 = arith.constant 0 : i32
    return %c0_i32, %c0_i32_0 : i32, i32
  }
  func.func @transform_3(%arg0: i32) -> (i32, i32) {
    %c0_i32 = arith.constant 0 : i32
    %c0_i32_0 = arith.constant 0 : i32
    %c0_i32_1 = arith.constant 0 : i32
    return %c0_i32, %c0_i32_0 : i32, i32
  }
  func.func @transform_4(%arg0: i32) -> (i32, i32) {
    %c0_i32 = arith.constant 0 : i32
    %c0_i32_0 = arith.constant 0 : i32
    %c0_i32_1 = arith.constant 0 : i32
    return %c0_i32, %c0_i32_0 : i32, i32
  }
  func.func @transform_5(%arg0: i32) -> (i32, i32) {
    %c0_i32 = arith.constant 0 : i32
    %c0_i32_0 = arith.constant 0 : i32
    %c0_i32_1 = arith.constant 0 : i32
    return %c0_i32, %c0_i32_0 : i32, i32
  }
  func.func @transform_6(%arg0: i32) -> (i32, i32) {
    %c0_i32 = arith.constant 0 : i32
    %c0_i32_0 = arith.constant 0 : i32
    %c0_i32_1 = arith.constant 0 : i32
    return %c0_i32, %c0_i32_0 : i32, i32
  }
  func.func @transform_7(%arg0: i32) -> (i32, i32) {
    %c0_i32 = arith.constant 0 : i32
    %c0_i32_0 = arith.constant 0 : i32
    %c0_i32_1 = arith.constant 0 : i32
    return %c0_i32, %c0_i32_0 : i32, i32
  }
  func.func @transform_8(%arg0: i32) -> (i32, i32) {
    %c0_i32 = arith.constant 0 : i32
    %c0_i32_0 = arith.constant 0 : i32
    %c0_i32_1 = arith.constant 0 : i32
    return %c0_i32, %c0_i32_0 : i32, i32
  }
  func.func @transform_9(%arg0: i32) -> (i32, i32) {
    %c0_i32 = arith.constant 0 : i32
    %c0_i32_0 = arith.constant 0 : i32
    %c0_i32_1 = arith.constant 0 : i32
    return %c0_i32, %c0_i32_0 : i32, i32
  }
  func.func @transform_10(%arg0: i32) -> (i32, i32) {
    %c0_i32 = arith.constant 0 : i32
    %c0_i32_0 = arith.constant 0 : i32
    return %c0_i32, %arg0 : i32, i32
  }
}

</mosaic_0001>

<bundles_post_ra>
// kernel: height_mlp_pallas.1
= control target key start
LH: loop header
LB: loop body
LE: loop exit
PB: predicated region body
PF: predicated region fallthrough
CT: control target
= control target key end

     0   :  { %s7836_s0 = inlined_call_operand.vmem [shape: f32[2,4096], index: 0, kind: input, shape index: {}]   ;;  %s7837_s1 = inlined_call_operand.vmem [shape: bf16[32,32], index: 1, kind: input, shape index: {}]   ;;  %s7838_s2 = inlined_call_operand.vmem [shape: bf16[32,32], index: 2, kind: input, shape index: {}]   ;;  %s7839_s3 = inlined_call_operand.vmem [shape: bf16[32,32], index: 3, kind: input, shape index: {}]   ;;  %s7840_s4 = inlined_call_operand.vmem [shape: bf16[32,32], index: 4, kind: input, shape index: {}]   ;;  %s7841_s5 = inlined_call_operand.vmem [shape: bf16[32,64], index: 5, kind: input, shape index: {}]   ;;  %s7842_s6 = inlined_call_operand.vmem [shape: bf16[32,32], index: 6, kind: input, shape index: {}]   ;;  %s7843_s7 = inlined_call_operand.vmem [shape: bf16[32,32], index: 7, kind: input, shape index: {}]   ;;  %s7844_s8 = inlined_call_operand.vmem [shape: f32[32,1], index: 8, kind: input, shape index: {}]   ;;  %s7845_s9 = inlined_call_operand.vmem [shape: f32[32,8], index: 9, kind: input, shape index: {}]   ;;  %s7846_s10 = inlined_call_operand.hbm [shape: f32[1,4096], index: 10, kind: output, shape index: {}]  }
   0x1   :  { %7848 = sst [smem:[#allocation6_spill]] %s7836_s0 }
   0x2   :  { %15 = vsyncpa [#allocation4], 0 }
   0x3   :  { %17 = vsyncpa [#allocation4 + $0x1], 0  ;;  %s6129_s13 = smov 0   ;;  %s6131_s14 = smov 0  }
   0x4   :  { %s6133_s15 = smov 0   ;;  %s6135_s16 = smov 0  }
   0x5 LB: > { %s6150_s17 = sadd.s32 4294967295, %s6055_s16   ;;  %s5513_s18 = sadd.s32 4294967294, %s6055_s16   ;;  %s6055_s16 = sphi %s6135_s16, %s7874_s16   ;;  %s6051_s15 = sphi %s6133_s15, %s7873_s15   ;;  %s6047_s14 = sphi %s6131_s14, %s7872_s14   ;;  %s6043_s13 = sphi %s6129_s13, %s7871_s13  }
   0x6   : > { %s6154_s19 = sadd.s32 1, %s6055_s16   ;;  %s245_s20 = sadd.s32 1, %s6051_s15 }
   0x7   : > { %s242_s21 = ssub.s32 %s6055_s16, %s6154_s19  ;;  %p255_p0 = scmp.ne.s32.totalorder %s6051_s15, %s6047_s14 }
   0x8   : > { %p243_p1 = scmp.eq.s32.totalorder %s242_s21, 0  ;;  %p256_p2 = scmp.eq.s32.totalorder %s6150_s17, 3 }
   0x9   : > { %p261_p3 = scmp.ne.s32.totalorder %s6047_s14, %s6043_s13  ;;  %p262_p4 = scmp.eq.s32.totalorder %s5513_s18, 3 }
   0xa   : > { %s6165_s22 = scalar_select %p243_p1, %s6051_s15, %s245_s20  }
   0xb   : > { %p6167_p5 = por %p256_p2, %p255_p0  ;;  %p6171_p6 = por %p262_p4, %p261_p3 }
   0xc   : > { %p5516_p7 = scmp.ge.s32.totalorder %s6055_s16, 1  ;;  %p316_p8 = scmp.lt.s32.totalorder %s6055_s16, 5 }
   0xe   : > { %p317_p9 = pnand %p5516_p7, %p316_p8 }
   0xf   : > { %s5518_s25 = sshll.u32 (!%p317_p9), %s6150_s17, 3  ;;  %s7852_s0 = sld [smem:[#allocation6_spill]] (!%p317_p9) }
  0x10   : > { %320 = sbr.rel (%p317_p9) target bundleno = 1905 (0x771), region = 60  ;;  %p6178_p10 = scmp.lt.s32.totalorder (!%p317_p9), %s5518_s25, 31 }
  0x11   : > { %s5811_s29 = sshll.u32 (!%p317_p9), %s6150_s17, 7  ;;  %s6073_s26 = smov (!%p317_p9), [#allocation3]  }
  0x12   : > { %s5452_s20 = scalar_lea.hbm (!%p317_p9), %s7846_s10, %s5811_s29 }
  0x15   : > { %v378_v0 = vlaneseq  ;;  %v6057_v1 = vmov 0   ;;  %v6058_v2 = vmov 1983009808   ;;  %s7876_s25 = smov (!%p6178_p10, %s5518_s25), 31  ;;  %v6059_v42 = vmov 683565275  }
  0x16   : > { %364 = vst [vmem:[#allocation2 + $0x30] sm:$0xee] %v6057_v1  ;;  %368 = vst [vmem:[#allocation2 + $0x90] sm:$0xff] %v6057_v1  ;;  %v376_v3 = vunpack.c.l.s4 %v6058_v2  ;;  %2953 = vmatprep.mubr.bf16.mxu0 %v6057_v1  ;;  %3006 = vmatprep.mubr.bf16.mxu1 %v6057_v1  ;;  %s5519_s27 = sshll.u32 %s7876_s25, 1  ;;  %v6060_v44 = vmov 2475754826  }
  0x17   : > { %365 = vst [vmem:[#allocation2 + $0xc0] sm:$0xee] %v6057_v1  ;;  %366 = vst [vmem:[#allocation2 + $0x58] sm:$0xee] %v6057_v1  ;;  %v6189_v4 = vshrl.u32 %v378_v0, 7  ;;  %5900 = vset.pattern.permute.xlu1 %v6057_v1  ;;  %5899 = vset.pattern.permute.xlu0 %v6057_v1  ;;  %s6198_s30 = scalar_lea.vmem %s7852_s0, %s5519_s27  ;;  %s351_s27 = sand.u32 1, %s6047_s14  }
  0x18   : > { %367 = vst [vmem:[#allocation2 + $0xd8] sm:$0xee] %v6057_v1  ;;  %v377_v5 = vunpack.c.0.s8 %v376_v3  ;;  %v6204_v7 = vld [vmem:[%s6198_s30] sm:$0xff]  ;;  %v6061_v50 = vmov 2131351028   ;;  %s5517_s28 = sshll.u32 %s351_s27, 3 }
  0x19   : > { %v6207_v8 = vmul.f32 3.14159, %v6204_v7  ;;  %v6062_v52 = vmov 2102212464   ;;  %v6063_v54 = vmov 920167782  }
  0x1a   : > { %v6201_v6 = vsub.s32 %v377_v5, %v6189_v4  ;;  %v6064_v62 = vmov 1326507024   ;;  %s353_s11 = scalar_lea.vmem [#allocation3], %s5517_s28  ;;  %s5440_s21 = scalar_lea.sflag [#allocation4], %s351_s27 }
  0x1b   : > { %v6212_v10 = vmul.f32 8.0, %v6207_v8  ;;  %v454_v12 = vand.u32 2147483647, %v6207_v8  ;;  %v457_v13 = vand.u32 2139095040, %v6207_v8  ;;  %v6217_v14 = vmul.f32 2.0, %v6207_v8  ;;  %s5454_s12 = sshll.u32 %s353_s11, 4  ;;  %s5455_s12 = int_to_ptr.vmem [resolvable:$true] %s5454_s12 }
  0x1c   : > { %v381_v9 = vrot.slane %v6204_v7, %v6201_v6  ;;  %v6230_v36 = vmul.f32 4.0, %v6207_v8  ;;  %vm456_vm15 = vcmp.lt.s32.totalorder %v6207_v8, 0  ;;  %s5995_s25 = scalar_lea.vmem %s5455_s12, 128  ;;  %s5999_s0 = sshll.u32 %s6073_s26, 4  ;;  %s6000_s0 = int_to_ptr.vmem [resolvable:$false] %s5999_s0 }
  0x1d   : > { %v2202_v15 = vand.u32 2147483647, %v6212_v10  ;;  %v2205_v16 = vand.u32 2139095040, %v6212_v10  ;;  %v458_v18 = vshrl.u32 %v457_v13, 23  ;;  %v461_v19 = vand.u32 8388607, %v454_v12  ;;  %p5996_p11 = scmp.ne.s32.totalorder %s5455_s12, %s5995_s25  ;;  %p6002_p0 = scmp.lt.s32.totalorder %s5455_s12, %s6000_s0 }
  0x1e   : > { %v389_v11 = vcombine.high %v381_v9, %v381_v9  ;;  %v1041_v23 = vand.u32 2139095040, %v6217_v14  ;;  %v1038_v32 = vand.u32 2147483647, %v6217_v14  ;;  %vm2204_vm13 = vcmp.lt.s32.totalorder %v6212_v10, 0  ;;  %s6001_s17 = scalar_lea.vmem %s6000_s0, 256 }
  0x1f   : > { %v2206_v20 = vshrl.u32 %v2205_v16, 23  ;;  %v2209_v21 = vand.u32 8388607, %v2202_v15  ;;  %v5524_v22 = vadd.s32 4294967169, %v458_v18  ;;  %v462_v25 = vor.u32 8388608, %v461_v19  ;;  %p5997_p12 = pnand %p5996_p11, %p6167_p5  ;;  %p6003_p1 = scmp.lt.s32.totalorder %s6001_s17, %s5995_s25 }
  0x20   : > { %v5759_v17 = vpack.c.bf16 %v389_v11, %v381_v9  ;;  %v1042_v27 = vshrl.u32 %v1041_v23, 23  ;;  %vm6347_vm14 = vcmp.le.f32.partialorder %v2202_v15, 0.7853982  ;;  %v374_v15 = vcombine.high %v6204_v7, %v6204_v7 }
  0x21   : > { %v5596_v24 = vadd.s32 4294967169, %v2206_v20  ;;  %v464_v26 = vadd.s32 1, %v5524_v22  ;;  %v2210_v28 = vor.u32 8388608, %v2209_v21  ;;  %v6227_v35 = vshll.u32 %v462_v25, 8  ;;  %p5998_p13 = pneg %p5997_p12  ;;  %p6004_p2 = por %p6003_p1, %p6002_p0 }
  0x22   : > { %448 = vst [vmem:[#allocation2] sm:$0x11] %v5759_v17  ;;  %v5548_v30 = vadd.s32 4294967169, %v1042_v27 }
  0x23   : > { %v2212_v29 = vadd.s32 1, %v5596_v24  ;;  %vm465_vm0 = vcmp.gt.s32.totalorder %v464_v26, 0  ;;  %v6232_v39 = vshll.u32 %v2210_v28, 8  ;;  %p6005_p3 = pnand %p6004_p2, %p5998_p13 }
  0x24   : > { %v466_v31 = vsel %vm465_vm0, %v464_v26, 0  ;;  %v6238_v46 = vadd.s32 1, %v5548_v30 }
  0x25   : > { %vm2213_vm1 = vcmp.gt.s32.totalorder %v2212_v29, 0  ;;  %v468_v34 = vand.u32 31, %v466_v31  ;;  %v6234_v40 = vshrl.u32 %v466_v31, 5 }
  0x26   : > { %v2214_v33 = vsel %vm2213_vm1, %v2212_v29, 0  ;;  %vm1049_vm11 = vcmp.gt.s32.totalorder %v6238_v46, 0 }
  0x27   : > { %v2215_v37 = vshrl.u32 %v2214_v33, 5  ;;  %v2216_v38 = vand.u32 31, %v2214_v33  ;;  %v469_v41 = vsub.s32 32, %v468_v34  ;;  %v471_v43 = vshll.u32 %v6059_v42, %v468_v34 }
  0x28   : > { %v474_v45 = vshll.u32 %v6060_v44, %v468_v34  ;;  %v477_v56 = vshll.u32 %v6061_v50, %v468_v34  ;;  %vm486_vm6 = vcmp.lt.s32.totalorder %v6234_v40, 1  ;;  %vm487_vm7 = vcmp.lt.s32.totalorder %v6234_v40, 2 }
  0x29   : > { %v2217_v47 = vsub.s32 32, %v2216_v38  ;;  %v2219_v48 = vshll.u32 %v6059_v42, %v2216_v38  ;;  %v2222_v49 = vshll.u32 %v6060_v44, %v2216_v38  ;;  %v2225_v51 = vshll.u32 %v6061_v50, %v2216_v38 }
  0x2a   : > { %v2228_v53 = vshll.u32 %v6062_v52, %v2216_v38  ;;  %v2231_v55 = vshll.u32 %v6063_v54, %v2216_v38  ;;  %vm2234_vm2 = vcmp.lt.s32.totalorder %v2215_v37, 1  ;;  %vm2235_vm3 = vcmp.lt.s32.totalorder %v2215_v37, 2 }
  0x2b   : > { %v2218_v57 = vshrl.u32 %v6059_v42, %v2217_v47  ;;  %v2220_v58 = vshrl.u32 %v6060_v44, %v2217_v47  ;;  %v2223_v59 = vshrl.u32 %v6061_v50, %v2217_v47  ;;  %v2226_v60 = vshrl.u32 %v6062_v52, %v2217_v47 }
  0x2c   : > { %v2229_v61 = vshrl.u32 %v6063_v54, %v2217_v47  ;;  %v2232_v63 = vshrl.u32 %v6064_v62, %v2217_v47  ;;  %vm2236_vm4 = vcmp.lt.s32.totalorder %v2215_v37, 3  ;;  %vm2237_vm5 = vcmp.lt.s32.totalorder %v2215_v37, 4 }
  0x2d   : > { %v2221_v0 = vor.u32 %v2220_v58, %v2219_v48  ;;  %v2224_v2 = vor.u32 %v2223_v59, %v2222_v49  ;;  %v2227_v3 = vor.u32 %v2226_v60, %v2225_v51  ;;  %v472_v11 = vshrl.u32 %v6060_v44, %v469_v41 }
  0x2e   : > { %v2230_v5 = vor.u32 %v2229_v61, %v2228_v53  ;;  %v2233_v9 = vor.u32 %v2232_v63, %v2231_v55  ;;  %v475_v13 = vshrl.u32 %v6061_v50, %v469_v41  ;;  %v470_v23 = vshrl.u32 %v6059_v42, %v469_v41 }
  0x2f   : > { %v2238_v16 = vsel %vm2234_vm2, %v2218_v57, %v2221_v0  ;;  %v2239_v17 = vsel %vm2237_vm5, %v2227_v3, 2102212464  ;;  %v2242_v18 = vsel %vm2234_vm2, %v2221_v0, %v2224_v2  ;;  %v2246_v19 = vsel %vm2234_vm2, %v2224_v2, %v2227_v3 }
  0x30   : > { %v2240_v20 = vsel %vm2236_vm4, %v2224_v2, %v2239_v17  ;;  %v2243_v21 = vsel %vm2237_vm5, %v2230_v5, 920167782  ;;  %v2247_v22 = vsel %vm2237_vm5, %v2233_v9, 1326507024  ;;  %v473_v27 = vor.u32 %v472_v11, %v471_v43 }
  0x31   : > { %v2241_v24 = vsel %vm2235_vm3, %v2238_v16, %v2240_v20  ;;  %v2244_v25 = vsel %vm2236_vm4, %v2227_v3, %v2243_v21  ;;  %v2248_v26 = vsel %vm2236_vm4, %v2230_v5, %v2247_v22  ;;  %v476_v30 = vor.u32 %v475_v13, %v474_v45 }
  0x32   : > { %v2245_v28 = vsel %vm2235_vm3, %v2242_v18, %v2244_v25  ;;  %v2249_v29 = vsel %vm2235_vm3, %v2246_v19, %v2248_v26  ;;  %v478_v31 = vshrl.u32 %v6062_v52, %v469_v41  ;;  %v480_v51 = vshll.u32 %v6062_v52, %v468_v34  ;;  %v6314_v26 = vld [vmem:[%s6198_s30 + $0x8] sm:$0xff] }
  0x33   : > { %v6266_v33 = vmul.u32.u64.low %v6232_v39, %v2249_v29  ;;  %v6267_v38 = vmul.u32.u64.high %v6232_v39, %v2249_v29, %v6266_v33  ;;  %v6270_v47 = vmul.u32.u64.low %v6232_v39, %v2245_v28  ;;  %v6271_v48 = vmul.u32.u64.high %v6232_v39, %v2245_v28, %v6270_v47 }
  0x34   : > { %v479_v49 = vor.u32 %v478_v31, %v477_v56  ;;  %v481_v43 = vshrl.u32 %v6063_v54, %v469_v41  ;;  %v483_v53 = vshll.u32 %v6063_v54, %v468_v34  ;;  %v2257_v37 = vmul.u32 %v6232_v39, %v2241_v24 }
  0x35   : > { %v484_v45 = vshrl.u32 %v6064_v62, %v469_v41  ;;  %vm488_vm8 = vcmp.lt.s32.totalorder %v6234_v40, 3  ;;  %vm489_vm9 = vcmp.lt.s32.totalorder %v6234_v40, 4  ;;  %v490_v56 = vsel %vm486_vm6, %v470_v23, %v473_v27 }
  0x36   : > { %v482_v55 = vor.u32 %v481_v43, %v480_v51  ;;  %vm2259_vm10 = vc.u32 %v6267_v38, %v6270_v47  ;;  %v2260_v57 = vadd.s32 1, %v6271_v48  ;;  %v494_v34 = vsel %vm486_vm6, %v473_v27, %v476_v30 }
  0x37   : > { %v485_v58 = vor.u32 %v484_v45, %v483_v53  ;;  %v491_v59 = vsel %vm489_vm9, %v479_v49, 2102212464  ;;  %v498_v60 = vsel %vm486_vm6, %v476_v30, %v479_v49  ;;  %v1045_v9 = vand.u32 8388607, %v1038_v32 }
  0x38   : > { %v495_v39 = vsel %vm489_vm9, %v482_v55, 920167782  ;;  %v2261_v41 = vsel %vm2259_vm10, %v2260_v57, %v6271_v48  ;;  %v492_v61 = vsel %vm488_vm8, %v476_v30, %v491_v59  ;;  %v1050_v21 = vsel %vm1049_vm11, %v6238_v46, 0 }
  0x39   : > { %v496_v63 = vsel %vm488_vm8, %v479_v49, %v495_v39  ;;  %v499_v0 = vsel %vm489_vm9, %v485_v58, 1326507024  ;;  %v2262_v2 = vadd.s32 %v2261_v41, %v2257_v37  ;;  %v493_v11 = vsel %vm487_vm7, %v490_v56, %v492_v61 }
  0x3a   : > { %v497_v3 = vsel %vm487_vm7, %v494_v34, %v496_v63  ;;  %v500_v5 = vsel %vm488_vm8, %v482_v55, %v499_v0  ;;  %v1621_v22 = vand.u32 2139095040, %v6230_v36  ;;  %v509_v24 = vmul.u32 %v6227_v35, %v493_v11 }
  0x3b   : > { %v501_v13 = vsel %vm487_vm7, %v498_v60, %v500_v5  ;;  %v6301_v16 = vmul.u32.u64.low %v6227_v35, %v497_v3  ;;  %v6302_v17 = vmul.u32.u64.high %v6227_v35, %v497_v3, %v6301_v16  ;;  %v2263_v18 = vadd.s32 536870912, %v2262_v2 }
  0x3c   : > { %v6306_v19 = vmul.u32.u64.low %v6227_v35, %v501_v13  ;;  %v6307_v20 = vmul.u32.u64.high %v6227_v35, %v501_v13, %v6306_v19  ;;  %v1052_v25 = vand.u32 31, %v1050_v21  ;;  %v1046_v28 = vor.u32 8388608, %v1045_v9 }
  0x3d   : > { %v2264_v23 = vshrl.u32 %v2263_v18, 30  ;;  %v512_v40 = vadd.s32 1, %v6302_v17  ;;  %v1618_v29 = vand.u32 2147483647, %v6230_v36  ;;  %v1622_v46 = vshrl.u32 %v1621_v22, 23 }
  0x3e   : > { %vm511_vm12 = vc.u32 %v6307_v20, %v6301_v16  ;;  %v1053_v48 = vsub.s32 32, %v1052_v25  ;;  %v6324_v35 = vmul.f32 3.14159, %v6314_v26  ;;  %v6327_v43 = vshll.u32 %v1046_v28, 8 }
  0x3f   : > { %v2265_v27 = vshll.u32 %v2264_v23, 30  ;;  %v513_v30 = vsel %vm511_vm12, %v512_v40, %v6302_v17  ;;  %v6331_v53 = vand.u32 8388607, %v1618_v29  ;;  %v2258_v37 = vadd.s32 %v6270_v47, %v6267_v38 }
  0x40   : > { %v514_v33 = vadd.s32 %v513_v30, %v509_v24  ;;  %v6334_v45 = vshrl.u32 %v1050_v21, 5  ;;  %v1055_v55 = vshll.u32 %v6059_v42, %v1052_v25  ;;  %v6337_v56 = vadd.s32 4294967169, %v1622_v46 }
  0x41   : > { %v6320_v31 = vsub.s32 %v2262_v2, %v2265_v27  ;;  %v2288_v58 = vsub.s32 4, %v2264_v23  ;;  %v1061_v34 = vshll.u32 %v6061_v50, %v1052_v25  ;;  %v1062_v59 = vshrl.u32 %v6062_v52, %v1053_v48 }
  0x42   : > { %v515_v51 = vadd.s32 536870912, %v514_v33  ;;  %v1056_v60 = vshrl.u32 %v6060_v44, %v1053_v48  ;;  %v1058_v41 = vshll.u32 %v6060_v44, %v1052_v25  ;;  %v1059_v38 = vshrl.u32 %v6061_v50, %v1053_v48 }
  0x43   : > { %v2268_v49 = vsub.s32 0, %v6320_v31  ;;  %v1064_v63 = vshll.u32 %v6062_v52, %v1052_v25  ;;  %v1065_v0 = vshrl.u32 %v6063_v54, %v1053_v48  ;;  %v1626_v2 = vor.u32 8388608, %v6331_v53 }
  0x44   : > { %v516_v39 = vshrl.u32 %v515_v51, 30  ;;  %v1067_v5 = vshll.u32 %v6063_v54, %v1052_v25  ;;  %v1068_v9 = vshrl.u32 %v6064_v62, %v1053_v48  ;;  %v2289_v13 = vsel %vm2204_vm13, %v2288_v58, %v2264_v23 }
  0x45   : > { %v5597_v57 = vmin.u32 %v2268_v49, %v6320_v31  ;;  %v1054_v17 = vshrl.u32 %v6059_v42, %v1053_v48  ;;  %v1063_v18 = vor.u32 %v1062_v59, %v1061_v34  ;;  %v1057_v21 = vor.u32 %v1056_v60, %v1055_v55 }
  0x46   : > { %v517_v3 = vshll.u32 %v516_v39, 30  ;;  %v1060_v22 = vor.u32 %v1059_v38, %v1058_v41  ;;  %vm1073_vm0 = vcmp.lt.s32.totalorder %v6334_v45, 4  ;;  %v540_v24 = vsub.s32 4, %v516_v39 }
  0x47   : > { %v2270_v61 = vclz %v5597_v57  ;;  %v1066_v25 = vor.u32 %v1065_v0, %v1064_v63  ;;  %v1075_v40 = vsel %vm1073_vm0, %v1063_v18, 2102212464  ;;  %v1069_v30 = vor.u32 %v1068_v9, %v1067_v5 }
  0x48   : > { %v6362_v19 = vsub.s32 %v514_v33, %v517_v3  ;;  %vm1070_vm2 = vcmp.lt.s32.totalorder %v6334_v45, 1  ;;  %vm1072_vm3 = vcmp.lt.s32.totalorder %v6334_v45, 3  ;;  %vm1071_vm4 = vcmp.lt.s32.totalorder %v6334_v45, 2 }
  0x49   : > { %v5598_v11 = vadd.s32 4294967294, %v2270_v61  ;;  %v1074_v49 = vsel %vm1070_vm2, %v1054_v17, %v1057_v21  ;;  %v1076_v51 = vsel %vm1072_vm3, %v1060_v22, %v1075_v40  ;;  %v1078_v58 = vsel %vm1070_vm2, %v1057_v21, %v1060_v22 }
  0x4a   : > { %v520_v28 = vsub.s32 0, %v6362_v19  ;;  %v2291_v34 = vsel %vm6347_vm14, 0, %v2289_v13  ;;  %vm6385_vm5 = vcmp.le.f32.partialorder %v454_v12, 0.7853982  ;;  %v510_v60 = vadd.s32 %v6301_v16, %v6307_v20 }
  0x4b   : > { %vm5599_vm1 = vcmp.lt.s32.totalorder %v5598_v11, 0  ;;  %v541_v41 = vsel %vm456_vm15, %v540_v24, %v516_v39  ;;  %v1082_v0 = vsel %vm1070_vm2, %v1060_v22, %v1063_v18  ;;  %v1077_v12 = vsel %vm1071_vm4, %v1074_v49, %v1076_v51 }
  0x4c   : > { %v2273_v27 = vsel %vm5599_vm1, 0, %v5598_v11  ;;  %v5525_v48 = vmin.u32 %v520_v28, %v6362_v19  ;;  %v1083_v16 = vsel %vm1073_vm0, %v1069_v30, 1326507024  ;;  %v1628_v11 = vadd.s32 1, %v6337_v56 }
  0x4d   : > { %v2274_v23 = vsub.s32 32, %v2273_v27  ;;  %v2275_v46 = vshll.u32 %v6320_v31, %v2273_v27  ;;  %v2278_v33 = vsub.s32 4294967266, %v2273_v27  ;;  %v1079_v31 = vsel %vm1073_vm0, %v1066_v25, 920167782 }
  0x4e   : > { %v1080_v63 = vsel %vm1072_vm3, %v1063_v18, %v1079_v31  ;;  %v1084_v9 = vsel %vm1072_vm3, %v1066_v25, %v1083_v16  ;;  %vm1629_vm7 = vcmp.gt.s32.totalorder %v1628_v11, 0  ;;  %v2295_v30 = vadd.s32 3, %v2291_v34 }
  0x4f   : > { %v2276_v55 = vshrl.u32 %v2258_v37, %v2274_v23  ;;  %v2279_v57 = vadd.s32 127, %v2278_v33  ;;  %v522_v37 = vclz %v5525_v48  ;;  %v1081_v5 = vsel %vm1071_vm4, %v1078_v58, %v1080_v63 }
  0x50   : > { %v1085_v13 = vsel %vm1071_vm4, %v1082_v0, %v1084_v9  ;;  %v6409_v17 = vmul.u32.u64.low %v6327_v43, %v1081_v5  ;;  %v6410_v18 = vmul.u32.u64.high %v6327_v43, %v1081_v5, %v6409_v17  ;;  %v1093_v45 = vmul.u32 %v6327_v43, %v1077_v12 }
  0x51   : > { %v2277_v38 = vor.u32 %v2276_v55, %v2275_v46  ;;  %v2280_v61 = vshll.u32 %v2279_v57, 23  ;;  %v5526_v3 = vadd.s32 4294967294, %v522_v37  ;;  %v1630_v23 = vsel %vm1629_vm7, %v1628_v11, 0 }
  0x52   : > { %v6414_v24 = vmul.u32.u64.low %v6327_v43, %v1085_v13  ;;  %v6415_v40 = vmul.u32.u64.high %v6327_v43, %v1085_v13, %v6414_v24  ;;  %v1096_v48 = vadd.s32 1, %v6410_v18  ;;  %v6421_v49 = vmul.f32 8.0, %v6324_v35 }
  0x53   : > { %v2281_v20 = vor.u32 4788187, %v2280_v61  ;;  %v2284_v39 = vcvt.s32.f32 %v2277_v38  ;;  %vm5527_vm6 = vcmp.lt.s32.totalorder %v5526_v3, 0  ;;  %v543_v55 = vsel %vm6385_vm5, 0, %v541_v41 }
  0x54   : > { %v525_v22 = vsel %vm5527_vm6, 0, %v5526_v3  ;;  %vm1095_vm8 = vc.u32 %v6415_v40, %v6409_v17  ;;  %v6427_v57 = vand.u32 3, %v2291_v34  ;;  %v6432_v37 = vand.u32 3, %v2295_v30 }
  0x55   : > { %v2282_v21 = vand.u32 2147483647, %v2281_v20  ;;  %v526_v27 = vsub.s32 32, %v525_v22  ;;  %v527_v25 = vshll.u32 %v6362_v19, %v525_v22  ;;  %v530_v28 = vsub.s32 4294967266, %v525_v22 }
  0x56   : > { %v1632_v19 = vand.u32 31, %v1630_v23  ;;  %v1097_v31 = vsel %vm1095_vm8, %v1096_v48, %v6410_v18  ;;  %v547_v3 = vadd.s32 3, %v543_v55  ;;  %v6437_v34 = vand.u32 3, %v543_v55 }
  0x57   : > { %v2285_v56 = vmul.f32 %v2284_v39, %v2282_v21  ;;  %v528_v46 = vshrl.u32 %v510_v60, %v526_v27  ;;  %v531_v33 = vadd.s32 127, %v530_v28  ;;  %v1098_v38 = vadd.s32 %v1097_v31, %v1093_v45 }
  0x58   : > { %v1633_v61 = vsub.s32 32, %v1632_v19  ;;  %vm7847_vm9 = vcmp.lt.s32.totalorder %v6217_v14, 0  ;;  %v6440_v5 = vshrl.u32 %v1630_v23, 5  ;;  %v1635_v20 = vshll.u32 %v6059_v42, %v1632_v19 }
  0x59   : > { %v2286_v51 = vxor.u32 2147483648, %v2285_v56  ;;  %v529_v58 = vor.u32 %v528_v46, %v527_v25  ;;  %v532_v43 = vshll.u32 %v531_v33, 23  ;;  %v1099_v12 = vadd.s32 536870912, %v1098_v38 }
  0x5a   : > { %v1638_v39 = vshll.u32 %v6060_v44, %v1632_v19  ;;  %v1636_v47 = vshrl.u32 %v6060_v44, %v1633_v61  ;;  %v1639_v11 = vshrl.u32 %v6061_v50, %v1633_v61  ;;  %v1644_v13 = vshll.u32 %v6062_v52, %v1632_v19 }
  0x5b   : > { %v2287_v60 = vsel %vm2204_vm13, %v2286_v51, %v2285_v56  ;;  %v533_v63 = vor.u32 4788187, %v532_v43  ;;  %v536_v0 = vcvt.s32.f32 %v529_v58  ;;  %v1100_v9 = vshrl.u32 %v1099_v12, 30 }
  0x5c   : > { %v2290_v41 = vsel %vm6347_vm14, %v6212_v10, %v2287_v60  ;;  %vm6449_vm10 = vcmp.le.f32.partialorder %v1038_v32, 0.7853982  ;;  %v1641_v22 = vshll.u32 %v6061_v50, %v1632_v19  ;;  %v1642_v24 = vshrl.u32 %v6062_v52, %v1633_v61 }
  0x5d   : > { %5939 = vcosq.f32 %v2290_v41  ;;  %v534_v16 = vand.u32 2147483647, %v533_v63  ;;  %v1645_v27 = vshrl.u32 %v6063_v54, %v1633_v61  ;;  %v6456_v25 = vand.u32 3, %v547_v3 }
  0x5e   : > { %5941 = vsinq.f32 %v2290_v41  ;;  %v1101_v28 = vshll.u32 %v1100_v9, 30  ;;  %v1647_v56 = vshll.u32 %v6063_v54, %v1632_v19  ;;  %v388_v30 = vrot.slane %v374_v15, %v6201_v6 }
  0x5f   : > { %v537_v18 = vmul.f32 %v536_v0, %v534_v16  ;;  %vm2592_vm11 = vcmp.eq.s32.totalorder %v6427_v57, 2  ;;  %v1124_v45 = vsub.s32 4, %v1100_v9  ;;  %v1646_v23 = vor.u32 %v1645_v27, %v1644_v13 }
  0x60   : > { %v1648_v46 = vshrl.u32 %v6064_v62, %v1633_v61  ;;  %vm2589_vm12 = vcmp.eq.s32.totalorder %v6427_v57, 0  ;;  %v6466_v33 = vsub.s32 %v1098_v38, %v1101_v28  ;;  %v1637_v48 = vor.u32 %v1636_v47, %v1635_v20 }
  0x61   : > { %v538_v32 = vxor.u32 2147483648, %v537_v18  ;;  %v1640_v51 = vor.u32 %v1639_v11, %v1638_v39  ;;  %vm1653_vm13 = vcmp.lt.s32.totalorder %v6440_v5, 4  ;;  %vm2588_vm14 = vcmp.lt.s32.totalorder %v6427_v57, 2 }
  0x62   : > { %v1634_v15 = vshrl.u32 %v6059_v42, %v1633_v61  ;;  %v1643_v55 = vor.u32 %v1642_v24, %v1641_v22  ;;  %vm1650_vm0 = vcmp.lt.s32.totalorder %v6440_v5, 1  ;;  %vm2294_vm1 = vweird.f32 %v6212_v10 }
  0x63   : > { %v539_v7 = vsel %vm456_vm15, %v538_v32, %v537_v18  ;;  %v1104_v58 = vsub.s32 0, %v6466_v33  ;;  %vm1651_vm2 = vcmp.lt.s32.totalorder %v6440_v5, 2  ;;  %vm1652_vm3 = vcmp.lt.s32.totalorder %v6440_v5, 3 }
  0x64   : > { %v542_v19 = vsel %vm6385_vm5, %v6207_v8, %v539_v7  ;;  %v1125_v43 = vsel %vm7847_vm9, %v1124_v45, %v1100_v9  ;;  %v1649_v31 = vor.u32 %v1648_v46, %v1647_v56  ;;  %v1659_v60 = vsel %vm1653_vm13, %v1646_v23, 920167782 }
  0x65   : > { %5943 = vcosq.f32 %v542_v19  ;;  %v5549_v38 = vmin.u32 %v1104_v58, %v6466_v33  ;;  %v1655_v59 = vsel %vm1653_vm13, %v1643_v55, 2102212464  ;;  %v1658_v61 = vsel %vm1650_vm0, %v1637_v48, %v1640_v51 }
  0x66   : > { %5945 = vsinq.f32 %v542_v19  ;;  %vm2297_vm15 = vcmp.lt.s32.totalorder %v6432_v37, 2  ;;  %vm2298_vm4 = vcmp.eq.s32.totalorder %v6432_v37, 0  ;;  %v1660_v41 = vsel %vm1652_vm3, %v1643_v55, %v1659_v60 }
  0x67   : > { %v6496_v63 = vshll.u32 %v1626_v2, 8  ;;  %vm2301_vm5 = vcmp.eq.s32.totalorder %v6432_v37, 2  ;;  %v1094_v0 = vadd.s32 %v6409_v17, %v6415_v40  ;;  %v1106_v3 = vclz %v5549_v38 }
  0x68   : > { %v6503_v12 = vsel %vm6449_vm10, 0, %v1125_v43  ;;  %v1654_v20 = vsel %vm1650_vm0, %v1634_v15, %v1637_v48  ;;  %v1656_v39 = vsel %vm1652_vm3, %v1640_v51, %v1655_v59  ;;  %v1661_v53 = vsel %vm1651_vm2, %v1658_v61, %v1660_v41 }
  0x69   : > { %v1663_v2 = vsel %vm1653_vm13, %v1649_v31, 1326507024  ;;  %vm553_vm6 = vcmp.eq.s32.totalorder %v6456_v25, 2  ;;  %vm844_vm7 = vcmp.eq.s32.totalorder %v6437_v34, 2  ;;  %v5550_v40 = vadd.s32 4294967294, %v1106_v3 }
  0x6a   : > { %v5940_v16 = vpop.eup %5939  ;;  %v1662_v47 = vsel %vm1650_vm0, %v1640_v51, %v1643_v55  ;;  %v390_v11 = vcombine.high %v388_v30, %v388_v30  ;;  %vm841_vm9 = vcmp.eq.s32.totalorder %v6437_v34, 0  ;;  %v1664_v18 = vsel %vm1652_vm3, %v1646_v23, %v1663_v2 }
  0x6b   : > { %v5942_v9 = vpop.eup %5941  ;;  %v2302_v17 = vxor.u32 2147483648, %v5940_v16  ;;  %v6522_v22 = vmul.u32.u64.low %v6496_v63, %v1661_v53  ;;  %v6523_v24 = vmul.u32.u64.high %v6496_v63, %v1661_v53, %v6522_v22  ;;  %vm549_vm13 = vcmp.lt.s32.totalorder %v6456_v25, 2 }
  0x6c   : > { %v2299_v13 = vxor.u32 2147483648, %v5942_v9  ;;  %vm840_vm0 = vcmp.lt.s32.totalorder %v6437_v34, 2  ;;  %vm5551_vm8 = vcmp.lt.s32.totalorder %v5550_v40, 0  ;;  %v5760_v56 = vpack.c.bf16 %v390_v11, %v388_v30 }
  0x6d   : > { %v2303_v27 = vsel %vm2301_vm5, %v2302_v17, %v5942_v9  ;;  %v2594_v28 = vsel %vm2592_vm11, %v2302_v17, %v5942_v9  ;;  %vm546_vm3 = vweird.f32 %v6207_v8  ;;  %v1109_v23 = vsel %vm5551_vm8, 0, %v5550_v40 }
  0x6e   : > { %v2300_v32 = vsel %vm2298_vm4, %v5940_v16, %v2299_v13  ;;  %v2591_v45 = vsel %vm2589_vm12, %v5940_v16, %v2299_v13  ;;  %v1657_v46 = vsel %vm1651_vm2, %v1654_v20, %v1656_v39  ;;  %v1110_v7 = vsub.s32 32, %v1109_v23  ;;  %449 = vst [vmem:[#allocation2 + $0x8] sm:$0x11] %v5760_v56 }
  0x6f   : > { %v2304_v48 = vsel %vm2297_vm15, %v2300_v32, %v2303_v27  ;;  %v2595_v51 = vsel %vm2588_vm14, %v2591_v45, %v2594_v28  ;;  %v1665_v30 = vsel %vm1651_vm2, %v1662_v47, %v1664_v18  ;;  %v1111_v19 = vshll.u32 %v6466_v33, %v1109_v23 }
  0x70   : > { %v2305_v15 = vsel %vm2294_vm1, nan, %v2304_v48  ;;  %v2596_v55 = vsel %vm2294_vm1, nan, %v2595_v51  ;;  %v1114_v58 = vsub.s32 4294967266, %v1109_v23  ;;  %v1673_v31 = vmul.u32 %v6496_v63, %v1657_v46 }
  0x71   : > { %v2419_v37 = vrot.slane %v2305_v15, %v6201_v6  ;;  %v2709_v43 = vrot.slane %v2596_v55, %v6201_v6  ;;  %v2702_v57 = vcombine.high %v2596_v55, %v2596_v55  ;;  %v1112_v60 = vshrl.u32 %v1094_v0, %v1110_v7 }
  0x72   : > { %v1115_v5 = vadd.s32 127, %v1114_v58  ;;  %v6554_v38 = vmul.u32.u64.low %v6496_v63, %v1665_v30  ;;  %v6555_v59 = vmul.u32.u64.high %v6496_v63, %v1665_v30, %v6554_v38  ;;  %v5944_v61 = vpop.eup %5943  ;;  %v2412_v41 = vcombine.high %v2305_v15, %v2305_v15 }
  0x73   : > { %v2717_v10 = vcombine.high %v2709_v43, %v2709_v43  ;;  %v2716_v3 = vrot.slane %v2702_v57, %v6201_v6  ;;  %v2427_v33 = vcombine.high %v2419_v37, %v2419_v37  ;;  %v5946_v16 = vpop.eup %5945  ;;  %v554_v20 = vxor.u32 2147483648, %v5944_v61 }
  0x74   : > { %v1113_v39 = vor.u32 %v1112_v60, %v1111_v19  ;;  %v1116_v53 = vshll.u32 %v1115_v5, 23  ;;  %v1676_v2 = vadd.s32 1, %v6523_v24  ;;  %v551_v0 = vxor.u32 2147483648, %v5946_v16 }
  0x75   : > { %v5791_v9 = vpack.c.bf16 %v2717_v10, %v2709_v43  ;;  %v2718_v17 = vcombine.high %v2716_v3, %v2716_v3  ;;  %v5787_v40 = vpack.c.bf16 %v2427_v33, %v2419_v37  ;;  %v555_v63 = vsel %vm553_vm6, %v554_v20, %v5946_v16 }
  0x76   : > { %v846_v47 = vsel %vm844_vm7, %v554_v20, %v5946_v16  ;;  %v1117_v11 = vor.u32 4788187, %v1116_v53  ;;  %v1120_v13 = vcvt.s32.f32 %v1113_v39  ;;  %vm7859_vm11 = vcmp.eq.s32.totalorder %v6456_v25, 0 }
  0x77   : > { %2776 = vst [vmem:[#allocation2 + $0x30] sm:$0x11] %v5791_v9  ;;  %v5792_v18 = vpack.c.bf16 %v2718_v17, %v2716_v3  ;;  %v552_v27 = vsel %vm7859_vm11, %v5944_v61, %v551_v0  ;;  %v843_v28 = vsel %vm841_vm9, %v5944_v61, %v551_v0  ;;  %v2426_v56 = vrot.slane %v2412_v41, %v6201_v6 }
  0x78   : > { %v556_v32 = vsel %vm549_vm13, %v552_v27, %v555_v63  ;;  %v847_v45 = vsel %vm840_vm0, %v843_v28, %v846_v47  ;;  %v1118_v23 = vand.u32 2147483647, %v1117_v11  ;;  %vm1675_vm12 = vc.u32 %v6555_v59, %v6522_v22 }
  0x79   : > { %2777 = vst [vmem:[#allocation2 + $0xc0] sm:$0x11] %v5792_v18  ;;  %v557_v46 = vsel %vm546_vm3, nan, %v556_v32  ;;  %v848_v48 = vsel %vm546_vm3, nan, %v847_v45  ;;  %v1677_v51 = vsel %vm1675_vm12, %v1676_v2, %v6523_v24  ;;  %v2482_v7 = vrot.slane %v5787_v40, 5 }
  0x7a   : > { %v671_v25 = vrot.slane %v557_v46, %v6201_v6  ;;  %v961_v30 = vrot.slane %v848_v48, %v6201_v6  ;;  %v1121_v34 = vmul.f32 %v1120_v13, %v1118_v23  ;;  %v1678_v15 = vadd.s32 %v1677_v51, %v1673_v31 }
  0x7b   : > { %v1131_v55 = vadd.s32 3, %v6503_v12  ;;  %2490 = vst [vmem:[#allocation2 + $0xa0] sm:$0x88] %v2482_v7  ;;  %v664_v19 = vcombine.high %v557_v46, %v557_v46  ;;  %v954_v58 = vcombine.high %v848_v48, %v848_v48  ;;  %v2428_v37 = vcombine.high %v2426_v56, %v2426_v56 }
  0x7c   : > { %v679_v43 = vcombine.high %v671_v25, %v671_v25  ;;  %v969_v57 = vcombine.high %v961_v30, %v961_v30  ;;  %v1122_v60 = vxor.u32 2147483648, %v1121_v34  ;;  %v1679_v8 = vadd.s32 536870912, %v1678_v15 }
  0x7d   : > { %v678_v5 = vrot.slane %v664_v19, %v6201_v6  ;;  %v968_v24 = vrot.slane %v954_v58, %v6201_v6  ;;  %v5788_v38 = vpack.c.bf16 %v2428_v37, %v2426_v56  ;;  %v2306_v61 = vand.u32 2147483647, %v6421_v49 }
  0x7e   : > { %v2788_v41 = vld [vmem:[#allocation2 + $0x30] sm:$0xff]  ;;  %v5763_v10 = vpack.c.bf16 %v679_v43, %v671_v25  ;;  %v5767_v31 = vpack.c.bf16 %v969_v57, %v961_v30  ;;  %vm7860_vm9 = vcmp.lt.s32.totalorder %v6217_v14, 0  ;;  %v1680_v33 = vshrl.u32 %v1679_v8, 30 }
  0x7f   : > { %v1123_v3 = vsel %vm7860_vm9, %v1122_v60, %v1121_v34  ;;  %v5631_v16 = vcombine.high %v2788_v41, %v6057_v1  ;;  %v5630_v20 = vcombine.low %v2788_v41, %v6057_v1  ;;  %v680_v53 = vcombine.high %v678_v5, %v678_v5 }
  0x80   : > { %v1126_v39 = vsel %vm6449_vm10, %v6217_v14, %v1123_v3  ;;  %v2789_v2 = vld [vmem:[#allocation2 + $0xc0] sm:$0xff]  ;;  %v734_v9 = vrot.slane %v5763_v10, 7  ;;  %v1024_v17 = vrot.slane %v5767_v31, 6  ;;  %v1681_v0 = vshll.u32 %v1680_v33, 30 }
  0x81   : > { %5947 = vcosq.f32 %v1126_v39  ;;  %2933 = vmatprep.subr.bf16.mxu0 %v5631_v16  ;;  %v5633_v40 = vcombine.high %v2789_v2, %v6057_v1  ;;  %v5632_v63 = vcombine.low %v2789_v2, %v6057_v1  ;;  %v1704_v47 = vsub.s32 4, %v1680_v33 }
  0x82   : > { %5949 = vsinq.f32 %v1126_v39  ;;  %2934 = vmatpush1.bf16.msra.mxu0 %v5630_v20  ;;  %742 = vst [vmem:[#allocation2] sm:$0x22] %v734_v9  ;;  %1032 = vst [vmem:[#allocation2] sm:$0x44] %v1024_v17  ;;  %v6594_v11 = vsub.s32 %v1678_v15, %v1681_v0  ;;  %v5764_v21 = vpack.c.bf16 %v680_v53, %v678_v5  ;;  %v2483_v18 = vrot.slane %v5788_v38, 5 }
  0x83   : > { %v970_v13 = vcombine.high %v968_v24, %v968_v24  ;;  %2986 = vmatprep.subr.bf16.mxu1 %v5633_v40  ;;  %v2309_v27 = vand.u32 2139095040, %v6421_v49  ;;  %v6598_v28 = vand.u32 3, %v6503_v12  ;;  %v1132_v45 = vand.u32 3, %v1131_v55 }
  0x84   : > { %2987 = vmatpush1.bf16.msra.mxu1 %v5632_v63  ;;  %v1684_v56 = vsub.s32 0, %v6594_v11  ;;  %v735_v1 = vrot.slane %v5764_v21, 7  ;;  %2491 = vst [vmem:[#allocation2 + $0x70] sm:$0x88] %v2483_v18  ;;  %vm1620_vm10 = vcmp.lt.s32.totalorder %v6230_v36, 0  ;;  %v398_v7 = vrot.slane %v6314_v26, %v6201_v6 }
  0x85   : > { %v5768_v32 = vpack.c.bf16 %v970_v13, %v968_v24  ;;  %v2310_v23 = vshrl.u32 %v2309_v27, 23  ;;  %v2313_v46 = vand.u32 8388607, %v2306_v61  ;;  %v1705_v51 = vsel %vm1620_vm10, %v1704_v47, %v1680_v33 }
  0x86   : > { %v5573_v48 = vmin.u32 %v1684_v56, %v6594_v11  ;;  %743 = vst [vmem:[#allocation2 + $0x8] sm:$0x22] %v735_v1  ;;  %vm6611_vm14 = vcmp.le.f32.partialorder %v1618_v29, 0.7853982  ;;  %vm1130_vm1 = vweird.f32 %v6217_v14  ;;  %vm1424_vm2 = vcmp.lt.s32.totalorder %v6598_v28, 2 }
  0x87   : > { %v1025_v12 = vrot.slane %v5768_v32, 6  ;;  %v5600_v34 = vadd.s32 4294967169, %v2310_v23  ;;  %v406_v15 = vcombine.high %v398_v7, %v398_v7  ;;  %vm1425_vm15 = vcmp.eq.s32.totalorder %v6598_v28, 0 }
  0x88   : > { %v1686_v30 = vclz %v5573_v48  ;;  %vm1428_vm4 = vcmp.eq.s32.totalorder %v6598_v28, 2  ;;  %v1707_v26 = vsel %vm6611_vm14, 0, %v1705_v51  ;;  %v2314_v55 = vor.u32 8388608, %v2313_v46 }
  0x89   : > { %1033 = vst [vmem:[#allocation2 + $0x8] sm:$0x44] %v1025_v12  ;;  %vm1133_vm5 = vcmp.lt.s32.totalorder %v1132_v45, 2  ;;  %v2316_v19 = vadd.s32 1, %v5600_v34  ;;  %v5761_v58 = vpack.c.bf16 %v406_v15, %v398_v7  ;;  %vm1134_vm6 = vcmp.eq.s32.totalorder %v1132_v45, 0 }
  0x8a   : > { %v5574_v29 = vadd.s32 4294967294, %v1686_v30  ;;  %vm1137_vm7 = vcmp.eq.s32.totalorder %v1132_v45, 2  ;;  %v1674_v37 = vadd.s32 %v6522_v22, %v6555_v59  ;;  %v561_v43 = vand.u32 2139095040, %v6324_v35 }
  0x8b   : > { %v6624_v57 = vadd.s32 3, %v1707_v26  ;;  %v6626_v60 = vand.u32 3, %v1707_v26  ;;  %vm2317_vm13 = vcmp.gt.s32.totalorder %v2316_v19, 0  ;;  %450 = vst [vmem:[#allocation2 + $0x68] sm:$0x11] %v5761_v58  ;;  %v6628_v38 = vshll.u32 %v2314_v55, 8 }
  0x8c   : > { %vm5575_vm8 = vcmp.lt.s32.totalorder %v5574_v29, 0  ;;  %v2318_v24 = vsel %vm2317_vm13, %v2316_v19, 0  ;;  %v562_v41 = vshrl.u32 %v561_v43, 23 }
  0x8d   : > { %v1689_v5 = vsel %vm5575_vm8, 0, %v5574_v29  ;;  %v6631_v16 = vshrl.u32 %v2318_v24, 5  ;;  %v2320_v20 = vand.u32 31, %v2318_v24 }
  0x8e   : > { %v5948_v8 = vpop.eup %5947  ;;  %v1690_v3 = vsub.s32 32, %v1689_v5  ;;  %v1691_v22 = vshll.u32 %v6594_v11, %v1689_v5  ;;  %v1694_v59 = vsub.s32 4294967266, %v1689_v5  ;;  %v6633_v39 = vadd.s32 4294967169, %v562_v41 }
  0x8f   : > { %v5950_v10 = vpop.eup %5949  ;;  %v1138_v31 = vxor.u32 2147483648, %v5948_v8  ;;  %v2321_v63 = vsub.s32 32, %v2320_v20  ;;  %v2323_v47 = vshll.u32 %v6059_v42, %v2320_v20  ;;  %v2326_v7 = vshll.u32 %v6060_v44, %v2320_v20 }
  0x90   : > { %v1135_v33 = vxor.u32 2147483648, %v5950_v10  ;;  %v1692_v9 = vshrl.u32 %v1674_v37, %v1690_v3  ;;  %v1695_v17 = vadd.s32 127, %v1694_v59  ;;  %v2329_v29 = vshll.u32 %v6061_v50, %v2320_v20 }
  0x91   : > { %v1139_v53 = vsel %vm1137_vm7, %v1138_v31, %v5950_v10  ;;  %v1430_v2 = vsel %vm1428_vm4, %v1138_v31, %v5950_v10  ;;  %v2322_v1 = vshrl.u32 %v6059_v42, %v2321_v63  ;;  %v2324_v32 = vshrl.u32 %v6060_v44, %v2321_v63 }
  0x92   : > { %v1136_v0 = vsel %vm1134_vm6, %v5948_v8, %v1135_v33  ;;  %v1427_v40 = vsel %vm1425_vm15, %v5948_v8, %v1135_v33  ;;  %v1693_v13 = vor.u32 %v1692_v9, %v1691_v22  ;;  %v1696_v18 = vshll.u32 %v1695_v17, 23 }
  0x93   : > { %v1140_v11 = vsel %vm1133_vm5, %v1136_v0, %v1139_v53  ;;  %v1431_v21 = vsel %vm1424_vm2, %v1427_v40, %v1430_v2  ;;  %v2325_v12 = vor.u32 %v2324_v32, %v2323_v47  ;;  %v2327_v14 = vshrl.u32 %v6061_v50, %v2321_v63 }
  0x94   : > { %v1141_v27 = vsel %vm1130_vm1, nan, %v1140_v11  ;;  %v1432_v56 = vsel %vm1130_vm1, nan, %v1431_v21  ;;  %v1697_v46 = vor.u32 4788187, %v1696_v18  ;;  %v1700_v48 = vcvt.s32.f32 %v1693_v13 }
  0x95   : > { %v1255_v23 = vrot.slane %v1141_v27, %v6201_v6  ;;  %v1545_v45 = vrot.slane %v1432_v56, %v6201_v6  ;;  %v1248_v28 = vcombine.high %v1141_v27, %v1141_v27  ;;  %v1538_v51 = vcombine.high %v1432_v56, %v1432_v56 }
  0x96   : > { %v1698_v15 = vand.u32 2147483647, %v1697_v46  ;;  %v2330_v19 = vshrl.u32 %v6062_v52, %v2321_v63  ;;  %v2328_v8 = vor.u32 %v2327_v14, %v2326_v7  ;;  %v2332_v10 = vshll.u32 %v6062_v52, %v2320_v20 }
  0x97   : > { %v1263_v30 = vcombine.high %v1255_v23, %v1255_v23  ;;  %v1553_v34 = vcombine.high %v1545_v45, %v1545_v45  ;;  %v1262_v26 = vrot.slane %v1248_v28, %v6201_v6  ;;  %v1552_v55 = vrot.slane %v1538_v51, %v6201_v6 }
  0x98   : > { %v1701_v43 = vmul.f32 %v1700_v48, %v1698_v15  ;;  %v2331_v41 = vor.u32 %v2330_v19, %v2329_v29  ;;  %v2333_v22 = vshrl.u32 %v6063_v54, %v2321_v63  ;;  %v2335_v59 = vshll.u32 %v6063_v54, %v2320_v20 }
  0x99   : > { %v5771_v58 = vpack.c.bf16 %v1263_v30, %v1255_v23  ;;  %v5775_v37 = vpack.c.bf16 %v1553_v34, %v1545_v45  ;;  %v1264_v5 = vcombine.high %v1262_v26, %v1262_v26  ;;  %v1554_v24 = vcombine.high %v1552_v55, %v1552_v55 }
  0x9a   : > { %v1702_v3 = vxor.u32 2147483648, %v1701_v43  ;;  %v2336_v2 = vshrl.u32 %v6064_v62, %v2321_v63  ;;  %vm2338_vm0 = vcmp.lt.s32.totalorder %v6631_v16, 1  ;;  %v2334_v17 = vor.u32 %v2333_v22, %v2332_v10 }
  0x9b   : > { %v1318_v31 = vrot.slane %v5771_v58, 5  ;;  %1612 = vst [vmem:[#allocation2 + $0xa0] sm:$0x11] %v5775_v37  ;;  %v5772_v33 = vpack.c.bf16 %v1264_v5, %v1262_v26  ;;  %v5776_v53 = vpack.c.bf16 %v1554_v24, %v1552_v55  ;;  %vm2339_vm3 = vcmp.lt.s32.totalorder %v6631_v16, 2 }
  0x9c   : > { %v1703_v9 = vsel %vm1620_vm10, %v1702_v3, %v1701_v43  ;;  %vm2340_vm11 = vcmp.lt.s32.totalorder %v6631_v16, 3  ;;  %v2337_v40 = vor.u32 %v2336_v2, %v2335_v59  ;;  %vm2341_vm12 = vcmp.lt.s32.totalorder %v6631_v16, 4 }
  0x9d   : > { %1326 = vst [vmem:[#allocation2] sm:$0x88] %v1318_v31  ;;  %v1706_v0 = vsel %vm6611_vm14, %v6230_v36, %v1703_v9  ;;  %v1319_v20 = vrot.slane %v5772_v33, 5  ;;  %1613 = vst [vmem:[#allocation2 + $0x70] sm:$0x11] %v5776_v53  ;;  %v2342_v63 = vsel %vm2338_vm0, %v2322_v1, %v2325_v12  ;;  %v2346_v11 = vsel %vm2338_vm0, %v2325_v12, %v2328_v8 }
  0x9e   : > { %5951 = vcosq.f32 %v1706_v0  ;;  %v2343_v47 = vsel %vm2341_vm12, %v2331_v41, 2102212464  ;;  %v2347_v25 = vsel %vm2341_vm12, %v2334_v17, 920167782  ;;  %v2350_v13 = vsel %vm2338_vm0, %v2328_v8, %v2331_v41 }
  0x9f   : > { %5953 = vsinq.f32 %v1706_v0  ;;  %1327 = vst [vmem:[#allocation2 + $0x8] sm:$0x88] %v1319_v20  ;;  %v2344_v21 = vsel %vm2340_vm11, %v2328_v8, %v2343_v47  ;;  %v2348_v18 = vsel %vm2340_vm11, %v2331_v41, %v2347_v25  ;;  %v2351_v27 = vsel %vm2341_vm12, %v2337_v40, 1326507024 }
  0xa0   : > { %v558_v56 = vand.u32 2147483647, %v6324_v35  ;;  %v568_v1 = vadd.s32 1, %v6633_v39  ;;  %v1712_v32 = vand.u32 3, %v6624_v57  ;;  %v2345_v23 = vsel %vm2339_vm3, %v2342_v63, %v2344_v21 }
  0xa1   : > { %v2349_v45 = vsel %vm2339_vm3, %v2346_v11, %v2348_v18  ;;  %v2352_v46 = vsel %vm2340_vm11, %v2334_v17, %v2351_v27  ;;  %vm2005_vm10 = vcmp.eq.s32.totalorder %v6626_v60, 0  ;;  %vm2004_vm2 = vcmp.lt.s32.totalorder %v6626_v60, 2 }
  0xa2   : > { %v2353_v48 = vsel %vm2339_vm3, %v2350_v13, %v2352_v46  ;;  %v6694_v28 = vmul.u32.u64.low %v6628_v38, %v2349_v45  ;;  %v6695_v51 = vmul.u32.u64.high %v6628_v38, %v2349_v45, %v6694_v28  ;;  %vm569_vm9 = vcmp.gt.s32.totalorder %v568_v1, 0 }
  0xa3   : > { %v6699_v57 = vmul.u32.u64.low %v6628_v38, %v2353_v48  ;;  %v6700_v39 = vmul.u32.u64.high %v6628_v38, %v2353_v48, %v6699_v57  ;;  %v570_v12 = vsel %vm569_vm9, %v568_v1, 0  ;;  %vm1713_vm14 = vcmp.lt.s32.totalorder %v1712_v32, 2 }
  0xa4   : > { %v572_v7 = vand.u32 31, %v570_v12  ;;  %vm1714_vm1 = vcmp.eq.s32.totalorder %v1712_v32, 0  ;;  %vm2008_vm15 = vcmp.eq.s32.totalorder %v6626_v60, 2  ;;  %v2361_v16 = vmul.u32 %v6628_v38, %v2345_v23 }
  0xa5   : > { %vm1710_vm4 = vweird.f32 %v6230_v36  ;;  %v2364_v30 = vadd.s32 1, %v6695_v51  ;;  %v6710_v34 = vand.u32 8388607, %v558_v56  ;;  %vm2363_vm5 = vc.u32 %v6700_v39, %v6694_v28 }
  0xa6   : > { %v573_v15 = vsub.s32 32, %v572_v7  ;;  %v6714_v14 = vshrl.u32 %v570_v12, 5  ;;  %v575_v26 = vshll.u32 %v6059_v42, %v572_v7  ;;  %v578_v55 = vshll.u32 %v6060_v44, %v572_v7 }
  0xa7   : > { %v2365_v38 = vsel %vm2363_vm5, %v2364_v30, %v6695_v51  ;;  %v584_v58 = vshll.u32 %v6062_v52, %v572_v7  ;;  %v581_v43 = vshll.u32 %v6061_v50, %v572_v7  ;;  %vm1717_vm6 = vcmp.eq.s32.totalorder %v1712_v32, 2 }
  0xa8   : > { %v576_v29 = vshrl.u32 %v6060_v44, %v573_v15  ;;  %v579_v19 = vshrl.u32 %v6061_v50, %v573_v15  ;;  %v2366_v37 = vadd.s32 %v2365_v38, %v2361_v16  ;;  %v582_v8 = vshrl.u32 %v6062_v52, %v573_v15 }
  0xa9   : > { %v585_v5 = vshrl.u32 %v6063_v54, %v573_v15  ;;  %v587_v24 = vshll.u32 %v6063_v54, %v572_v7  ;;  %v588_v41 = vshrl.u32 %v6064_v62, %v573_v15  ;;  %v6728_v10 = vmul.f32 2.0, %v6324_v35 }
  0xaa   : > { %v2367_v3 = vadd.s32 536870912, %v2366_v37  ;;  %v566_v22 = vor.u32 8388608, %v6710_v34  ;;  %v574_v59 = vshrl.u32 %v6059_v42, %v573_v15  ;;  %v577_v33 = vor.u32 %v576_v29, %v575_v26 }
  0xab   : > { %v5952_v31 = vpop.eup %5951  ;;  %v580_v9 = vor.u32 %v579_v19, %v578_v55  ;;  %v586_v17 = vor.u32 %v585_v5, %v584_v58  ;;  %vm590_vm7 = vcmp.lt.s32.totalorder %v6714_v14, 1  ;;  %v583_v40 = vor.u32 %v582_v8, %v581_v43 }
  0xac   : > { %v5954_v53 = vpop.eup %5953  ;;  %v1718_v2 = vxor.u32 2147483648, %v5952_v31  ;;  %v6733_v20 = vshrl.u32 %v2367_v3, 30  ;;  %vm593_vm8 = vcmp.lt.s32.totalorder %v6714_v14, 4  ;;  %v589_v11 = vor.u32 %v588_v41, %v587_v24 }
  0xad   : > { %v1715_v0 = vxor.u32 2147483648, %v5954_v53  ;;  %vm591_vm13 = vcmp.lt.s32.totalorder %v6714_v14, 2  ;;  %vm592_vm0 = vcmp.lt.s32.totalorder %v6714_v14, 3  ;;  %v595_v1 = vsel %vm593_vm8, %v583_v40, 2102212464 }
  0xae   : > { %v1719_v63 = vsel %vm1717_vm6, %v1718_v2, %v5954_v53  ;;  %v2010_v47 = vsel %vm2008_vm15, %v1718_v2, %v5954_v53  ;;  %v2369_v13 = vshll.u32 %v6733_v20, 30  ;;  %v599_v23 = vsel %vm593_vm8, %v586_v17, 920167782 }
  0xaf   : > { %v1716_v21 = vsel %vm1714_vm1, %v5952_v31, %v1715_v0  ;;  %v2007_v25 = vsel %vm2005_vm10, %v5952_v31, %v1715_v0  ;;  %v598_v32 = vsel %vm590_vm7, %v577_v33, %v580_v9  ;;  %v594_v16 = vsel %vm590_vm7, %v574_v59, %v577_v33 }
  0xb0   : > { %v1720_v18 = vsel %vm1713_vm14, %v1716_v21, %v1719_v63  ;;  %v2011_v27 = vsel %vm2004_vm2, %v2007_v25, %v2010_v47  ;;  %v6756_v48 = vsub.s32 %v2366_v37, %v2369_v13  ;;  %v596_v36 = vsel %vm592_vm0, %v580_v9, %v595_v1 }
  0xb1   : > { %v1721_v45 = vsel %vm1710_vm4, nan, %v1720_v18  ;;  %v2012_v46 = vsel %vm1710_vm4, nan, %v2011_v27  ;;  %v600_v30 = vsel %vm592_vm0, %v583_v40, %v599_v23  ;;  %v603_v19 = vsel %vm593_vm8, %v589_v11, 1326507024 }
  0xb2   : > { %v1835_v60 = vrot.slane %v1721_v45, %v6201_v6  ;;  %v2125_v51 = vrot.slane %v2012_v46, %v6201_v6  ;;  %v1828_v57 = vcombine.high %v1721_v45, %v1721_v45  ;;  %v2118_v12 = vcombine.high %v2012_v46, %v2012_v46 }
  0xb3   : > { %v2372_v7 = vsub.s32 0, %v6756_v48  ;;  %v601_v29 = vsel %vm591_vm13, %v598_v32, %v600_v30  ;;  %v606_v58 = vshll.u32 %v566_v22, 8  ;;  %v597_v41 = vsel %vm591_vm13, %v594_v16, %v596_v36 }
  0xb4   : > { %v1843_v34 = vcombine.high %v1835_v60, %v1835_v60  ;;  %v2133_v15 = vcombine.high %v2125_v51, %v2125_v51  ;;  %v1842_v26 = vrot.slane %v1828_v57, %v6201_v6  ;;  %v2132_v55 = vrot.slane %v2118_v12, %v6201_v6 }
  0xb5   : > { %v5601_v38 = vmin.u32 %v2372_v7, %v6756_v48  ;;  %v602_v31 = vsel %vm590_vm7, %v580_v9, %v583_v40  ;;  %v1145_v3 = vand.u32 2139095040, %v6728_v10  ;;  %v604_v22 = vsel %vm592_vm0, %v586_v17, %v603_v19 }
  0xb6   : > { %v5779_v37 = vpack.c.bf16 %v1843_v34, %v1835_v60  ;;  %v5783_v43 = vpack.c.bf16 %v2133_v15, %v2125_v51  ;;  %v1844_v8 = vcombine.high %v1842_v26, %v1842_v26  ;;  %v2134_v5 = vcombine.high %v2132_v55, %v2132_v55  ;;  %v2780_v51 = vld [vmem:[#allocation2] sm:$0xff] }
  0xb7   : > { %v2374_v24 = vclz %v5601_v38  ;;  %v6783_v63 = vmul.u32.u64.low %v606_v58, %v601_v29  ;;  %v6784_v47 = vmul.u32.u64.high %v606_v58, %v601_v29, %v6783_v63  ;;  %v2362_v9 = vadd.s32 %v6694_v28, %v6700_v39 }
  0xb8   : > { %v1898_v59 = vrot.slane %v5779_v37, 7  ;;  %v2188_v33 = vrot.slane %v5783_v43, 6  ;;  %v5780_v53 = vpack.c.bf16 %v1844_v8, %v1842_v26  ;;  %v5784_v2 = vpack.c.bf16 %v2134_v5, %v2132_v55  ;;  %v6821_v43 = vld [vmem:[%s7837_s1] sm:$0xff]  }
  0xb9   : > { %v5602_v0 = vadd.s32 4294967294, %v2374_v24  ;;  %v605_v40 = vsel %vm591_vm13, %v602_v31, %v604_v22  ;;  %v1146_v18 = vshrl.u32 %v1145_v3, 23  ;;  %v613_v27 = vmul.u32 %v606_v58, %v597_v41 }
  0xba   : > { %1906 = vst [vmem:[#allocation2 + $0xa0] sm:$0x22] %v1898_v59  ;;  %2196 = vst [vmem:[#allocation2 + $0xa0] sm:$0x44] %v2188_v33  ;;  %v1899_v11 = vrot.slane %v5780_v53, 7  ;;  %v2189_v21 = vrot.slane %v5784_v2, 6  ;;  %v6791_v25 = vmul.u32.u64.low %v606_v58, %v605_v40  ;;  %v6792_v13 = vmul.u32.u64.high %v606_v58, %v605_v40, %v6791_v25 }
  0xbb   : > { %vm5603_vm3 = vcmp.lt.s32.totalorder %v5602_v0, 0  ;;  %v1142_v1 = vand.u32 2147483647, %v6728_v10  ;;  %v6796_v23 = vmul.f32 4.0, %v6324_v35  ;;  %v616_v14 = vadd.s32 1, %v6784_v47 }
  0xbc   : > { %1907 = vst [vmem:[#allocation2 + $0x70] sm:$0x22] %v1899_v11  ;;  %2197 = vst [vmem:[#allocation2 + $0x70] sm:$0x44] %v2189_v21  ;;  %v2377_v17 = vsel %vm5603_vm3, 0, %v5602_v0  ;;  %vm2914_vm11 = vcmask 261120   ;;  %vm615_vm10 = vc.u32 %v6792_v13, %v6783_v63  ;;  %vm2398_vm3 = vweird.f32 %v6421_v49 }
  0xbd   : > { %v2378_v45 = vsub.s32 32, %v2377_v17  ;;  %v2379_v28 = vshll.u32 %v6756_v48, %v2377_v17  ;;  %v2382_v39 = vsub.s32 4294967266, %v2377_v17  ;;  %vm6802_vm12 = vcmp.le.f32.partialorder %v2306_v61, 0.7853982  ;;  %v6837_v11 = vld [vmem:[#allocation2 + $0x90] sm:$0xff] }
  0xbe   : > { %v2392_v32 = vsub.s32 4, %v6733_v20  ;;  %v5552_v60 = vadd.s32 4294967169, %v1146_v18  ;;  %vm2308_vm9 = vcmp.lt.s32.totalorder %v6421_v49, 0  ;;  %v617_v48 = vsel %vm615_vm10, %v616_v14, %v6784_v47 }
  0xbf   : > { %v2380_v57 = vshrl.u32 %v2362_v9, %v2378_v45  ;;  %v2383_v12 = vadd.s32 127, %v2382_v39  ;;  %v1149_v7 = vand.u32 8388607, %v1142_v1  ;;  %v1725_v16 = vand.u32 2139095040, %v6796_v23 }
  0xc0   : > { %v1152_v61 = vadd.s32 1, %v5552_v60  ;;  %v618_v15 = vadd.s32 %v617_v48, %v613_v27  ;;  %v1722_v26 = vand.u32 2147483647, %v6796_v23  ;;  %v2393_v29 = vsel %vm2308_vm9, %v2392_v32, %v6733_v20  ;;  %v6861_v60 = vld [vmem:[%s7837_s1 + $0x8] sm:$0xff]  }
  0xc1   : > { %v2784_v36 = vld [vmem:[#allocation2 + $0xa0] sm:$0xff]  ;;  %v2381_v30 = vor.u32 %v2380_v57, %v2379_v28  ;;  %v2384_v34 = vshll.u32 %v2383_v12, 23  ;;  %v1726_v41 = vshrl.u32 %v1725_v16, 23  ;;  %v6825_v31 = vsel %vm6802_vm12, 0, %v2393_v29 }
  0xc2   : > { %v5623_v55 = vcombine.high %v2780_v51, %v2784_v36  ;;  %v5622_v38 = vcombine.low %v2780_v51, %v2784_v36  ;;  %vm1153_vm14 = vcmp.gt.s32.totalorder %v1152_v61, 0  ;;  %v619_v37 = vadd.s32 536870912, %v618_v15 }
  0xc3   : > { %v5918_v19 = vld [vmem:[#allocation2 + $0xc] ss:$104 sps:$4 sm:$0xff]   ;;  %v5920_v58 = vld [vmem:[#allocation2 + $0x8] ss:$104 sps:$4 sm:$0xff]   ;;  %v2385_v8 = vor.u32 4788187, %v2384_v34  ;;  %v2388_v5 = vcvt.s32.f32 %v2381_v30 }
  0xc4   : > { %2935 = vmatprep.subr.bf16.mxu0 %v5623_v55  ;;  %v1154_v24 = vsel %vm1153_vm14, %v1152_v61, 0  ;;  %2988 = vmatprep.subr.bf16.mxu1 %v5918_v19  ;;  %v6827_v20 = vshrl.u32 %v619_v37, 30  ;;  %v1150_v3 = vor.u32 8388608, %v1149_v7  ;;  %v6833_v22 = vand.u32 3, %v6825_v31 }
  0xc5   : > { %2936 = vmatpush1.bf16.msra.mxu0 %v5622_v38  ;;  %v1156_v59 = vand.u32 31, %v1154_v24  ;;  %2989 = vmatpush1.bf16.msra.mxu1 %v5920_v58  ;;  %v2386_v33 = vand.u32 2147483647, %v2385_v8  ;;  %v5576_v47 = vadd.s32 4294967169, %v1726_v41  ;;  %v6847_v25 = vand.u32 8388607, %v1722_v26 }
  0xc6   : > { %v621_v53 = vshll.u32 %v6827_v20, 30  ;;  %v6843_v40 = vshll.u32 %v1150_v3, 8  ;;  %v6854_v39 = vshrl.u32 %v1154_v24, 5  ;;  %v614_v61 = vadd.s32 %v6783_v63, %v6792_v13  ;;  %v6880_v63 = vld [vmem:[%s7845_s9] sm:$0xff]  ;;  %v6885_v13 = vld [vmem:[%s7845_s9 + $0x10] sm:$0xff]  ;;  %v6901_v8 = vld [vmem:[%s7845_s9 + $0x8] sm:$0xff] }
  0xc7   : > { %v1157_v2 = vsub.s32 32, %v1156_v59  ;;  %v2389_v0 = vmul.f32 %v2388_v5, %v2386_v33  ;;  %v1159_v9 = vshll.u32 %v6059_v42, %v1156_v59  ;;  %v1162_v27 = vshll.u32 %v6060_v44, %v1156_v59  ;;  %2806 = vperm.xlu1 %5900, %v6880_v63   ;;  %2816 = vperm.xlu0 %5899, %v6885_v13  }
  0xc8   : > { %5638 = vmatmul.mubr.msk.bf16.vlgmr.msra.gmra.mxu0 %vm2914_vm11, %v6821_v43  ;;  %5640 = vmatmul.mubr.msk.bf16.vlgmr.msra.gmra.mxu1 %vm2914_vm11, %v6821_v43  ;;  %v6840_v21 = vsub.s32 %v618_v15, %v621_v53  ;;  %v1165_v14 = vshll.u32 %v6061_v50, %v1156_v59  ;;  %v1168_v57 = vshll.u32 %v6062_v52, %v1156_v59  ;;  %v1732_v48 = vadd.s32 1, %v5576_v47  ;;  %v6925_v53 = vld [vmem:[%s7845_s9 + $0x18] sm:$0xff] }
  0xc9   : > { %2963 = vmatprep.mubr.bf16.mxu0 %v6837_v11  ;;  %v2390_v18 = vxor.u32 2147483648, %v2389_v0  ;;  %3016 = vmatprep.mubr.bf16.mxu1 %v6837_v11  ;;  %v1160_v17 = vshrl.u32 %v6060_v44, %v1157_v2  ;;  %v1163_v45 = vshrl.u32 %v6061_v50, %v1157_v2  ;;  %v1166_v32 = vshrl.u32 %v6062_v52, %v1157_v2 }
  0xca   : > { %v624_v28 = vsub.s32 0, %v6840_v21  ;;  %v1169_v12 = vshrl.u32 %v6063_v54, %v1157_v2  ;;  %v1730_v36 = vor.u32 8388608, %v6847_v25  ;;  %v1158_v30 = vshrl.u32 %v6059_v42, %v1157_v2 }
  0xcb   : > { %v2391_v51 = vsel %vm2308_vm9, %v2390_v18, %v2389_v0  ;;  %v1161_v34 = vor.u32 %v1160_v17, %v1159_v9  ;;  %v1164_v15 = vor.u32 %v1163_v45, %v1162_v27  ;;  %vm560_vm1 = vcmp.lt.s32.totalorder %v6324_v35, 0  ;;  %2811 = vperm.xlu1 %5900, %v6901_v8   ;;  %2821 = vperm.xlu0 %5899, %v6925_v53  }
  0xcc   : > { %v2394_v7 = vsel %vm6802_vm12, %v6421_v49, %v2391_v51  ;;  %v5529_v16 = vmin.u32 %v624_v28, %v6840_v21  ;;  %v1167_v38 = vor.u32 %v1166_v32, %v1165_v14  ;;  %vm1174_vm2 = vcmp.lt.s32.totalorder %v6854_v39, 1 }
  0xcd   : > { %5955 = vcosq.f32 %v2394_v7  ;;  %v1170_v46 = vor.u32 %v1169_v12, %v1168_v57  ;;  %v1171_v29 = vshll.u32 %v6063_v54, %v1156_v59  ;;  %v1172_v19 = vshrl.u32 %v6064_v62, %v1157_v2 }
  0xce   : > { %5957 = vsinq.f32 %v2394_v7  ;;  %v626_v55 = vclz %v5529_v16  ;;  %vm1733_vm15 = vcmp.gt.s32.totalorder %v1732_v48, 0  ;;  %v644_v37 = vsub.s32 4, %v6827_v20 }
  0xcf   : > { %vm1176_vm4 = vcmp.lt.s32.totalorder %v6854_v39, 3  ;;  %vm1177_vm5 = vcmp.lt.s32.totalorder %v6854_v39, 4  ;;  %vm6905_vm6 = vcmp.le.f32.partialorder %v558_v56, 0.7853982  ;;  %v1173_v24 = vor.u32 %v1172_v19, %v1171_v29 }
  0xd0   : > { %5639 = vmatmul.mubr.msk.bf16.gmra.mxu0 %vm2914_vm11, %v6861_v60  ;;  %5641 = vmatmul.mubr.msk.bf16.gmra.mxu1 %vm2914_vm11, %v6861_v60  ;;  %v5530_v58 = vadd.s32 4294967294, %v626_v55  ;;  %vm1175_vm7 = vcmp.lt.s32.totalorder %v6854_v39, 2  ;;  %v1179_v41 = vsel %vm1177_vm5, %v1167_v38, 2102212464  ;;  %v1182_v3 = vsel %vm1174_vm2, %v1161_v34, %v1164_v15 }
  0xd1   : > { %3059 = vmatprep.mubr.bf16.mxu0 %v6837_v11  ;;  %3112 = vmatprep.mubr.bf16.mxu1 %v6837_v11  ;;  %v1178_v56 = vsel %vm1174_vm2, %v1158_v30, %v1161_v34  ;;  %v1180_v59 = vsel %vm1176_vm4, %v1164_v15, %v1179_v41  ;;  %v1183_v33 = vsel %vm1177_vm5, %v1170_v46, 920167782  ;;  %vm2692_vm13 = vcmp.eq.s32.totalorder %v6833_v22, 0 }
  0xd2   : > { %vm5531_vm8 = vcmp.lt.s32.totalorder %v5530_v58, 0  ;;  %v1184_v0 = vsel %vm1176_vm4, %v1167_v38, %v1183_v33  ;;  %v1186_v47 = vsel %vm1174_vm2, %v1164_v15, %v1167_v38  ;;  %v1187_v9 = vsel %vm1177_vm5, %v1173_v24, 1326507024 }
  0xd3   : > { %v629_v2 = vsel %vm5531_vm8, 0, %v5530_v58  ;;  %vm2691_vm0 = vcmp.lt.s32.totalorder %v6833_v22, 2  ;;  %v1185_v45 = vsel %vm1175_vm7, %v1182_v3, %v1184_v0  ;;  %v1181_v28 = vsel %vm1175_vm7, %v1178_v56, %v1180_v59 }
  0xd4   : > { %v630_v18 = vsub.s32 32, %v629_v2  ;;  %v631_v17 = vshll.u32 %v6840_v21, %v629_v2  ;;  %v634_v27 = vsub.s32 4294967266, %v629_v2  ;;  %v1188_v14 = vsel %vm1176_vm4, %v1170_v46, %v1187_v9 }
  0xd5   : > { %v6945_v32 = vmul.u32.u64.low %v6843_v40, %v1185_v45  ;;  %v6946_v51 = vmul.u32.u64.high %v6843_v40, %v1185_v45, %v6945_v32  ;;  %v1189_v12 = vsel %vm1175_vm7, %v1186_v47, %v1188_v14  ;;  %v1734_v7 = vsel %vm1733_vm15, %v1732_v48, 0 }
  0xd6   : > { %v632_v21 = vshrl.u32 %v614_v61, %v630_v18  ;;  %v635_v57 = vadd.s32 127, %v634_v27  ;;  %v645_v16 = vsel %vm560_vm1, %v644_v37, %v6827_v20  ;;  %v1736_v15 = vand.u32 31, %v1734_v7  ;;  %v6962_v61 = vld [vmem:[%s6198_s30 + $0x8] sm:$0xff] }
  0xd7   : > { %v6957_v30 = vmul.u32.u64.low %v6843_v40, %v1189_v12  ;;  %v6958_v34 = vmul.u32.u64.high %v6843_v40, %v1189_v12, %v6957_v30  ;;  %vm2695_vm12 = vcmp.eq.s32.totalorder %v6833_v22, 2  ;;  %v391_v39 = vcombine.high %v6962_v61, %v6962_v61 }
  0xd8   : > { %v633_v55 = vor.u32 %v632_v21, %v631_v17  ;;  %v636_v38 = vshll.u32 %v635_v57, 23  ;;  %v1197_v48 = vmul.u32 %v6843_v40, %v1181_v28  ;;  %v1200_v46 = vadd.s32 1, %v6946_v51 }
  0xd9   : > { %v1737_v29 = vsub.s32 32, %v1736_v15  ;;  %v6970_v20 = vshll.u32 %v1730_v36, 8  ;;  %v647_v24 = vsel %vm6905_vm6, 0, %v645_v16  ;;  %v1739_v41 = vshll.u32 %v6059_v42, %v1736_v15 }
  0xda   : > { %v6972_v19 = vpop.eup %5955  ;;  %v637_v58 = vor.u32 4788187, %v636_v38  ;;  %v640_v37 = vcvt.s32.f32 %v633_v55  ;;  %vm1199_vm9 = vc.u32 %v6958_v34, %v6945_v32  ;;  %v1742_v25 = vshll.u32 %v6060_v44, %v1736_v15 }
  0xdb   : > { %v6977_v3 = vpop.eup %5957  ;;  %v2406_v40 = vxor.u32 2147483648, %v6972_v19  ;;  %v1745_v36 = vshll.u32 %v6061_v50, %v1736_v15  ;;  %v1201_v33 = vsel %vm1199_vm9, %v1200_v46, %v6946_v51  ;;  %v1740_v2 = vshrl.u32 %v6060_v44, %v1737_v29 }
  0xdc   : > { %v2403_v56 = vxor.u32 2147483648, %v6977_v3  ;;  %v638_v59 = vand.u32 2147483647, %v637_v58  ;;  %v1202_v47 = vadd.s32 %v1201_v33, %v1197_v48  ;;  %v1743_v9 = vshrl.u32 %v6061_v50, %v1737_v29 }
  0xdd   : > { %v2697_v0 = vsel %vm2695_vm12, %v2406_v40, %v6977_v3  ;;  %v1748_v18 = vshll.u32 %v6062_v52, %v1736_v15  ;;  %v1746_v44 = vshrl.u32 %v6062_v52, %v1737_v29  ;;  %v1749_v45 = vshrl.u32 %v6063_v54, %v1737_v29 }
  0xde   : > { %v2694_v17 = vsel %vm2692_vm13, %v6972_v19, %v2403_v56  ;;  %v641_v27 = vmul.f32 %v640_v37, %v638_v59  ;;  %v651_v14 = vadd.s32 3, %v647_v24  ;;  %v1203_v51 = vadd.s32 536870912, %v1202_v47 }
  0xdf   : > { %v2698_v28 = vsel %vm2691_vm0, %v2694_v17, %v2697_v0  ;;  %v1735_v21 = vshrl.u32 %v1734_v7, 5  ;;  %v1741_v12 = vor.u32 %v1740_v2, %v1739_v41  ;;  %v1751_v16 = vshll.u32 %v6063_v54, %v1736_v15 }
  0xe0   : > { %v2699_v50 = vsel %vm2398_vm3, nan, %v2698_v28  ;;  %v642_v57 = vxor.u32 2147483648, %v641_v27  ;;  %v7007_v38 = vshrl.u32 %v1203_v51, 30  ;;  %v1752_v52 = vshrl.u32 %v6064_v62, %v1737_v29 }
  0xe1   : > { %v2726_v30 = vrot.slane %v2699_v50, %v6201_v6  ;;  %v2719_v55 = vcombine.high %v2699_v50, %v2699_v50  ;;  %v1744_v48 = vor.u32 %v1743_v9, %v1742_v25  ;;  %v1747_v46 = vor.u32 %v1746_v44, %v1745_v36 }
  0xe2   : > { %v643_v22 = vsel %vm560_vm1, %v642_v57, %v641_v27  ;;  %v1750_v7 = vor.u32 %v1749_v45, %v1748_v18  ;;  %v1205_v15 = vshll.u32 %v7007_v38, 30  ;;  %v1753_v41 = vor.u32 %v1752_v52, %v1751_v16 }
  0xe3   : > { %v2734_v58 = vcombine.high %v2726_v30, %v2726_v30  ;;  %v2733_v37 = vrot.slane %v2719_v55, %v6201_v6  ;;  %v646_v54 = vsel %vm6905_vm6, %v6324_v35, %v643_v22  ;;  %vm1754_vm10 = vcmp.lt.s32.totalorder %v1735_v21, 1 }
  0xe4   : > { %5959 = vcosq.f32 %v646_v54  ;;  %vm1757_vm14 = vcmp.lt.s32.totalorder %v1735_v21, 4  ;;  %v7017_v33 = vsub.s32 %v1202_v47, %v1205_v15  ;;  %v7019_v25 = vand.u32 3, %v647_v24 }
  0xe5   : > { %v5793_v62 = vpack.c.bf16 %v2734_v58, %v2726_v30  ;;  %v2735_v59 = vcombine.high %v2733_v37, %v2733_v37  ;;  %5961 = vsinq.f32 %v646_v54  ;;  %v1738_v36 = vshrl.u32 %v6059_v42, %v1737_v29 }
  0xe6   : > { %vm1756_vm1 = vcmp.lt.s32.totalorder %v1735_v21, 3  ;;  %v2399_v2 = vadd.s32 3, %v6825_v31  ;;  %v7023_v0 = vand.u32 3, %v651_v14  ;;  %v1208_v9 = vsub.s32 0, %v7017_v33 }
  0xe7   : > { %2778 = vst [vmem:[#allocation2 + $0x58] sm:$0x11] %v5793_v62  ;;  %v5794_v5 = vpack.c.bf16 %v2735_v59, %v2733_v37  ;;  %v1759_v18 = vsel %vm1757_vm14, %v1747_v46, 2102212464  ;;  %vm1755_vm2 = vcmp.lt.s32.totalorder %v1735_v21, 2  ;;  %v1762_v17 = vsel %vm1754_vm10, %v1741_v12, %v1744_v48 }
  0xe8   : > { %v1763_v47 = vsel %vm1757_vm14, %v1750_v7, 920167782  ;;  %v405_v42 = vrot.slane %v391_v39, %v6201_v6  ;;  %v5553_v31 = vmin.u32 %v1208_v9, %v7017_v33  ;;  %v1766_v24 = vsel %vm1754_vm10, %v1744_v48, %v1747_v46 }
  0xe9   : > { %2779 = vst [vmem:[#allocation2 + $0xd8] sm:$0x11] %v5794_v5  ;;  %v1764_v29 = vsel %vm1756_vm1, %v1747_v46, %v1763_v47  ;;  %v1767_v27 = vsel %vm1757_vm14, %v1753_v41, 1326507024  ;;  %vm944_vm15 = vcmp.eq.s32.totalorder %v7019_v25, 0  ;;  %vm947_vm4 = vcmp.eq.s32.totalorder %v7019_v25, 2 }
  0xea   : > { %v1758_v44 = vsel %vm1754_vm10, %v1738_v36, %v1741_v12  ;;  %v1760_v45 = vsel %vm1756_vm1, %v1744_v48, %v1759_v18  ;;  %v2400_v28 = vand.u32 3, %v2399_v2  ;;  %vm653_vm5 = vcmp.lt.s32.totalorder %v7023_v0, 2 }
  0xeb   : > { %vm654_vm6 = vcmp.eq.s32.totalorder %v7023_v0, 0  ;;  %vm943_vm7 = vcmp.lt.s32.totalorder %v7019_v25, 2  ;;  %v1210_v61 = vclz %v5553_v31  ;;  %v1765_v39 = vsel %vm1755_vm2, %v1762_v17, %v1764_v29 }
  0xec   : > { %v1768_v14 = vsel %vm1756_vm1, %v1750_v7, %v1767_v27  ;;  %vm650_vm8 = vweird.f32 %v6324_v35  ;;  %vm657_vm13 = vcmp.eq.s32.totalorder %v7023_v0, 2  ;;  %v1198_v51 = vadd.s32 %v6945_v32, %v6958_v34 }
  0xed   : > { %v1769_v50 = vsel %vm1755_vm2, %v1766_v24, %v1768_v14  ;;  %v407_v57 = vcombine.high %v405_v42, %v405_v42  ;;  %v5554_v12 = vadd.s32 4294967294, %v1210_v61  ;;  %v1761_v16 = vsel %vm1755_vm2, %v1758_v44, %v1760_v45 }
  0xee   : > { %v7053_v30 = vmul.u32.u64.low %v6970_v20, %v1769_v50  ;;  %v7054_v55 = vmul.u32.u64.high %v6970_v20, %v1769_v50, %v7053_v30  ;;  %v2790_v52 = vld [vmem:[#allocation2 + $0x58] sm:$0xff]  ;;  %v7057_v22 = vmul.u32.u64.low %v6970_v20, %v1765_v39  ;;  %v7058_v48 = vmul.u32.u64.high %v6970_v20, %v1765_v39, %v7057_v22 }
  0xef   : > { %vm2402_vm0 = vcmp.eq.s32.totalorder %v2400_v28, 0  ;;  %vm2405_vm12 = vcmp.eq.s32.totalorder %v2400_v28, 2  ;;  %v5634_v32 = vcombine.low %v2790_v52, %v6837_v11  ;;  %v5635_v34 = vcombine.high %v2790_v52, %v6837_v11 }
  0xf0   : > { %vm5555_vm9 = vcmp.lt.s32.totalorder %v5554_v12, 0  ;;  %vm2401_vm10 = vcmp.lt.s32.totalorder %v2400_v28, 2  ;;  %v2791_v21 = vld [vmem:[#allocation2 + $0xd8] sm:$0xff]  ;;  %v2404_v7 = vsel %vm2402_vm0, %v6972_v19, %v2403_v56  ;;  %v2407_v58 = vsel %vm2405_vm12, %v2406_v40, %v6977_v3 }
  0xf1   : > { %v1213_v46 = vsel %vm5555_vm9, 0, %v5554_v12  ;;  %v5762_v37 = vpack.c.bf16 %v407_v57, %v405_v42  ;;  %v5960_v54 = vpop.eup %5959  ;;  %3039 = vmatprep.subr.bf16.mxu0 %v5635_v34  ;;  %v5636_v15 = vcombine.low %v2791_v21, %v6837_v11  ;;  %v5637_v41 = vcombine.high %v2791_v21, %v6837_v11 }
  0xf2   : > { %v1214_v62 = vsub.s32 32, %v1213_v46  ;;  %v1215_v59 = vshll.u32 %v7017_v33, %v1213_v46  ;;  %v5962_v36 = vpop.eup %5961  ;;  %3040 = vmatpush1.bf16.msra.mxu0 %v5634_v32  ;;  %v658_v2 = vxor.u32 2147483648, %v5960_v54  ;;  %v1218_v5 = vsub.s32 4294967266, %v1213_v46 }
  0xf3   : > { %v1777_v56 = vmul.u32 %v6970_v20, %v1761_v16  ;;  %vm1779_vm14 = vc.u32 %v7054_v55, %v7057_v22  ;;  %451 = vst [vmem:[#allocation2 + $0x38] sm:$0x11] %v5762_v37  ;;  %3092 = vmatprep.subr.bf16.mxu1 %v5637_v41  ;;  %v655_v19 = vxor.u32 2147483648, %v5962_v36  ;;  %v1780_v40 = vadd.s32 1, %v7058_v48 }
  0xf4   : > { %v1216_v3 = vshrl.u32 %v1198_v51, %v1214_v62  ;;  %v2408_v9 = vsel %vm2401_vm10, %v2404_v7, %v2407_v58  ;;  %3093 = vmatpush1.bf16.msra.mxu1 %v5636_v15  ;;  %v659_v33 = vsel %vm657_vm13, %v658_v2, %v5962_v36  ;;  %v949_v18 = vsel %vm947_vm4, %v658_v2, %v5962_v36 }
  0xf5   : > { %v1219_v17 = vadd.s32 127, %v1218_v5  ;;  %v2409_v20 = vsel %vm2398_vm3, nan, %v2408_v9  ;;  %v656_v47 = vsel %vm654_vm6, %v5960_v54, %v655_v19  ;;  %v946_v42 = vsel %vm944_vm15, %v5960_v54, %v655_v19 }
  0xf6   : > { %vm1144_vm1 = vcmp.lt.s32.totalorder %v6728_v10, 0  ;;  %v1217_v31 = vor.u32 %v1216_v3, %v1215_v59  ;;  %v1781_v29 = vsel %vm1779_vm14, %v1780_v40, %v7058_v48  ;;  %v660_v24 = vsel %vm653_vm5, %v656_v47, %v659_v33 }
  0xf7   : > { %v950_v49 = vsel %vm943_vm7, %v946_v42, %v949_v18  ;;  %vm7098_vm3 = vcmp.le.f32.partialorder %v1142_v1, 0.7853982  ;;  %v1220_v44 = vshll.u32 %v1219_v17, 23  ;;  %v1782_v45 = vadd.s32 %v1781_v29, %v1777_v56 }
  0xf8   : > { %v661_v28 = vsel %vm650_vm8, nan, %v660_v24  ;;  %v951_v61 = vsel %vm650_vm8, nan, %v950_v49  ;;  %v1224_v39 = vcvt.s32.f32 %v1217_v31  ;;  %v2436_v0 = vrot.slane %v2409_v20, %v6201_v6 }
  0xf9   : > { %v688_v25 = vrot.slane %v661_v28, %v6201_v6  ;;  %v978_v14 = vrot.slane %v951_v61, %v6201_v6  ;;  %v1221_v51 = vor.u32 4788187, %v1220_v44  ;;  %v1783_v1 = vadd.s32 536870912, %v1782_v45 }
  0xfa   : > { %v2444_v50 = vcombine.high %v2436_v0, %v2436_v0  ;;  %v681_v57 = vcombine.high %v661_v28, %v661_v28  ;;  %v971_v12 = vcombine.high %v951_v61, %v951_v61  ;;  %v2429_v16 = vcombine.high %v2409_v20, %v2409_v20 }
  0xfb   : > { %v696_v30 = vcombine.high %v688_v25, %v688_v25  ;;  %v986_v52 = vcombine.high %v978_v14, %v978_v14  ;;  %v1222_v48 = vand.u32 2147483647, %v1221_v51  ;;  %v7109_v32 = vshrl.u32 %v1783_v1, 30 }
  0xfc   : > { %v5789_v35 = vpack.c.bf16 %v2444_v50, %v2436_v0  ;;  %v695_v34 = vrot.slane %v681_v57, %v6201_v6  ;;  %v985_v21 = vrot.slane %v971_v12, %v6201_v6  ;;  %v2443_v46 = vrot.slane %v2429_v16, %v6201_v6 }
  0xfd   : > { %v5765_v7 = vpack.c.bf16 %v696_v30, %v688_v25  ;;  %v5769_v58 = vpack.c.bf16 %v986_v52, %v978_v14  ;;  %v1225_v37 = vmul.f32 %v1224_v39, %v1222_v48  ;;  %v1785_v54 = vshll.u32 %v7109_v32, 30 }
  0xfe   : > { %v1228_v15 = vsub.s32 4, %v7007_v38  ;;  %v2484_v41 = vrot.slane %v5789_v35, 5  ;;  %v697_v62 = vcombine.high %v695_v34, %v695_v34  ;;  %v987_v59 = vcombine.high %v985_v21, %v985_v21 }
  0xff   : > { %v736_v36 = vrot.slane %v5765_v7, 7  ;;  %v1026_v2 = vrot.slane %v5769_v58, 6  ;;  %v1226_v5 = vxor.u32 2147483648, %v1225_v37  ;;  %v1786_v56 = vsub.s32 %v1782_v45, %v1785_v54 }
 0x100   : > { %2492 = vst [vmem:[#allocation2 + $0xc8] sm:$0x88] %v2484_v41  ;;  %v5766_v19 = vpack.c.bf16 %v697_v62, %v695_v34  ;;  %v5770_v3 = vpack.c.bf16 %v987_v59, %v985_v21  ;;  %v2445_v40 = vcombine.high %v2443_v46, %v2443_v46  ;;  %v1229_v18 = vsel %vm1144_vm1, %v1228_v15, %v7007_v38 }
 0x101   : > { %744 = vst [vmem:[#allocation2 + $0x68] sm:$0x22] %v736_v36  ;;  %1034 = vst [vmem:[#allocation2 + $0x68] sm:$0x44] %v1026_v2  ;;  %v1227_v9 = vsel %vm1144_vm1, %v1226_v5, %v1225_v37  ;;  %v1788_v33 = vsub.s32 0, %v1786_v56  ;;  %v1231_v29 = vsel %vm7098_vm3, 0, %v1229_v18  ;;  %v1778_v45 = vadd.s32 %v7057_v22, %v7054_v55 }
 0x102   : > { %v1230_v17 = vsel %vm7098_vm3, %v6728_v10, %v1227_v9  ;;  %v737_v20 = vrot.slane %v5766_v19, 7  ;;  %v1027_v42 = vrot.slane %v5770_v3, 6  ;;  %v5790_v31 = vpack.c.bf16 %v2445_v40, %v2443_v46 }
 0x103   : > { %5963 = vcosq.f32 %v1230_v17  ;;  %v5577_v47 = vmin.u32 %v1788_v33, %v1786_v56  ;;  %v1235_v38 = vadd.s32 3, %v1231_v29  ;;  %v1526_v14 = vand.u32 3, %v1231_v29 }
 0x104   : > { %5965 = vsinq.f32 %v1230_v17  ;;  %745 = vst [vmem:[#allocation2 + $0x38] sm:$0x22] %v737_v20  ;;  %1035 = vst [vmem:[#allocation2 + $0x38] sm:$0x44] %v1027_v42  ;;  %v2485_v49 = vrot.slane %v5790_v31, 5  ;;  %vm1234_vm13 = vweird.f32 %v6728_v10  ;;  %vm1724_vm12 = vcmp.lt.s32.totalorder %v6796_v23, 0 }
 0x105   : > { %v1790_v24 = vclz %v5577_v47  ;;  %v1236_v25 = vand.u32 3, %v1235_v38  ;;  %vm1528_vm4 = vcmp.eq.s32.totalorder %v1526_v14, 0  ;;  %vm1531_vm5 = vcmp.eq.s32.totalorder %v1526_v14, 2 }
 0x106   : > { %2493 = vst [vmem:[#allocation2 + $0xb8] sm:$0x88] %v2485_v49  ;;  %vm1527_vm8 = vcmp.lt.s32.totalorder %v1526_v14, 2  ;;  %vm7131_vm0 = vcmp.le.f32.partialorder %v1722_v26, 0.7853982  ;;  %v1808_v10 = vsub.s32 4, %v7109_v32 }
 0x107   : > { %v5578_v44 = vadd.s32 4294967294, %v1790_v24  ;;  %vm1241_vm15 = vcmp.eq.s32.totalorder %v1236_v25, 2  ;;  %vm1238_vm6 = vcmp.eq.s32.totalorder %v1236_v25, 0  ;;  %vm1237_vm7 = vcmp.lt.s32.totalorder %v1236_v25, 2 }
 0x108   : > { %v1809_v3 = vsel %vm1724_vm12, %v1808_v10, %v7109_v32 }
 0x109   : > { %vm5579_vm2 = vcmp.lt.s32.totalorder %v5578_v44, 0  ;;  %v1811_v42 = vsel %vm7131_vm0, 0, %v1809_v3 }
 0x10a   : > { %v1793_v28 = vsel %vm5579_vm2, 0, %v5578_v44  ;;  %v1815_v24 = vadd.s32 3, %v1811_v42  ;;  %v2106_v44 = vand.u32 3, %v1811_v42 }
 0x10b   : > { %v1794_v61 = vsub.s32 32, %v1793_v28  ;;  %v1795_v39 = vshll.u32 %v1786_v56, %v1793_v28  ;;  %v1798_v0 = vsub.s32 4294967266, %v1793_v28 }
 0x10c   : > { %v1816_v49 = vand.u32 3, %v1815_v24  ;;  %vm2111_vm10 = vcmp.eq.s32.totalorder %v2106_v44, 2  ;;  %vm2108_vm1 = vcmp.eq.s32.totalorder %v2106_v44, 0  ;;  %vm2107_vm2 = vcmp.lt.s32.totalorder %v2106_v44, 2 }
 0x10d   : > { %v1796_v51 = vshrl.u32 %v1778_v45, %v1794_v61  ;;  %v1799_v1 = vadd.s32 127, %v1798_v0 }
 0x10e   : > { %vm1821_vm9 = vcmp.eq.s32.totalorder %v1816_v49, 2  ;;  %vm1818_vm14 = vcmp.eq.s32.totalorder %v1816_v49, 0  ;;  %vm1817_vm3 = vcmp.lt.s32.totalorder %v1816_v49, 2 }
 0x10f   : > { %v1797_v27 = vor.u32 %v1796_v51, %v1795_v39  ;;  %v1800_v50 = vshll.u32 %v1799_v1, 23 }
 0x110   : > { %v5964_v57 = vpop.eup %5963 }
 0x111   : > { %v5966_v12 = vpop.eup %5965  ;;  %v1242_v16 = vxor.u32 2147483648, %v5964_v57  ;;  %v1801_v30 = vor.u32 4788187, %v1800_v50  ;;  %v1804_v55 = vcvt.s32.f32 %v1797_v27 }
 0x112   : > { %v1239_v22 = vxor.u32 2147483648, %v5966_v12 }
 0x113   : > { %v1243_v52 = vsel %vm1241_vm15, %v1242_v16, %v5966_v12  ;;  %v1533_v48 = vsel %vm1531_vm5, %v1242_v16, %v5966_v12  ;;  %v1802_v35 = vand.u32 2147483647, %v1801_v30  ;;  %vm1814_vm15 = vweird.f32 %v6796_v23 }
 0x114   : > { %v1240_v34 = vsel %vm1238_vm6, %v5964_v57, %v1239_v22  ;;  %v1530_v21 = vsel %vm1528_vm4, %v5964_v57, %v1239_v22  ;;  %vm4395_vm4 = vcmask 523264  }
 0x115   : > { %v1244_v46 = vsel %vm1237_vm7, %v1240_v34, %v1243_v52  ;;  %v1534_v7 = vsel %vm1527_vm8, %v1530_v21, %v1533_v48  ;;  %v1805_v37 = vmul.f32 %v1804_v55, %v1802_v35 }
 0x116   : > { %v1245_v54 = vsel %vm1234_vm13, nan, %v1244_v46  ;;  %v1535_v15 = vsel %vm1234_vm13, nan, %v1534_v7 }
 0x117   : > { %v1272_v41 = vrot.slane %v1245_v54, %v6201_v6  ;;  %v1562_v62 = vrot.slane %v1535_v15, %v6201_v6  ;;  %v1806_v59 = vxor.u32 2147483648, %v1805_v37  ;;  %v1265_v36 = vcombine.high %v1245_v54, %v1245_v54 }
 0x118   : > { %v1555_v2 = vcombine.high %v1535_v15, %v1535_v15 }
 0x119   : > { %v1280_v5 = vcombine.high %v1272_v41, %v1272_v41  ;;  %v1570_v56 = vcombine.high %v1562_v62, %v1562_v62  ;;  %v1807_v26 = vsel %vm1724_vm12, %v1806_v59, %v1805_v37  ;;  %v1279_v19 = vrot.slane %v1265_v36, %v6201_v6 }
 0x11a   : > { %v1810_v40 = vsel %vm7131_vm0, %v6796_v23, %v1807_v26  ;;  %v1569_v9 = vrot.slane %v1555_v2, %v6201_v6 }
 0x11b   : > { %v5773_v33 = vpack.c.bf16 %v1280_v5, %v1272_v41  ;;  %v5777_v18 = vpack.c.bf16 %v1570_v56, %v1562_v62  ;;  %5967 = vcosq.f32 %v1810_v40  ;;  %v1281_v17 = vcombine.high %v1279_v19, %v1279_v19 }
 0x11c   : > { %5969 = vsinq.f32 %v1810_v40  ;;  %v1571_v20 = vcombine.high %v1569_v9, %v1569_v9 }
 0x11d   : > { %v1320_v47 = vrot.slane %v5773_v33, 5  ;;  %1614 = vst [vmem:[#allocation2 + $0xc8] sm:$0x11] %v5777_v18  ;;  %v5774_v31 = vpack.c.bf16 %v1281_v17, %v1279_v19 }
 0x11e   : > { %v5778_v29 = vpack.c.bf16 %v1571_v20, %v1569_v9 }
 0x11f   : > { %1328 = vst [vmem:[#allocation2 + $0x68] sm:$0x88] %v1320_v47  ;;  %v1321_v32 = vrot.slane %v5774_v31, 5 }
 0x120   : > { %1615 = vst [vmem:[#allocation2 + $0xb8] sm:$0x11] %v5778_v29 }
 0x121   : > { %1329 = vst [vmem:[#allocation2 + $0x38] sm:$0x88] %v1321_v32 }
 0x126   : > { %v2782_v10 = vld [vmem:[#allocation2 + $0x68] sm:$0xff] }
 0x128   : > { %v5968_v38 = vpop.eup %5967  ;;  %v2783_v62 = vld [vmem:[#allocation2 + $0x38] sm:$0xff] }
 0x129   : > { %v5970_v45 = vpop.eup %5969  ;;  %v1822_v28 = vxor.u32 2147483648, %v5968_v38 }
 0x12a   : > { %v1819_v61 = vxor.u32 2147483648, %v5970_v45 }
 0x12b   : > { %v1823_v39 = vsel %vm1821_vm9, %v1822_v28, %v5970_v45  ;;  %v2113_v0 = vsel %vm2111_vm10, %v1822_v28, %v5970_v45 }
 0x12c   : > { %v1820_v25 = vsel %vm1818_vm14, %v5968_v38, %v1819_v61  ;;  %v2110_v14 = vsel %vm2108_vm1, %v5968_v38, %v1819_v61 }
 0x12d   : > { %v1824_v51 = vsel %vm1817_vm3, %v1820_v25, %v1823_v39  ;;  %v2114_v1 = vsel %vm2107_vm2, %v2110_v14, %v2113_v0 }
 0x12e   : > { %v1825_v27 = vsel %vm1814_vm15, nan, %v1824_v51  ;;  %v2115_v50 = vsel %vm1814_vm15, nan, %v2114_v1 }
 0x12f   : > { %v1852_v57 = vrot.slane %v1825_v27, %v6201_v6  ;;  %v2142_v12 = vrot.slane %v2115_v50, %v6201_v6  ;;  %v1845_v16 = vcombine.high %v1825_v27, %v1825_v27  ;;  %v2135_v30 = vcombine.high %v2115_v50, %v2115_v50 }
 0x131   : > { %v1860_v55 = vcombine.high %v1852_v57, %v1852_v57  ;;  %v2150_v22 = vcombine.high %v2142_v12, %v2142_v12  ;;  %v1859_v52 = vrot.slane %v1845_v16, %v6201_v6  ;;  %v2149_v23 = vrot.slane %v2135_v30, %v6201_v6 }
 0x133   : > { %v5781_v48 = vpack.c.bf16 %v1860_v55, %v1852_v57  ;;  %v5785_v35 = vpack.c.bf16 %v2150_v22, %v2142_v12  ;;  %v1861_v34 = vcombine.high %v1859_v52, %v1859_v52  ;;  %v2151_v21 = vcombine.high %v2149_v23, %v2149_v23 }
 0x135   : > { %v1900_v46 = vrot.slane %v5781_v48, 7  ;;  %v2190_v7 = vrot.slane %v5785_v35, 6  ;;  %v5782_v58 = vpack.c.bf16 %v1861_v34, %v1859_v52  ;;  %v5786_v37 = vpack.c.bf16 %v2151_v21, %v2149_v23 }
 0x137   : > { %1908 = vst [vmem:[#allocation2 + $0xc8] sm:$0x22] %v1900_v46  ;;  %2198 = vst [vmem:[#allocation2 + $0xc8] sm:$0x44] %v2190_v7  ;;  %v1901_v54 = vrot.slane %v5782_v58, 7  ;;  %v2191_v15 = vrot.slane %v5786_v37, 6 }
 0x139   : > { %1909 = vst [vmem:[#allocation2 + $0xb8] sm:$0x22] %v1901_v54  ;;  %2199 = vst [vmem:[#allocation2 + $0xb8] sm:$0x44] %v2191_v15 }
 0x13e   : > { %v2786_v41 = vld [vmem:[#allocation2 + $0xc8] sm:$0xff] }
 0x13f   : > { %v5626_v59 = vcombine.low %v2782_v10, %v2786_v41  ;;  %v5627_v36 = vcombine.high %v2782_v10, %v2786_v41 }
 0x140   : > { %v2787_v6 = vld [vmem:[#allocation2 + $0xb8] sm:$0xff] }
 0x141   : > { %3041 = vmatprep.subr.bf16.mxu0 %v5627_v36  ;;  %v5628_v2 = vcombine.low %v2783_v62, %v2787_v6  ;;  %v5629_v5 = vcombine.high %v2783_v62, %v2787_v6 }
 0x142   : > { %3042 = vmatpush1.bf16.msra.mxu0 %v5626_v59  ;;  %v7164_v9 = vpop.permute.xlu0 %2816  ;;  %v7166_v33 = vpop.permute.xlu1 %2806 }
 0x143   : > { %3094 = vmatprep.subr.bf16.mxu1 %v5629_v5 }
 0x144   : > { %3095 = vmatpush1.bf16.msra.mxu1 %v5628_v2 }
 0x145   : > { %5642 = vmatmul.mubr.msk.bf16.vlgmr.msra.gmra.mxu0 %vm2914_vm11, %v6821_v43 }
 0x146   : > { %3069 = vmatprep.mubr.bf16.mxu0 %v6837_v11  ;;  %v7168_v31 = vpop.permute.xlu0 %2821  ;;  %v7170_v29 = vpop.permute.xlu1 %2811 }
 0x147   : > { %5644 = vmatmul.mubr.msk.bf16.vlgmr.msra.gmra.mxu1 %vm2914_vm11, %v6821_v43 }
 0x148   : > { %3122 = vmatprep.mubr.bf16.mxu1 %v6837_v11 }
 0x14d   : > { %5643 = vmatmul.mubr.msk.bf16.gmra.mxu0 %vm2914_vm11, %v6861_v60 }
 0x14e   : > { %3249 = vmatprep.mubr.bf16.mxu0 %v6837_v11 }
 0x14f   : > { %5645 = vmatmul.mubr.msk.bf16.gmra.mxu1 %vm2914_vm11, %v6861_v60 }
 0x150   : > { %3302 = vmatprep.mubr.bf16.mxu1 %v6837_v11 }
 0x188   : > { %v2955_v56 = vpop.f32.mrf.mxu0  ;;  %v3008_v26 = vpop.f32.mrf.mxu1 }
 0x189   : > { %v2956_v24 = vadd.f32 %v2955_v56, %v7166_v33  ;;  %v3009_v7 = vadd.f32 %v3008_v26, %v7166_v33 }
 0x18a   : > { %v2957_v19 = vpop.f32.mrf.mxu0  ;;  %v3010_v3 = vpop.f32.mrf.mxu1 }
 0x18b   : > { %v2958_v14 = vadd.f32 %v2957_v19, %v7166_v33  ;;  %v3011_v51 = vadd.f32 %v3010_v3, %v7166_v33  ;;  %v3133_v6 = vmax.f32 %v2956_v24, 0.0  ;;  %v3135_v5 = vmax.f32 %v3009_v7, 0.0  ;;  %v7191_v19 = vld [vmem:[%s7838_s2] sm:$0xff]   ;;  %v7202_v3 = vld [vmem:[%s7838_s2 + $0x8] sm:$0xff]  }
 0x18c   : > { %v2959_v40 = vpop.f32.mrf.mxu0  ;;  %v3012_v43 = vpop.f32.mrf.mxu1 }
 0x18d   : > { %v2960_v57 = vadd.f32 %v2959_v40, %v7170_v29  ;;  %v3013_v12 = vadd.f32 %v3012_v43, %v7170_v29  ;;  %v3134_v46 = vmax.f32 %v2958_v14, 0.0  ;;  %v3136_v15 = vmax.f32 %v3011_v51, 0.0 }
 0x18e   : > { %v2961_v18 = vpop.f32.mrf.mxu0  ;;  %v3014_v17 = vpop.f32.mrf.mxu1  ;;  %v6065_v40 = vmov 1  }
 0x18f   : > { %v2962_v49 = vadd.f32 %v2961_v18, %v7170_v29  ;;  %v3015_v61 = vadd.f32 %v3014_v17, %v7170_v29  ;;  %v3141_v54 = vmax.f32 %v2960_v57, 0.0  ;;  %v3143_v59 = vmax.f32 %v3013_v12, 0.0  ;;  %5902 = vset.pattern.permute.xlu1 %v6065_v40  ;;  %5901 = vset.pattern.permute.xlu0 %v6065_v40 }
 0x190   : > { %v2965_v20 = vpop.f32.mrf.mxu0  ;;  %v3018_v47 = vpop.f32.mrf.mxu1  ;;  %3198 = vperm.xlu1 %5902, %v6925_v53   ;;  %3194 = vperm.xlu0 %5901, %v6885_v13  }
 0x191   : > { %v2966_v28 = vadd.f32 %v2965_v20, %v7164_v9  ;;  %v3019_v1 = vadd.f32 %v3018_v47, %v7164_v9  ;;  %v3142_v55 = vmax.f32 %v2962_v49, 0.0  ;;  %v3144_v35 = vmax.f32 %v3015_v61, 0.0 }
 0x192   : > { %v2967_v42 = vpop.f32.mrf.mxu0  ;;  %v3020_v60 = vpop.f32.mrf.mxu1  ;;  %v3165_v56 = vpack.c.bf16 %v3141_v54, %v3133_v6  ;;  %v3167_v26 = vpack.c.bf16 %v3143_v59, %v3135_v5 }
 0x193   : > { %v2968_v44 = vadd.f32 %v2967_v42, %v7164_v9  ;;  %v3021_v39 = vadd.f32 %v3020_v60, %v7164_v9  ;;  %v3149_v48 = vmax.f32 %v2966_v28, 0.0  ;;  %v3151_v58 = vmax.f32 %v3019_v1, 0.0 }
 0x194   : > { %v2969_v32 = vpop.f32.mrf.mxu0  ;;  %v3022_v45 = vpop.f32.mrf.mxu1  ;;  %v3166_v62 = vpack.c.bf16 %v3142_v55, %v3134_v46  ;;  %v3168_v2 = vpack.c.bf16 %v3144_v35, %v3136_v15  ;;  %3186 = vperm.xlu1 %5902, %v6880_v63   ;;  %3190 = vperm.xlu0 %5901, %v6901_v8  }
 0x195   : > { %v2970_v38 = vadd.f32 %v2969_v32, %v7168_v31  ;;  %v3023_v25 = vadd.f32 %v3022_v45, %v7168_v31  ;;  %v3150_v22 = vmax.f32 %v2968_v44, 0.0  ;;  %v3152_v34 = vmax.f32 %v3021_v39, 0.0 }
 0x196   : > { %v2971_v0 = vpop.f32.mrf.mxu0  ;;  %v3024_v50 = vpop.f32.mrf.mxu1 }
 0x197   : > { %v2972_v27 = vadd.f32 %v2971_v0, %v7168_v31  ;;  %v3157_v16 = vmax.f32 %v2970_v38, 0.0  ;;  %v3025_v30 = vadd.f32 %v3024_v50, %v7168_v31  ;;  %v3159_v23 = vmax.f32 %v3023_v25, 0.0 }
 0x199   : > { %v3158_v52 = vmax.f32 %v2972_v27, 0.0  ;;  %v3160_v21 = vmax.f32 %v3025_v30, 0.0  ;;  %v3173_v10 = vpack.c.bf16 %v3157_v16, %v3149_v48  ;;  %v3175_v36 = vpack.c.bf16 %v3159_v23, %v3151_v58 }
 0x19b   : > { %v3174_v37 = vpack.c.bf16 %v3158_v52, %v3150_v22  ;;  %v3176_v41 = vpack.c.bf16 %v3160_v21, %v3152_v34 }
 0x19d   : > { %3229 = vmatprep.subr.bf16.mxu0 %v3174_v37  ;;  %3282 = vmatprep.subr.bf16.mxu1 %v3176_v41 }
 0x19e   : > { %3230 = vmatpush1.bf16.msra.mxu0 %v3173_v10  ;;  %3283 = vmatpush1.bf16.msra.mxu1 %v3175_v36 }
 0x19f   : > { %3231 = vmatprep.subr.bf16.mxu0 %v3166_v62  ;;  %3284 = vmatprep.subr.bf16.mxu1 %v3168_v2 }
 0x1a2   : > { %3232 = vmatpush1.bf16.msra.mxu0 %v3165_v56  ;;  %3285 = vmatpush1.bf16.msra.mxu1 %v3167_v26 }
 0x1a5   : > { %5648 = vmatmul.mubr.msk.bf16.vlgmr.msra.gmra.mxu0 %vm2914_vm11, %v7191_v19  ;;  %5650 = vmatmul.mubr.msk.bf16.vlgmr.msra.gmra.mxu1 %vm2914_vm11, %v7191_v19 }
 0x1a6   : > { %3259 = vmatprep.mubr.bf16.mxu0 %v6837_v11  ;;  %3312 = vmatprep.mubr.bf16.mxu1 %v6837_v11 }
 0x1ad   : > { %5649 = vmatmul.mubr.msk.bf16.gmra.mxu0 %vm2914_vm11, %v7202_v3  ;;  %5651 = vmatmul.mubr.msk.bf16.gmra.mxu1 %vm2914_vm11, %v7202_v3 }
 0x1ae   : > { %3355 = vmatprep.mubr.bf16.mxu0 %v6837_v11  ;;  %3408 = vmatprep.mubr.bf16.mxu1 %v6837_v11 }
 0x205   : > { %v3061_v43 = vpop.f32.mrf.mxu0 }
 0x206   : > { %v3062_v8 = vadd.f32 %v3061_v43, %v7166_v33 }
 0x207   : > { %v3063_v18 = vpop.f32.mrf.mxu0  ;;  %v3114_v17 = vpop.f32.mrf.mxu1 }
 0x208   : > { %v3064_v45 = vadd.f32 %v3063_v18, %v7166_v33  ;;  %v3115_v58 = vadd.f32 %v3114_v17, %v7166_v33  ;;  %v3137_v62 = vmax.f32 %v3062_v8, 0.0 }
 0x209   : > { %v3065_v20 = vpop.f32.mrf.mxu0  ;;  %v3116_v47 = vpop.f32.mrf.mxu1 }
 0x20a   : > { %v3066_v1 = vadd.f32 %v3065_v20, %v7170_v29  ;;  %v3117_v27 = vadd.f32 %v3116_v47, %v7166_v33  ;;  %v3138_v52 = vmax.f32 %v3064_v45, 0.0  ;;  %v3139_v36 = vmax.f32 %v3115_v58, 0.0  ;;  %v7232_v33 = vld [vmem:[#allocation2 + $0x90] sm:$0xff] }
 0x20b   : > { %v3067_v42 = vpop.f32.mrf.mxu0  ;;  %v3118_v60 = vpop.f32.mrf.mxu1 }
 0x20c   : > { %v3068_v38 = vadd.f32 %v3067_v42, %v7170_v29  ;;  %v3119_v23 = vadd.f32 %v3118_v60, %v7170_v29  ;;  %v3145_v37 = vmax.f32 %v3066_v1, 0.0  ;;  %v3140_v15 = vmax.f32 %v3117_v27, 0.0  ;;  %v7244_v43 = vpop.permute.xlu1 %3198  ;;  %v7246_v17 = vpop.permute.xlu0 %3194 }
 0x20d   : > { %v3071_v32 = vpop.f32.mrf.mxu0  ;;  %v3120_v24 = vpop.f32.mrf.mxu1 }
 0x20e   : > { %v3072_v28 = vadd.f32 %v3071_v32, %v7164_v9  ;;  %v3121_v0 = vadd.f32 %v3120_v24, %v7170_v29  ;;  %v3146_v16 = vmax.f32 %v3068_v38, 0.0  ;;  %v3169_v6 = vpack.c.bf16 %v3145_v37, %v3137_v62 }
 0x20f   : > { %v3073_v49 = vpop.f32.mrf.mxu0  ;;  %v3124_v11 = vpop.f32.mrf.mxu1 }
 0x210   : > { %v3074_v13 = vadd.f32 %v3073_v49, %v7164_v9  ;;  %v3125_v50 = vadd.f32 %v3124_v11, %v7164_v9  ;;  %v3153_v48 = vmax.f32 %v3072_v28, 0.0  ;;  %v3148_v34 = vmax.f32 %v3121_v0, 0.0  ;;  %v7248_v32 = vpop.permute.xlu1 %3186  ;;  %v7250_v49 = vpop.permute.xlu0 %3190 }
 0x211   : > { %v3075_v44 = vpop.f32.mrf.mxu0  ;;  %v3126_v53 = vpop.f32.mrf.mxu1  ;;  %v3170_v10 = vpack.c.bf16 %v3146_v16, %v3138_v52 }
 0x212   : > { %v3076_v63 = vadd.f32 %v3075_v44, %v7168_v31  ;;  %v3127_v25 = vadd.f32 %v3126_v53, %v7164_v9  ;;  %v3154_v30 = vmax.f32 %v3074_v13, 0.0  ;;  %v3155_v9 = vmax.f32 %v3125_v50, 0.0 }
 0x213   : > { %v3077_v61 = vpop.f32.mrf.mxu0  ;;  %v3128_v39 = vpop.f32.mrf.mxu1  ;;  %v3172_v29 = vpack.c.bf16 %v3148_v34, %v3140_v15 }
 0x214   : > { %v3078_v14 = vadd.f32 %v3077_v61, %v7168_v31  ;;  %v3129_v51 = vadd.f32 %v3128_v39, %v7168_v31  ;;  %v3161_v57 = vmax.f32 %v3076_v63, 0.0  ;;  %v3156_v21 = vmax.f32 %v3127_v25, 0.0 }
 0x215   : > { %v3130_v12 = vpop.f32.mrf.mxu1 }
 0x216   : > { %v3162_v55 = vmax.f32 %v3078_v14, 0.0  ;;  %v3131_v22 = vadd.f32 %v3130_v12, %v7168_v31  ;;  %v3163_v35 = vmax.f32 %v3129_v51, 0.0  ;;  %v3177_v54 = vpack.c.bf16 %v3161_v57, %v3153_v48 }
 0x217   : > { %v3147_v31 = vmax.f32 %v3119_v23, 0.0 }
 0x218   : > { %v3178_v46 = vpack.c.bf16 %v3162_v55, %v3154_v30  ;;  %v3164_v7 = vmax.f32 %v3131_v22, 0.0  ;;  %v3179_v59 = vpack.c.bf16 %v3163_v35, %v3155_v9 }
 0x219   : > { %v3171_v2 = vpack.c.bf16 %v3147_v31, %v3139_v36 }
 0x21a   : > { %v3180_v41 = vpack.c.bf16 %v3164_v7, %v3156_v21  ;;  %3335 = vmatprep.subr.bf16.mxu0 %v3178_v46 }
 0x21b   : > { %3336 = vmatpush1.bf16.msra.mxu0 %v3177_v54 }
 0x21c   : > { %3337 = vmatprep.subr.bf16.mxu0 %v3170_v10  ;;  %3388 = vmatprep.subr.bf16.mxu1 %v3180_v41 }
 0x21d   : > { %3389 = vmatpush1.bf16.msra.mxu1 %v3179_v59 }
 0x21e   : > { %3390 = vmatprep.subr.bf16.mxu1 %v3172_v29 }
 0x21f   : > { %3338 = vmatpush1.bf16.msra.mxu0 %v3169_v6  ;;  %v7271_v6 = vld [vmem:[%s7839_s3] sm:$0xff]  }
 0x221   : > { %3391 = vmatpush1.bf16.msra.mxu1 %v3171_v2  ;;  %v7282_v2 = vld [vmem:[%s7839_s3 + $0x8] sm:$0xff]  }
 0x222   : > { %5652 = vmatmul.mubr.msk.bf16.vlgmr.msra.gmra.mxu0 %vm2914_vm11, %v7191_v19 }
 0x223   : > { %3365 = vmatprep.mubr.bf16.mxu0 %v7232_v33 }
 0x224   : > { %5654 = vmatmul.mubr.msk.bf16.vlgmr.msra.gmra.mxu1 %vm2914_vm11, %v7191_v19 }
 0x225   : > { %3418 = vmatprep.mubr.bf16.mxu1 %v7232_v33 }
 0x22a   : > { %5653 = vmatmul.mubr.msk.bf16.gmra.mxu0 %vm2914_vm11, %v7202_v3 }
 0x22b   : > { %3545 = vmatprep.mubr.bf16.mxu0 %v7232_v33 }
 0x22c   : > { %5655 = vmatmul.mubr.msk.bf16.gmra.mxu1 %vm2914_vm11, %v7202_v3 }
 0x22d   : > { %3598 = vmatprep.mubr.bf16.mxu1 %v7232_v33 }
 0x265   : > { %v3251_v5 = vpop.f32.mrf.mxu0  ;;  %v3304_v56 = vpop.f32.mrf.mxu1 }
 0x266   : > { %v3252_v44 = vadd.f32 %v3251_v5, %v7248_v32  ;;  %v3305_v21 = vadd.f32 %v3304_v56, %v7248_v32  ;;  %v6066_v5 = vmov 2   ;;  %v7293_v56 = vld [vmem:[%s7845_s9 + $0x10] sm:$0xff] }
 0x267   : > { %v3253_v26 = vpop.f32.mrf.mxu0  ;;  %v3306_v40 = vpop.f32.mrf.mxu1  ;;  %5903 = vset.pattern.permute.xlu1 %v6066_v5  ;;  %5904 = vset.pattern.permute.xlu0 %v6066_v5 }
 0x268   : > { %v3254_v0 = vadd.f32 %v3253_v26, %v7248_v32  ;;  %v3307_v25 = vadd.f32 %v3306_v40, %v7248_v32  ;;  %v3429_v62 = vmax.f32 %v3252_v44, 0.0  ;;  %v3431_v59 = vmax.f32 %v3305_v21, 0.0  ;;  %3490 = vperm.xlu1 %5903, %v7293_v56   ;;  %v7299_v26 = vld [vmem:[%s7845_s9 + $0x18] sm:$0xff]  ;;  %v7305_v40 = vld [vmem:[%s7845_s9] sm:$0xff] }
 0x269   : > { %v3255_v18 = vpop.f32.mrf.mxu0  ;;  %v3308_v19 = vpop.f32.mrf.mxu1  ;;  %3494 = vperm.xlu0 %5904, %v7299_v26  }
 0x26a   : > { %v3256_v27 = vadd.f32 %v3255_v18, %v7250_v49  ;;  %v3309_v50 = vadd.f32 %v3308_v19, %v7250_v49  ;;  %v3430_v34 = vmax.f32 %v3254_v0, 0.0  ;;  %v3432_v37 = vmax.f32 %v3307_v25, 0.0  ;;  %v7311_v18 = vld [vmem:[%s7845_s9 + $0x8] sm:$0xff] }
 0x26b   : > { %v3257_v20 = vpop.f32.mrf.mxu0  ;;  %v3310_v47 = vpop.f32.mrf.mxu1 }
 0x26c   : > { %v3258_v53 = vadd.f32 %v3257_v20, %v7250_v49  ;;  %v3311_v45 = vadd.f32 %v3310_v47, %v7250_v49  ;;  %v3437_v58 = vmax.f32 %v3256_v27, 0.0  ;;  %v3439_v10 = vmax.f32 %v3309_v50, 0.0  ;;  %3482 = vperm.xlu1 %5903, %v7305_v40  }
 0x26d   : > { %v3261_v42 = vpop.f32.mrf.mxu0  ;;  %v3314_v60 = vpop.f32.mrf.mxu1 }
 0x26e   : > { %v3262_v8 = vadd.f32 %v3261_v42, %v7246_v17  ;;  %v3315_v14 = vadd.f32 %v3314_v60, %v7246_v17  ;;  %v3438_v16 = vmax.f32 %v3258_v53, 0.0  ;;  %v3440_v23 = vmax.f32 %v3311_v45, 0.0 }
 0x26f   : > { %v3263_v24 = vpop.f32.mrf.mxu0  ;;  %v3316_v3 = vpop.f32.mrf.mxu1  ;;  %v3461_v29 = vpack.c.bf16 %v3437_v58, %v3429_v62  ;;  %v3463_v36 = vpack.c.bf16 %v3439_v10, %v3431_v59 }
 0x270   : > { %v3264_v38 = vadd.f32 %v3263_v24, %v7246_v17  ;;  %v3317_v28 = vadd.f32 %v3316_v3, %v7246_v17  ;;  %v3445_v52 = vmax.f32 %v3262_v8, 0.0  ;;  %v3447_v46 = vmax.f32 %v3315_v14, 0.0  ;;  %3486 = vperm.xlu1 %5903, %v7311_v18  }
 0x271   : > { %v3265_v11 = vpop.f32.mrf.mxu0  ;;  %v3318_v63 = vpop.f32.mrf.mxu1  ;;  %v3462_v15 = vpack.c.bf16 %v3438_v16, %v3430_v34  ;;  %v3464_v31 = vpack.c.bf16 %v3440_v23, %v3432_v37 }
 0x272   : > { %v3266_v13 = vadd.f32 %v3265_v11, %v7244_v43  ;;  %v3319_v39 = vadd.f32 %v3318_v63, %v7244_v43  ;;  %v3446_v30 = vmax.f32 %v3264_v38, 0.0  ;;  %v3448_v48 = vmax.f32 %v3317_v28, 0.0 }
 0x273   : > { %v3267_v61 = vpop.f32.mrf.mxu0  ;;  %v3320_v1 = vpop.f32.mrf.mxu1 }
 0x274   : > { %v3268_v51 = vadd.f32 %v3267_v61, %v7244_v43  ;;  %v3453_v57 = vmax.f32 %v3266_v13, 0.0  ;;  %v3321_v12 = vadd.f32 %v3320_v1, %v7244_v43  ;;  %v3455_v22 = vmax.f32 %v3319_v39, 0.0 }
 0x276   : > { %v3454_v55 = vmax.f32 %v3268_v51, 0.0  ;;  %v3456_v35 = vmax.f32 %v3321_v12, 0.0  ;;  %v3469_v9 = vpack.c.bf16 %v3453_v57, %v3445_v52  ;;  %v3471_v41 = vpack.c.bf16 %v3455_v22, %v3447_v46 }
 0x278   : > { %v3470_v7 = vpack.c.bf16 %v3454_v55, %v3446_v30  ;;  %v3472_v54 = vpack.c.bf16 %v3456_v35, %v3448_v48 }
 0x27a   : > { %3525 = vmatprep.subr.bf16.mxu0 %v3470_v7  ;;  %3578 = vmatprep.subr.bf16.mxu1 %v3472_v54 }
 0x27b   : > { %3526 = vmatpush1.bf16.msra.mxu0 %v3469_v9  ;;  %3579 = vmatpush1.bf16.msra.mxu1 %v3471_v41 }
 0x27c   : > { %3527 = vmatprep.subr.bf16.mxu0 %v3462_v15  ;;  %3580 = vmatprep.subr.bf16.mxu1 %v3464_v31 }
 0x27f   : > { %3528 = vmatpush1.bf16.msra.mxu0 %v3461_v29  ;;  %3581 = vmatpush1.bf16.msra.mxu1 %v3463_v36 }
 0x282   : > { %5658 = vmatmul.mubr.msk.bf16.vlgmr.msra.gmra.mxu0 %vm2914_vm11, %v7271_v6  ;;  %5660 = vmatmul.mubr.msk.bf16.vlgmr.msra.gmra.mxu1 %vm2914_vm11, %v7271_v6 }
 0x283   : > { %3555 = vmatprep.mubr.bf16.mxu0 %v7232_v33  ;;  %3608 = vmatprep.mubr.bf16.mxu1 %v7232_v33 }
 0x28a   : > { %5659 = vmatmul.mubr.msk.bf16.gmra.mxu0 %vm2914_vm11, %v7282_v2  ;;  %5661 = vmatmul.mubr.msk.bf16.gmra.mxu1 %vm2914_vm11, %v7282_v2 }
 0x28b   : > { %3651 = vmatprep.mubr.bf16.mxu0 %v7232_v33  ;;  %3704 = vmatprep.mubr.bf16.mxu1 %v7232_v33 }
 0x2e2   : > { %v3357_v19 = vpop.f32.mrf.mxu0 }
 0x2e3   : > { %v3358_v61 = vadd.f32 %v3357_v19, %v7248_v32 }
 0x2e4   : > { %v3359_v20 = vpop.f32.mrf.mxu0  ;;  %v3410_v47 = vpop.f32.mrf.mxu1 }
 0x2e5   : > { %v3360_v39 = vadd.f32 %v3359_v20, %v7248_v32  ;;  %v3411_v54 = vadd.f32 %v3410_v47, %v7248_v32  ;;  %v3433_v59 = vmax.f32 %v3358_v61, 0.0 }
 0x2e6   : > { %v3361_v42 = vpop.f32.mrf.mxu0  ;;  %v3412_v60 = vpop.f32.mrf.mxu1 }
 0x2e7   : > { %v3362_v57 = vadd.f32 %v3361_v42, %v7250_v49  ;;  %v3413_v12 = vadd.f32 %v3412_v60, %v7248_v32  ;;  %v3434_v35 = vmax.f32 %v3360_v39, 0.0  ;;  %v3435_v36 = vmax.f32 %v3411_v54, 0.0  ;;  %v7342_v32 = vpop.permute.xlu1 %3490 }
 0x2e8   : > { %v3363_v24 = vpop.f32.mrf.mxu0  ;;  %v3414_v3 = vpop.f32.mrf.mxu1 }
 0x2e9   : > { %v3364_v8 = vadd.f32 %v3363_v24, %v7250_v49  ;;  %v3415_v34 = vadd.f32 %v3414_v3, %v7250_v49  ;;  %v3441_v15 = vmax.f32 %v3362_v57, 0.0  ;;  %v3436_v41 = vmax.f32 %v3413_v12, 0.0 }
 0x2ea   : > { %v3367_v11 = vpop.f32.mrf.mxu0  ;;  %v3416_v44 = vpop.f32.mrf.mxu1 }
 0x2eb   : > { %v3368_v0 = vadd.f32 %v3367_v11, %v7246_v17  ;;  %v3417_v51 = vadd.f32 %v3416_v44, %v7250_v49  ;;  %v3442_v22 = vmax.f32 %v3364_v8, 0.0  ;;  %v3465_v5 = vpack.c.bf16 %v3441_v15, %v3433_v59  ;;  %v7344_v3 = vpop.permute.xlu1 %3482 }
 0x2ec   : > { %v3369_v53 = vpop.f32.mrf.mxu0  ;;  %v3420_v38 = vpop.f32.mrf.mxu1 }
 0x2ed   : > { %v3370_v45 = vadd.f32 %v3369_v53, %v7246_v17  ;;  %v3421_v16 = vadd.f32 %v3420_v38, %v7246_v17  ;;  %v3449_v21 = vmax.f32 %v3368_v0, 0.0  ;;  %v3444_v7 = vmax.f32 %v3417_v51, 0.0 }
 0x2ee   : > { %v3371_v13 = vpop.f32.mrf.mxu0  ;;  %v3422_v63 = vpop.f32.mrf.mxu1  ;;  %v3466_v62 = vpack.c.bf16 %v3442_v22, %v3434_v35 }
 0x2ef   : > { %v3372_v28 = vadd.f32 %v3371_v13, %v7244_v43  ;;  %v3423_v1 = vadd.f32 %v3422_v63, %v7246_v17  ;;  %v3450_v52 = vmax.f32 %v3370_v45, 0.0  ;;  %v3451_v17 = vmax.f32 %v3421_v16, 0.0  ;;  %v7346_v63 = vpop.permute.xlu0 %3494  ;;  %v7348_v8 = vpop.permute.xlu1 %3486 }
 0x2f0   : > { %v3373_v25 = vpop.f32.mrf.mxu0  ;;  %v3424_v14 = vpop.f32.mrf.mxu1  ;;  %v3468_v49 = vpack.c.bf16 %v3444_v7, %v3436_v41 }
 0x2f1   : > { %v3374_v27 = vadd.f32 %v3373_v25, %v7244_v43  ;;  %v3425_v50 = vadd.f32 %v3424_v14, %v7244_v43  ;;  %v3457_v30 = vmax.f32 %v3372_v28, 0.0  ;;  %v3452_v58 = vmax.f32 %v3423_v1, 0.0 }
 0x2f2   : > { %v3426_v55 = vpop.f32.mrf.mxu1 }
 0x2f3   : > { %v3458_v23 = vmax.f32 %v3374_v27, 0.0  ;;  %v3427_v48 = vadd.f32 %v3426_v55, %v7244_v43  ;;  %v3459_v46 = vmax.f32 %v3425_v50, 0.0  ;;  %v3473_v10 = vpack.c.bf16 %v3457_v30, %v3449_v21 }
 0x2f4   : > { %v3443_v43 = vmax.f32 %v3415_v34, 0.0 }
 0x2f5   : > { %v3474_v37 = vpack.c.bf16 %v3458_v23, %v3450_v52  ;;  %v3460_v9 = vmax.f32 %v3427_v48, 0.0  ;;  %v3475_v29 = vpack.c.bf16 %v3459_v46, %v3451_v17 }
 0x2f6   : > { %v3467_v19 = vpack.c.bf16 %v3443_v43, %v3435_v36 }
 0x2f7   : > { %v3476_v31 = vpack.c.bf16 %v3460_v9, %v3452_v58  ;;  %3631 = vmatprep.subr.bf16.mxu0 %v3474_v37 }
 0x2f8   : > { %3632 = vmatpush1.bf16.msra.mxu0 %v3473_v10 }
 0x2f9   : > { %3633 = vmatprep.subr.bf16.mxu0 %v3466_v62  ;;  %3684 = vmatprep.subr.bf16.mxu1 %v3476_v31 }
 0x2fa   : > { %3685 = vmatpush1.bf16.msra.mxu1 %v3475_v29 }
 0x2fb   : > { %3686 = vmatprep.subr.bf16.mxu1 %v3468_v49 }
 0x2fc   : > { %3634 = vmatpush1.bf16.msra.mxu0 %v3465_v5 }
 0x2fe   : > { %3687 = vmatpush1.bf16.msra.mxu1 %v3467_v19 }
 0x2ff   : > { %5662 = vmatmul.mubr.msk.bf16.vlgmr.msra.gmra.mxu0 %vm2914_vm11, %v7271_v6 }
 0x300   : > { %3661 = vmatprep.mubr.bf16.mxu0 %v7232_v33 }
 0x301   : > { %5664 = vmatmul.mubr.msk.bf16.vlgmr.msra.gmra.mxu1 %vm2914_vm11, %v7271_v6 }
 0x302   : > { %3714 = vmatprep.mubr.bf16.mxu1 %v7232_v33 }
 0x307   : > { %5663 = vmatmul.mubr.msk.bf16.gmra.mxu0 %vm2914_vm11, %v7282_v2 }
 0x308   : > { %3841 = vmatprep.mubr.bf16.mxu0 %v7232_v33 }
 0x309   : > { %5665 = vmatmul.mubr.msk.bf16.gmra.mxu1 %vm2914_vm11, %v7282_v2 }
 0x30a   : > { %3894 = vmatprep.mubr.bf16.mxu1 %v7232_v33 }
 0x342   : > { %v3547_v20 = vpop.f32.mrf.mxu0  ;;  %v3600_v47 = vpop.f32.mrf.mxu1 }
 0x343   : > { %v3548_v28 = vadd.f32 %v3547_v20, %v7344_v3  ;;  %v3601_v15 = vadd.f32 %v3600_v47, %v7344_v3 }
 0x344   : > { %v3549_v42 = vpop.f32.mrf.mxu0  ;;  %v3602_v60 = vpop.f32.mrf.mxu1 }
 0x345   : > { %v3550_v57 = vadd.f32 %v3549_v42, %v7344_v3  ;;  %v3603_v12 = vadd.f32 %v3602_v60, %v7344_v3  ;;  %v3725_v36 = vmax.f32 %v3548_v28, 0.0  ;;  %v3727_v19 = vmax.f32 %v3601_v15, 0.0  ;;  %v7369_v42 = vld [vmem:[%s7840_s4] sm:$0xff]   ;;  %v7380_v60 = vld [vmem:[%s7840_s4 + $0x8] sm:$0xff]  }
 0x346   : > { %v3551_v24 = vpop.f32.mrf.mxu0  ;;  %v3604_v6 = vpop.f32.mrf.mxu1 }
 0x347   : > { %v3552_v22 = vadd.f32 %v3551_v24, %v7348_v8  ;;  %v3605_v52 = vadd.f32 %v3604_v6, %v7348_v8  ;;  %v3726_v54 = vmax.f32 %v3550_v57, 0.0  ;;  %v3728_v62 = vmax.f32 %v3603_v12, 0.0 }
 0x348   : > { %v3553_v11 = vpop.f32.mrf.mxu0  ;;  %v3606_v44 = vpop.f32.mrf.mxu1  ;;  %v6067_v24 = vmov 3  }
 0x349   : > { %v3554_v61 = vadd.f32 %v3553_v11, %v7348_v8  ;;  %v3607_v51 = vadd.f32 %v3606_v44, %v7348_v8  ;;  %v3733_v41 = vmax.f32 %v3552_v22, 0.0  ;;  %v3735_v29 = vmax.f32 %v3605_v52, 0.0  ;;  %5906 = vset.pattern.permute.xlu1 %v6067_v24  ;;  %5905 = vset.pattern.permute.xlu0 %v6067_v24 }
 0x34a   : > { %v3557_v53 = vpop.f32.mrf.mxu0  ;;  %v3610_v38 = vpop.f32.mrf.mxu1  ;;  %3790 = vperm.xlu1 %5906, %v7299_v26   ;;  %3786 = vperm.xlu0 %5905, %v7293_v56  }
 0x34b   : > { %v3558_v14 = vadd.f32 %v3557_v53, %v7342_v32  ;;  %v3611_v16 = vadd.f32 %v3610_v38, %v7342_v32  ;;  %v3734_v35 = vmax.f32 %v3554_v61, 0.0  ;;  %v3736_v58 = vmax.f32 %v3607_v51, 0.0 }
 0x34c   : > { %v3559_v13 = vpop.f32.mrf.mxu0  ;;  %v3612_v2 = vpop.f32.mrf.mxu1  ;;  %v3757_v20 = vpack.c.bf16 %v3733_v41, %v3725_v36  ;;  %v3759_v47 = vpack.c.bf16 %v3735_v29, %v3727_v19 }
 0x34d   : > { %v3560_v39 = vadd.f32 %v3559_v13, %v7342_v32  ;;  %v3613_v1 = vadd.f32 %v3612_v2, %v7342_v32  ;;  %v3741_v7 = vmax.f32 %v3558_v14, 0.0  ;;  %v3743_v17 = vmax.f32 %v3611_v16, 0.0 }
 0x34e   : > { %v3561_v45 = vpop.f32.mrf.mxu0  ;;  %v3614_v25 = vpop.f32.mrf.mxu1  ;;  %v3758_v43 = vpack.c.bf16 %v3734_v35, %v3726_v54  ;;  %v3760_v5 = vpack.c.bf16 %v3736_v58, %v3728_v62  ;;  %3778 = vperm.xlu1 %5906, %v7305_v40   ;;  %3782 = vperm.xlu0 %5905, %v7311_v18  }
 0x34f   : > { %v3562_v0 = vadd.f32 %v3561_v45, %v7346_v63  ;;  %v3615_v50 = vadd.f32 %v3614_v25, %v7346_v63  ;;  %v3742_v34 = vmax.f32 %v3560_v39, 0.0  ;;  %v3744_v37 = vmax.f32 %v3613_v1, 0.0 }
 0x350   : > { %v3563_v27 = vpop.f32.mrf.mxu0  ;;  %v3616_v55 = vpop.f32.mrf.mxu1 }
 0x351   : > { %v3564_v30 = vadd.f32 %v3563_v27, %v7346_v63  ;;  %v3749_v23 = vmax.f32 %v3562_v0, 0.0  ;;  %v3617_v48 = vadd.f32 %v3616_v55, %v7346_v63  ;;  %v3751_v46 = vmax.f32 %v3615_v50, 0.0 }
 0x353   : > { %v3750_v21 = vmax.f32 %v3564_v30, 0.0  ;;  %v3752_v9 = vmax.f32 %v3617_v48, 0.0  ;;  %v3765_v31 = vpack.c.bf16 %v3749_v23, %v3741_v7  ;;  %v3767_v49 = vpack.c.bf16 %v3751_v46, %v3743_v17 }
 0x355   : > { %v3766_v10 = vpack.c.bf16 %v3750_v21, %v3742_v34  ;;  %v3768_v59 = vpack.c.bf16 %v3752_v9, %v3744_v37 }
 0x357   : > { %3821 = vmatprep.subr.bf16.mxu0 %v3766_v10  ;;  %3874 = vmatprep.subr.bf16.mxu1 %v3768_v59 }
 0x358   : > { %3822 = vmatpush1.bf16.msra.mxu0 %v3765_v31  ;;  %3875 = vmatpush1.bf16.msra.mxu1 %v3767_v49 }
 0x359   : > { %3823 = vmatprep.subr.bf16.mxu0 %v3758_v43  ;;  %3876 = vmatprep.subr.bf16.mxu1 %v3760_v5 }
 0x35c   : > { %3824 = vmatpush1.bf16.msra.mxu0 %v3757_v20  ;;  %3877 = vmatpush1.bf16.msra.mxu1 %v3759_v47  ;;  %v4189_v20 = vld [vmem:[#allocation2 + $0x30] sm:$0xff] }
 0x35d   : > { %v5719_v47 = vcombine.high %v4189_v20, %v7232_v33 }
 0x35f   : > { %5668 = vmatmul.mubr.msk.bf16.vlgmr.msra.gmra.mxu0 %vm2914_vm11, %v7369_v42  ;;  %5670 = vmatmul.mubr.msk.bf16.vlgmr.msra.gmra.mxu1 %vm2914_vm11, %v7369_v42 }
 0x360   : > { %3851 = vmatprep.mubr.bf16.mxu0 %v7232_v33  ;;  %3904 = vmatprep.mubr.bf16.mxu1 %v7232_v33 }
 0x367   : > { %5669 = vmatmul.mubr.msk.bf16.gmra.mxu0 %vm2914_vm11, %v7380_v60  ;;  %5671 = vmatmul.mubr.msk.bf16.gmra.mxu1 %vm2914_vm11, %v7380_v60 }
 0x368   : > { %3947 = vmatprep.mubr.bf16.mxu0 %v7232_v33  ;;  %4000 = vmatprep.mubr.bf16.mxu1 %v7232_v33 }
 0x3bf   : > { %v3653_v6 = vpop.f32.mrf.mxu0 }
 0x3c0   : > { %v3654_v18 = vadd.f32 %v3653_v6, %v7344_v3  ;;  %v4190_v6 = vld [vmem:[#allocation2 + $0xc0] sm:$0xff] }
 0x3c1   : > { %v3655_v11 = vpop.f32.mrf.mxu0  ;;  %v3706_v44 = vpop.f32.mrf.mxu1 }
 0x3c2   : > { %v3656_v14 = vadd.f32 %v3655_v11, %v7344_v3  ;;  %v3707_v10 = vadd.f32 %v3706_v44, %v7344_v3  ;;  %v3729_v29 = vmax.f32 %v3654_v18, 0.0  ;;  %v5721_v11 = vcombine.high %v4190_v6, %v7232_v33 }
 0x3c3   : > { %v3657_v53 = vpop.f32.mrf.mxu0  ;;  %v3708_v38 = vpop.f32.mrf.mxu1 }
 0x3c4   : > { %v3658_v30 = vadd.f32 %v3657_v53, %v7348_v8  ;;  %v3709_v55 = vadd.f32 %v3708_v38, %v7344_v3  ;;  %v3730_v46 = vmax.f32 %v3656_v14, 0.0  ;;  %v3731_v36 = vmax.f32 %v3707_v10, 0.0  ;;  %v4181_v53 = vld [vmem:[#allocation2] sm:$0xff] }
 0x3c5   : > { %v3659_v13 = vpop.f32.mrf.mxu0  ;;  %v3710_v2 = vpop.f32.mrf.mxu1  ;;  %v4185_v38 = vld [vmem:[#allocation2 + $0xa0] sm:$0xff] }
 0x3c6   : > { %v3660_v25 = vadd.f32 %v3659_v13, %v7348_v8  ;;  %v3711_v7 = vadd.f32 %v3710_v2, %v7348_v8  ;;  %v3737_v41 = vmax.f32 %v3658_v30, 0.0  ;;  %v3732_v31 = vmax.f32 %v3709_v55, 0.0  ;;  %v7420_v3 = vpop.permute.xlu1 %3790  ;;  %v7423_v24 = vpop.permute.xlu0 %3786 }
 0x3c7   : > { %v3663_v45 = vpop.f32.mrf.mxu0  ;;  %v3712_v28 = vpop.f32.mrf.mxu1  ;;  %v5711_v13 = vcombine.high %v4181_v53, %v4185_v38 }
 0x3c8   : > { %v3664_v51 = vadd.f32 %v3663_v45, %v7342_v32  ;;  %v3713_v50 = vadd.f32 %v3712_v28, %v7348_v8  ;;  %v3738_v48 = vmax.f32 %v3660_v25, 0.0  ;;  %v3761_v5 = vpack.c.bf16 %v3737_v41, %v3729_v29 }
 0x3c9   : > { %v3665_v61 = vpop.f32.mrf.mxu0  ;;  %v3716_v39 = vpop.f32.mrf.mxu1  ;;  %v5710_v45 = vcombine.low %v4181_v53, %v4185_v38  ;;  %v4191_v53 = vld [vmem:[#allocation2 + $0x58] sm:$0xff] }
 0x3ca   : > { %v3666_v56 = vadd.f32 %v3665_v61, %v7342_v32  ;;  %v3717_v22 = vadd.f32 %v3716_v39, %v7342_v32  ;;  %v3745_v58 = vmax.f32 %v3664_v51, 0.0  ;;  %v3740_v9 = vmax.f32 %v3713_v50, 0.0  ;;  %v7427_v44 = vpop.permute.xlu1 %3778  ;;  %v5932_v39 = vld [vmem:[#allocation2 + $0xc] ss:$104 sps:$4 sm:$0xff]   ;;  %v7436_v25 = vpop.permute.xlu0 %3782 }
 0x3cb   : > { %v3667_v0 = vpop.f32.mrf.mxu0  ;;  %v3718_v26 = vpop.f32.mrf.mxu1  ;;  %v3762_v59 = vpack.c.bf16 %v3738_v48, %v3730_v46 }
 0x3cc   : > { %v3668_v40 = vadd.f32 %v3667_v0, %v7346_v63  ;;  %v3719_v57 = vadd.f32 %v3718_v26, %v7342_v32  ;;  %v3746_v35 = vmax.f32 %v3666_v56, 0.0  ;;  %v3747_v32 = vmax.f32 %v3717_v22, 0.0  ;;  %v5930_v56 = vld [vmem:[#allocation2 + $0x8] ss:$104 sps:$4 sm:$0xff]  }
 0x3cd   : > { %v3669_v1 = vpop.f32.mrf.mxu0  ;;  %v3720_v27 = vpop.f32.mrf.mxu1  ;;  %v3764_v8 = vpack.c.bf16 %v3740_v9, %v3732_v31 }
 0x3ce   : > { %v3670_v12 = vadd.f32 %v3669_v1, %v7346_v63  ;;  %v3721_v16 = vadd.f32 %v3720_v27, %v7346_v63  ;;  %v3753_v52 = vmax.f32 %v3668_v40, 0.0  ;;  %v3748_v54 = vmax.f32 %v3719_v57, 0.0 }
 0x3cf   : > { %v3722_v23 = vpop.f32.mrf.mxu1 }
 0x3d0   : > { %v3754_v34 = vmax.f32 %v3670_v12, 0.0  ;;  %v3723_v21 = vadd.f32 %v3722_v23, %v7346_v63  ;;  %v3755_v37 = vmax.f32 %v3721_v16, 0.0  ;;  %v3769_v62 = vpack.c.bf16 %v3753_v52, %v3745_v58 }
 0x3d1   : > { %v3739_v63 = vmax.f32 %v3711_v7, 0.0 }
 0x3d2   : > { %v3770_v15 = vpack.c.bf16 %v3754_v34, %v3746_v35  ;;  %v3756_v17 = vmax.f32 %v3723_v21, 0.0  ;;  %v3771_v49 = vpack.c.bf16 %v3755_v37, %v3747_v32 }
 0x3d3   : > { %v3763_v19 = vpack.c.bf16 %v3739_v63, %v3731_v36 }
 0x3d4   : > { %v3772_v43 = vpack.c.bf16 %v3756_v17, %v3748_v54  ;;  %3927 = vmatprep.subr.bf16.mxu0 %v3770_v15 }
 0x3d5   : > { %3928 = vmatpush1.bf16.msra.mxu0 %v3769_v62 }
 0x3d6   : > { %3929 = vmatprep.subr.bf16.mxu0 %v3762_v59  ;;  %3980 = vmatprep.subr.bf16.mxu1 %v3772_v43 }
 0x3d7   : > { %3981 = vmatpush1.bf16.msra.mxu1 %v3771_v49 }
 0x3d8   : > { %3982 = vmatprep.subr.bf16.mxu1 %v3764_v8 }
 0x3d9   : > { %3930 = vmatpush1.bf16.msra.mxu0 %v3761_v5 }
 0x3da   : > { %4410 = vmatprep.subr.bf16.mxu0 %v5719_v47 }
 0x3db   : > { %3983 = vmatpush1.bf16.msra.mxu1 %v3763_v19 }
 0x3dc   : > { %5672 = vmatmul.mubr.msk.bf16.vlgmr.msra.gmra.mxu0 %vm2914_vm11, %v7369_v42  ;;  %4463 = vmatprep.subr.bf16.mxu1 %v5721_v11 }
 0x3dd   : > { %3957 = vmatprep.mubr.bf16.mxu0 %v7232_v33 }
 0x3de   : > { %5674 = vmatmul.mubr.msk.bf16.vlgmr.msra.gmra.mxu1 %vm2914_vm11, %v7369_v42  ;;  %v5718_v42 = vcombine.low %v4189_v20, %v7232_v33 }
 0x3df   : > { %4010 = vmatprep.mubr.bf16.mxu1 %v7232_v33 }
 0x3e0   : > { %4411 = vmatpush1.bf16.msra.mxu0 %v5718_v42 }
 0x3e1   : > { %4412 = vmatprep.subr.bf16.mxu0 %v5711_v13  ;;  %v4192_v13 = vld [vmem:[#allocation2 + $0xd8] sm:$0xff] }
 0x3e4   : > { %5673 = vmatmul.mubr.msk.bf16.gmra.mxu0 %vm2914_vm11, %v7380_v60 }
 0x3e5   : > { %4434 = vmatprep.mubr.bf16.mxu0 %v7232_v33  ;;  %4413 = vmatpush1.bf16.msra.mxu0 %v5710_v45  ;;  %v5723_v45 = vcombine.high %v4191_v53, %v7232_v33 }
 0x3e6   : > { %5675 = vmatmul.mubr.msk.bf16.gmra.mxu1 %vm2914_vm11, %v7380_v60  ;;  %v5720_v60 = vcombine.low %v4190_v6, %v7232_v33 }
 0x3e7   : > { %4487 = vmatprep.mubr.bf16.mxu1 %v7232_v33 }
 0x3e8   : > { %4464 = vmatpush1.bf16.msra.mxu1 %v5720_v60 }
 0x3e9   : > { %4465 = vmatprep.subr.bf16.mxu1 %v5932_v39  ;;  %v4183_v39 = vld [vmem:[#allocation2 + $0x68] sm:$0xff] }
 0x3ec   : > { %4466 = vmatpush1.bf16.msra.mxu1 %v5930_v56  ;;  %v7459_v56 = vld [vmem:[%s7841_s5] sm:$0xff]  }
 0x41f   : > { %v3843_v2 = vpop.f32.mrf.mxu0  ;;  %v3896_v61 = vpop.f32.mrf.mxu1 }
 0x420   : > { %v7431_v28 = vadd.f32 %v3843_v2, %v7427_v44  ;;  %v7434_v26 = vadd.f32 %v3896_v61, %v7427_v44  ;;  %v5725_v61 = vcombine.high %v4192_v13, %v7232_v33 }
 0x421   : > { %v3845_v0 = vpop.f32.mrf.mxu0  ;;  %v3898_v14 = vpop.f32.mrf.mxu1 }
 0x422   : > { %v3846_v40 = vadd.f32 %v3845_v0, %v7427_v44  ;;  %v4021_v18 = vmax.f32 %v7431_v28, 0.0  ;;  %v3899_v1 = vadd.f32 %v3898_v14, %v7427_v44  ;;  %v4023_v12 = vmax.f32 %v7434_v26, 0.0  ;;  %v4187_v0 = vld [vmem:[#allocation2 + $0xc8] sm:$0xff]  ;;  %v4188_v14 = vld [vmem:[#allocation2 + $0xb8] sm:$0xff] }
 0x423   : > { %v3847_v51 = vpop.f32.mrf.mxu0  ;;  %v3900_v57 = vpop.f32.mrf.mxu1 }
 0x424   : > { %v4022_v27 = vmax.f32 %v3846_v40, 0.0  ;;  %v3848_v50 = vadd.f32 %v3847_v51, %v7436_v25  ;;  %v4024_v16 = vmax.f32 %v3899_v1, 0.0  ;;  %v3901_v55 = vadd.f32 %v3900_v57, %v7436_v25  ;;  %v4184_v40 = vld [vmem:[#allocation2 + $0x38] sm:$0xff] }
 0x425   : > { %v3849_v30 = vpop.f32.mrf.mxu0  ;;  %v3902_v52 = vpop.f32.mrf.mxu1  ;;  %v5722_v51 = vcombine.low %v4191_v53, %v7232_v33  ;;  %v5715_v1 = vcombine.high %v4183_v39, %v4187_v0  ;;  %v5716_v57 = vcombine.low %v4184_v40, %v4188_v14 }
 0x426   : > { %v3850_v22 = vadd.f32 %v3849_v30, %v7436_v25  ;;  %v3903_v48 = vadd.f32 %v3902_v52, %v7436_v25  ;;  %v4029_v35 = vmax.f32 %v3848_v50, 0.0  ;;  %v4031_v7 = vmax.f32 %v3901_v55, 0.0  ;;  %v7487_v55 = vld [vmem:[%s7845_s9 + $0x18] sm:$0xff]  ;;  %v7501_v52 = vld [vmem:[%s7845_s9 + $0x8] sm:$0xff] }
 0x427   : > { %v3853_v23 = vpop.f32.mrf.mxu0  ;;  %v3906_v46 = vpop.f32.mrf.mxu1  ;;  %v5714_v50 = vcombine.low %v4183_v39, %v4187_v0  ;;  %v6068_v30 = vmov 4  }
 0x428   : > { %v4030_v34 = vmax.f32 %v3850_v22, 0.0  ;;  %v3854_v21 = vadd.f32 %v3853_v23, %v7423_v24  ;;  %v4032_v58 = vmax.f32 %v3903_v48, 0.0  ;;  %v3907_v9 = vadd.f32 %v3906_v46, %v7423_v24  ;;  %5907 = vset.pattern.permute.xlu1 %v6068_v30  ;;  %v7494_v22 = vld [vmem:[%s7845_s9] sm:$0xff]  ;;  %5908 = vset.pattern.permute.xlu0 %v6068_v30 }
 0x429   : > { %v3855_v37 = vpop.f32.mrf.mxu0  ;;  %v3908_v17 = vpop.f32.mrf.mxu1  ;;  %v5985_v28 = vpack.c.bf16 %v4029_v35, %v4021_v18  ;;  %v5986_v26 = vpack.c.bf16 %v4031_v7, %v4023_v12  ;;  %v5724_v18 = vcombine.low %v4192_v13, %v7232_v33  ;;  %v7471_v12 = vld [vmem:[%s7841_s5 + $0x8] sm:$0xff]   ;;  %4222 = vperm.xlu0 %5908, %v7487_v55  }
 0x42a   : > { %v4037_v54 = vmax.f32 %v3854_v21, 0.0  ;;  %v3856_v15 = vadd.f32 %v3855_v37, %v7423_v24  ;;  %v3909_v41 = vadd.f32 %v3908_v17, %v7423_v24  ;;  %v4039_v59 = vmax.f32 %v3907_v9, 0.0 }
 0x42b   : > { %v3857_v10 = vpop.f32.mrf.mxu0  ;;  %v3910_v31 = vpop.f32.mrf.mxu1  ;;  %v5983_v38 = vpack.c.bf16 %v4030_v34, %v4022_v27  ;;  %v5984_v2 = vpack.c.bf16 %v4032_v58, %v4024_v16  ;;  %v5717_v27 = vcombine.high %v4184_v40, %v4188_v14  ;;  %v7477_v16 = vld [vmem:[%s7845_s9 + $0x10] sm:$0xff] }
 0x42c   : > { %v4038_v32 = vmax.f32 %v3856_v15, 0.0  ;;  %v3858_v62 = vadd.f32 %v3857_v10, %v7420_v3  ;;  %v4040_v43 = vmax.f32 %v3909_v41, 0.0  ;;  %v3911_v63 = vadd.f32 %v3910_v31, %v7420_v3  ;;  %4217 = vperm.xlu1 %5907, %v7477_v16  }
 0x42d   : > { %v3859_v29 = vpop.f32.mrf.mxu0  ;;  %v3912_v8 = vpop.f32.mrf.mxu1 }
 0x42e   : > { %v3860_v49 = vadd.f32 %v3859_v29, %v7420_v3  ;;  %v3913_v36 = vadd.f32 %v3912_v8, %v7420_v3  ;;  %v4045_v5 = vmax.f32 %v3858_v62, 0.0  ;;  %v4047_v20 = vmax.f32 %v3911_v63, 0.0 }
 0x430   : > { %v4046_v19 = vmax.f32 %v3860_v49, 0.0  ;;  %v4048_v47 = vmax.f32 %v3913_v36, 0.0  ;;  %v5979_v42 = vpack.c.bf16 %v4045_v5, %v4037_v54  ;;  %v5981_v11 = vpack.c.bf16 %v4047_v20, %v4039_v59  ;;  %4207 = vperm.xlu1 %5907, %v7494_v22  }
 0x432   : > { %v5980_v6 = vpack.c.bf16 %v4046_v19, %v4038_v32  ;;  %v5982_v60 = vpack.c.bf16 %v4048_v47, %v4040_v43 }
 0x434   : > { %4414 = vmatprep.subr.bf16.mxu0 %v5980_v6  ;;  %4467 = vmatprep.subr.bf16.mxu1 %v5982_v60 }
 0x435   : > { %4415 = vmatpush1.bf16.msra.mxu0 %v5979_v42  ;;  %4468 = vmatpush1.bf16.msra.mxu1 %v5981_v11 }
 0x436   : > { %4416 = vmatprep.subr.bf16.mxu0 %v5983_v38  ;;  %4469 = vmatprep.subr.bf16.mxu1 %v5984_v2 }
 0x437   : > { %4212 = vperm.xlu1 %5907, %v7501_v52  }
 0x439   : > { %4417 = vmatpush1.bf16.msra.mxu0 %v5985_v28  ;;  %4470 = vmatpush1.bf16.msra.mxu1 %v5986_v26 }
 0x43a   : > { %4516 = vmatprep.subr.bf16.mxu0 %v5723_v45  ;;  %4569 = vmatprep.subr.bf16.mxu1 %v5725_v61 }
 0x43c   : > { %5726 = vmatmul.mubr.msk.bf16.vlgmr.msra.gmra.mxu0 %vm4395_vm4, %v7459_v56  ;;  %5728 = vmatmul.mubr.msk.bf16.vlgmr.msra.gmra.mxu1 %vm4395_vm4, %v7459_v56 }
 0x43d   : > { %4517 = vmatpush1.bf16.msra.mxu0 %v5722_v51  ;;  %4570 = vmatpush1.bf16.msra.mxu1 %v5724_v18 }
 0x43e   : > { %4518 = vmatprep.subr.bf16.mxu0 %v5715_v1  ;;  %4571 = vmatprep.subr.bf16.mxu1 %v5717_v27 }
 0x43f   : > { %4444 = vmatprep.mubr.bf16.mxu0 %v7232_v33  ;;  %4497 = vmatprep.mubr.bf16.mxu1 %v7232_v33 }
 0x441   : > { %4519 = vmatpush1.bf16.msra.mxu0 %v5714_v50  ;;  %4572 = vmatpush1.bf16.msra.mxu1 %v5716_v57 }
 0x444   : > { %5727 = vmatmul.mubr.msk.bf16.gmra.mxu0 %vm4395_vm4, %v7471_v12  ;;  %5729 = vmatmul.mubr.msk.bf16.gmra.mxu1 %vm4395_vm4, %v7471_v12 }
 0x445   : > { %4540 = vmatprep.mubr.bf16.mxu0 %v7232_v33  ;;  %4593 = vmatprep.mubr.bf16.mxu1 %v7232_v33 }
 0x49c   : > { %v3949_v33 = vpop.f32.mrf.mxu0 }
 0x49d   : > { %v3950_v23 = vadd.f32 %v3949_v33, %v7427_v44 }
 0x49e   : > { %v3951_v48 = vpop.f32.mrf.mxu0  ;;  %v4002_v35 = vpop.f32.mrf.mxu1 }
 0x49f   : > { %v3952_v34 = vadd.f32 %v3951_v48, %v7427_v44  ;;  %v4003_v21 = vadd.f32 %v4002_v35, %v7427_v44  ;;  %v4025_v58 = vmax.f32 %v3950_v23, 0.0 }
 0x4a0   : > { %v3953_v46 = vpop.f32.mrf.mxu0  ;;  %v4004_v7 = vpop.f32.mrf.mxu1 }
 0x4a1   : > { %v4026_v37 = vmax.f32 %v3952_v34, 0.0  ;;  %v3954_v9 = vadd.f32 %v3953_v46, %v7436_v25  ;;  %v4005_v54 = vadd.f32 %v4004_v7, %v7427_v44  ;;  %v4027_v10 = vmax.f32 %v4003_v21, 0.0 }
 0x4a2   : > { %v3955_v15 = vpop.f32.mrf.mxu0  ;;  %v4006_v17 = vpop.f32.mrf.mxu1 }
 0x4a3   : > { %v4028_v41 = vmax.f32 %v4005_v54, 0.0  ;;  %v3956_v32 = vadd.f32 %v3955_v15, %v7436_v25  ;;  %v4033_v62 = vmax.f32 %v3954_v9, 0.0  ;;  %v4007_v31 = vadd.f32 %v4006_v17, %v7436_v25 }
 0x4a4   : > { %v3959_v59 = vpop.f32.mrf.mxu0  ;;  %v4008_v43 = vpop.f32.mrf.mxu1 }
 0x4a5   : > { %v4034_v29 = vmax.f32 %v3956_v32, 0.0  ;;  %v3960_v63 = vadd.f32 %v3959_v59, %v7423_v24  ;;  %v4009_v49 = vadd.f32 %v4008_v43, %v7436_v25  ;;  %v4035_v5 = vmax.f32 %v4007_v31, 0.0  ;;  %v7538_v15 = vpop.permute.xlu0 %4222 }
 0x4a6   : > { %v3961_v8 = vpop.f32.mrf.mxu0  ;;  %v4012_v36 = vpop.f32.mrf.mxu1  ;;  %v5993_v57 = vpack.c.bf16 %v4033_v62, %v4025_v58 }
 0x4a7   : > { %v4036_v44 = vmax.f32 %v4009_v49, 0.0  ;;  %v3962_v19 = vadd.f32 %v3961_v8, %v7423_v24  ;;  %v4041_v20 = vmax.f32 %v3960_v63, 0.0  ;;  %v4013_v47 = vadd.f32 %v4012_v36, %v7423_v24  ;;  %v7534_v33 = vpop.permute.xlu1 %4217 }
 0x4a8   : > { %v3963_v42 = vpop.f32.mrf.mxu0  ;;  %v4014_v6 = vpop.f32.mrf.mxu1  ;;  %v5989_v1 = vpack.c.bf16 %v4034_v29, %v4026_v37  ;;  %v5994_v30 = vpack.c.bf16 %v4035_v5, %v4027_v10 }
 0x4a9   : > { %v4042_v11 = vmax.f32 %v3962_v19, 0.0  ;;  %v3964_v60 = vadd.f32 %v3963_v42, %v7420_v3  ;;  %v4015_v53 = vadd.f32 %v4014_v6, %v7423_v24  ;;  %v4043_v2 = vmax.f32 %v4013_v47, 0.0 }
 0x4aa   : > { %v3965_v38 = vpop.f32.mrf.mxu0  ;;  %v4016_v13 = vpop.f32.mrf.mxu1  ;;  %v5992_v50 = vpack.c.bf16 %v4036_v44, %v4028_v41 }
 0x4ab   : > { %v4044_v25 = vmax.f32 %v4015_v53, 0.0  ;;  %v3966_v45 = vadd.f32 %v3965_v38, %v7420_v3  ;;  %v4017_v28 = vadd.f32 %v4016_v13, %v7420_v3  ;;  %v4049_v39 = vmax.f32 %v3964_v60, 0.0  ;;  %v7536_v46 = vpop.permute.xlu1 %4207 }
 0x4ac   : > { %v4018_v61 = vpop.f32.mrf.mxu1 }
 0x4ad   : > { %v4050_v0 = vmax.f32 %v3966_v45, 0.0  ;;  %v4019_v26 = vadd.f32 %v4018_v61, %v7420_v3  ;;  %v4051_v40 = vmax.f32 %v4017_v28, 0.0  ;;  %v5987_v51 = vpack.c.bf16 %v4049_v39, %v4041_v20  ;;  %v7522_v3 = vld [vmem:[#allocation2 + $0x90] sm:$0xff] }
 0x4af   : > { %v4052_v14 = vmax.f32 %v4019_v26, 0.0  ;;  %v5988_v18 = vpack.c.bf16 %v4050_v0, %v4042_v11  ;;  %v5990_v24 = vpack.c.bf16 %v4051_v40, %v4043_v2 }
 0x4b1   : > { %4520 = vmatprep.subr.bf16.mxu0 %v5988_v18  ;;  %v5991_v27 = vpack.c.bf16 %v4052_v14, %v4044_v25 }
 0x4b2   : > { %4521 = vmatpush1.bf16.msra.mxu0 %v5987_v51  ;;  %v7540_v17 = vpop.permute.xlu1 %4212 }
 0x4b3   : > { %4522 = vmatprep.subr.bf16.mxu0 %v5989_v1  ;;  %4573 = vmatprep.subr.bf16.mxu1 %v5991_v27 }
 0x4b4   : > { %4574 = vmatpush1.bf16.msra.mxu1 %v5990_v24 }
 0x4b5   : > { %4575 = vmatprep.subr.bf16.mxu1 %v5992_v50 }
 0x4b6   : > { %4523 = vmatpush1.bf16.msra.mxu0 %v5993_v57 }
 0x4b8   : > { %4576 = vmatpush1.bf16.msra.mxu1 %v5994_v30 }
 0x4b9   : > { %5730 = vmatmul.mubr.msk.bf16.vlgmr.msra.gmra.mxu0 %vm4395_vm4, %v7459_v56 }
 0x4ba   : > { %4550 = vmatprep.mubr.bf16.mxu0 %v7522_v3 }
 0x4bb   : > { %5732 = vmatmul.mubr.msk.bf16.vlgmr.msra.gmra.mxu1 %vm4395_vm4, %v7459_v56 }
 0x4bc   : > { %4603 = vmatprep.mubr.bf16.mxu1 %v7522_v3 }
 0x4c1   : > { %5731 = vmatmul.mubr.msk.bf16.gmra.mxu0 %vm4395_vm4, %v7471_v12 }
 0x4c2   : > { %4730 = vmatprep.mubr.bf16.mxu0 %v7522_v3 }
 0x4c3   : > { %5733 = vmatmul.mubr.msk.bf16.gmra.mxu1 %vm4395_vm4, %v7471_v12 }
 0x4c4   : > { %4783 = vmatprep.mubr.bf16.mxu1 %v7522_v3 }
 0x4fc   : > { %v4436_v23 = vpop.f32.mrf.mxu0  ;;  %v4489_v48 = vpop.f32.mrf.mxu1 }
 0x4fd   : > { %v4437_v41 = vadd.f32 %v4436_v23, %v7536_v46  ;;  %v4490_v39 = vadd.f32 %v4489_v48, %v7536_v46 }
 0x4fe   : > { %v4438_v35 = vpop.f32.mrf.mxu0  ;;  %v4491_v34 = vpop.f32.mrf.mxu1 }
 0x4ff   : > { %v4439_v36 = vadd.f32 %v4438_v35, %v7536_v46  ;;  %v4492_v5 = vadd.f32 %v4491_v34, %v7536_v46  ;;  %v4614_v50 = vmax.f32 %v4437_v41, 0.0  ;;  %v4616_v30 = vmax.f32 %v4490_v39, 0.0  ;;  %v7561_v35 = vld [vmem:[%s7842_s6] sm:$0xff]   ;;  %v7572_v34 = vld [vmem:[%s7842_s6 + $0x8] sm:$0xff]  }
 0x500   : > { %v4440_v21 = vpop.f32.mrf.mxu0  ;;  %v4493_v56 = vpop.f32.mrf.mxu1 }
 0x501   : > { %v4441_v47 = vadd.f32 %v4440_v21, %v7540_v17  ;;  %v4494_v42 = vadd.f32 %v4493_v56, %v7540_v17  ;;  %v4615_v61 = vmax.f32 %v4439_v36, 0.0  ;;  %v4617_v14 = vmax.f32 %v4492_v5, 0.0 }
 0x502   : > { %v4442_v7 = vpop.f32.mrf.mxu0  ;;  %v4495_v58 = vpop.f32.mrf.mxu1  ;;  %v6069_v21 = vmov 5  }
 0x503   : > { %v4443_v32 = vadd.f32 %v4442_v7, %v7540_v17  ;;  %v4496_v29 = vadd.f32 %v4495_v58, %v7540_v17  ;;  %v4622_v40 = vmax.f32 %v4441_v47, 0.0  ;;  %v4624_v24 = vmax.f32 %v4494_v42, 0.0  ;;  %5910 = vset.pattern.permute.xlu1 %v6069_v21  ;;  %5909 = vset.pattern.permute.xlu0 %v6069_v21 }
 0x504   : > { %v4446_v37 = vpop.f32.mrf.mxu0  ;;  %v4499_v9 = vpop.f32.mrf.mxu1  ;;  %4679 = vperm.xlu1 %5910, %v7487_v55   ;;  %4675 = vperm.xlu0 %5909, %v7477_v16  }
 0x505   : > { %v4447_v43 = vadd.f32 %v4446_v37, %v7534_v33  ;;  %v4500_v44 = vadd.f32 %v4499_v9, %v7534_v33  ;;  %v4623_v60 = vmax.f32 %v4443_v32, 0.0  ;;  %v4625_v25 = vmax.f32 %v4496_v29, 0.0 }
 0x506   : > { %v4448_v54 = vpop.f32.mrf.mxu0  ;;  %v4501_v12 = vpop.f32.mrf.mxu1  ;;  %v4646_v23 = vpack.c.bf16 %v4622_v40, %v4614_v50  ;;  %v4648_v48 = vpack.c.bf16 %v4624_v24, %v4616_v30 }
 0x507   : > { %v4449_v62 = vadd.f32 %v4448_v54, %v7534_v33  ;;  %v4502_v63 = vadd.f32 %v4501_v12, %v7534_v33  ;;  %v4630_v2 = vmax.f32 %v4447_v43, 0.0  ;;  %v4632_v0 = vmax.f32 %v4500_v44, 0.0 }
 0x508   : > { %v4450_v10 = vpop.f32.mrf.mxu0  ;;  %v4503_v59 = vpop.f32.mrf.mxu1  ;;  %v4647_v1 = vpack.c.bf16 %v4623_v60, %v4615_v61  ;;  %v4649_v57 = vpack.c.bf16 %v4625_v25, %v4617_v14  ;;  %4667 = vperm.xlu1 %5910, %v7494_v22   ;;  %4671 = vperm.xlu0 %5909, %v7501_v52  }
 0x509   : > { %v4451_v31 = vadd.f32 %v4450_v10, %v7538_v15  ;;  %v4504_v8 = vadd.f32 %v4503_v59, %v7538_v15  ;;  %v4631_v53 = vmax.f32 %v4449_v62, 0.0  ;;  %v4633_v45 = vmax.f32 %v4502_v63, 0.0 }
 0x50a   : > { %v4452_v49 = vpop.f32.mrf.mxu0  ;;  %v4505_v20 = vpop.f32.mrf.mxu1 }
 0x50b   : > { %v4453_v19 = vadd.f32 %v4452_v49, %v7538_v15  ;;  %v4638_v6 = vmax.f32 %v4451_v31, 0.0  ;;  %v4506_v11 = vadd.f32 %v4505_v20, %v7538_v15  ;;  %v4640_v13 = vmax.f32 %v4504_v8, 0.0 }
 0x50d   : > { %v4639_v38 = vmax.f32 %v4453_v19, 0.0  ;;  %v4641_v28 = vmax.f32 %v4506_v11, 0.0  ;;  %v4654_v51 = vpack.c.bf16 %v4638_v6, %v4630_v2  ;;  %v4656_v27 = vpack.c.bf16 %v4640_v13, %v4632_v0 }
 0x50f   : > { %v4655_v26 = vpack.c.bf16 %v4639_v38, %v4631_v53  ;;  %v4657_v18 = vpack.c.bf16 %v4641_v28, %v4633_v45 }
 0x511   : > { %4710 = vmatprep.subr.bf16.mxu0 %v4655_v26  ;;  %4763 = vmatprep.subr.bf16.mxu1 %v4657_v18 }
 0x512   : > { %4711 = vmatpush1.bf16.msra.mxu0 %v4654_v51  ;;  %4764 = vmatpush1.bf16.msra.mxu1 %v4656_v27 }
 0x513   : > { %4712 = vmatprep.subr.bf16.mxu0 %v4647_v1  ;;  %4765 = vmatprep.subr.bf16.mxu1 %v4649_v57 }
 0x516   : > { %4713 = vmatpush1.bf16.msra.mxu0 %v4646_v23  ;;  %4766 = vmatpush1.bf16.msra.mxu1 %v4648_v48 }
 0x519   : > { %5736 = vmatmul.mubr.msk.bf16.vlgmr.msra.gmra.mxu0 %vm2914_vm11, %v7561_v35  ;;  %5738 = vmatmul.mubr.msk.bf16.vlgmr.msra.gmra.mxu1 %vm2914_vm11, %v7561_v35 }
 0x51a   : > { %4740 = vmatprep.mubr.bf16.mxu0 %v7522_v3  ;;  %4793 = vmatprep.mubr.bf16.mxu1 %v7522_v3 }
 0x521   : > { %5737 = vmatmul.mubr.msk.bf16.gmra.mxu0 %vm2914_vm11, %v7572_v34  ;;  %5739 = vmatmul.mubr.msk.bf16.gmra.mxu1 %vm2914_vm11, %v7572_v34 }
 0x522   : > { %4836 = vmatprep.mubr.bf16.mxu0 %v7522_v3  ;;  %4889 = vmatprep.mubr.bf16.mxu1 %v7522_v3 }
 0x579   : > { %v4542_v56 = vpop.f32.mrf.mxu0 }
 0x57a   : > { %v4543_v49 = vadd.f32 %v4542_v56, %v7536_v46 }
 0x57b   : > { %v4544_v7 = vpop.f32.mrf.mxu0  ;;  %v4595_v58 = vpop.f32.mrf.mxu1 }
 0x57c   : > { %v4545_v8 = vadd.f32 %v4544_v7, %v7536_v46  ;;  %v4596_v18 = vadd.f32 %v4595_v58, %v7536_v46  ;;  %v4618_v30 = vmax.f32 %v4543_v49, 0.0 }
 0x57d   : > { %v4546_v37 = vpop.f32.mrf.mxu0  ;;  %v4597_v9 = vpop.f32.mrf.mxu1 }
 0x57e   : > { %v4547_v6 = vadd.f32 %v4546_v37, %v7540_v17  ;;  %v4598_v11 = vadd.f32 %v4597_v9, %v7536_v46  ;;  %v4619_v28 = vmax.f32 %v4545_v8, 0.0  ;;  %v4620_v48 = vmax.f32 %v4596_v18, 0.0 }
 0x57f   : > { %v4548_v54 = vpop.f32.mrf.mxu0  ;;  %v4599_v12 = vpop.f32.mrf.mxu1 }
 0x580   : > { %v4549_v43 = vadd.f32 %v4548_v54, %v7540_v17  ;;  %v4600_v61 = vadd.f32 %v4599_v12, %v7540_v17  ;;  %v4626_v1 = vmax.f32 %v4547_v6, 0.0  ;;  %v4621_v27 = vmax.f32 %v4598_v11, 0.0  ;;  %v7612_v9 = vpop.permute.xlu1 %4679  ;;  %v7614_v12 = vpop.permute.xlu0 %4675 }
 0x581   : > { %v4552_v10 = vpop.f32.mrf.mxu0  ;;  %v4601_v41 = vpop.f32.mrf.mxu1 }
 0x582   : > { %v4553_v36 = vadd.f32 %v4552_v10, %v7534_v33  ;;  %v4602_v19 = vadd.f32 %v4601_v41, %v7540_v17  ;;  %v4627_v13 = vmax.f32 %v4549_v43, 0.0  ;;  %v4650_v21 = vpack.c.bf16 %v4626_v1, %v4618_v30 }
 0x583   : > { %v4554_v32 = vpop.f32.mrf.mxu0  ;;  %v4605_v62 = vpop.f32.mrf.mxu1 }
 0x584   : > { %v4555_v29 = vadd.f32 %v4554_v32, %v7534_v33  ;;  %v4606_v60 = vadd.f32 %v4605_v62, %v7534_v33  ;;  %v4634_v39 = vmax.f32 %v4553_v36, 0.0  ;;  %v4629_v26 = vmax.f32 %v4602_v19, 0.0  ;;  %v7618_v43 = vpop.permute.xlu0 %4671 }
 0x585   : > { %v4556_v31 = vpop.f32.mrf.mxu0  ;;  %v4607_v59 = vpop.f32.mrf.mxu1  ;;  %v4651_v50 = vpack.c.bf16 %v4627_v13, %v4619_v28 }
 0x586   : > { %v4557_v63 = vadd.f32 %v4556_v31, %v7538_v15  ;;  %v4608_v20 = vadd.f32 %v4607_v59, %v7534_v33  ;;  %v4635_v2 = vmax.f32 %v4555_v29, 0.0  ;;  %v4636_v33 = vmax.f32 %v4606_v60, 0.0  ;;  %v7616_v31 = vpop.permute.xlu1 %4667 }
 0x587   : > { %v4558_v5 = vpop.f32.mrf.mxu0  ;;  %v4609_v44 = vpop.f32.mrf.mxu1  ;;  %v4653_v17 = vpack.c.bf16 %v4629_v26, %v4621_v27 }
 0x588   : > { %v4559_v47 = vadd.f32 %v4558_v5, %v7538_v15  ;;  %v4610_v42 = vadd.f32 %v4609_v44, %v7538_v15  ;;  %v4642_v53 = vmax.f32 %v4557_v63, 0.0  ;;  %v4637_v40 = vmax.f32 %v4608_v20, 0.0 }
 0x589   : > { %v4611_v38 = vpop.f32.mrf.mxu1 }
 0x58a   : > { %v4643_v25 = vmax.f32 %v4559_v47, 0.0  ;;  %v4612_v45 = vadd.f32 %v4611_v38, %v7538_v15  ;;  %v4644_v0 = vmax.f32 %v4610_v42, 0.0  ;;  %v4658_v24 = vpack.c.bf16 %v4642_v53, %v4634_v39 }
 0x58b   : > { %v4628_v15 = vmax.f32 %v4600_v61, 0.0 }
 0x58c   : > { %v4659_v14 = vpack.c.bf16 %v4643_v25, %v4635_v2  ;;  %v4645_v51 = vmax.f32 %v4612_v45, 0.0  ;;  %v4660_v23 = vpack.c.bf16 %v4644_v0, %v4636_v33 }
 0x58d   : > { %v4652_v56 = vpack.c.bf16 %v4628_v15, %v4620_v48 }
 0x58e   : > { %v4661_v57 = vpack.c.bf16 %v4645_v51, %v4637_v40  ;;  %4816 = vmatprep.subr.bf16.mxu0 %v4659_v14 }
 0x58f   : > { %4817 = vmatpush1.bf16.msra.mxu0 %v4658_v24 }
 0x590   : > { %4818 = vmatprep.subr.bf16.mxu0 %v4651_v50  ;;  %4869 = vmatprep.subr.bf16.mxu1 %v4661_v57 }
 0x591   : > { %4870 = vmatpush1.bf16.msra.mxu1 %v4660_v23 }
 0x592   : > { %4871 = vmatprep.subr.bf16.mxu1 %v4653_v17 }
 0x593   : > { %4819 = vmatpush1.bf16.msra.mxu0 %v4650_v21 }
 0x595   : > { %4872 = vmatpush1.bf16.msra.mxu1 %v4652_v56 }
 0x596   : > { %5740 = vmatmul.mubr.msk.bf16.vlgmr.msra.gmra.mxu0 %vm2914_vm11, %v7561_v35 }
 0x597   : > { %4846 = vmatprep.mubr.bf16.mxu0 %v7522_v3 }
 0x598   : > { %5742 = vmatmul.mubr.msk.bf16.vlgmr.msra.gmra.mxu1 %vm2914_vm11, %v7561_v35 }
 0x599   : > { %4899 = vmatprep.mubr.bf16.mxu1 %v7522_v3 }
 0x59e   : > { %5741 = vmatmul.mubr.msk.bf16.gmra.mxu0 %vm2914_vm11, %v7572_v34 }
 0x59f   : > { %5026 = vmatprep.mubr.bf16.mxu0 %v7522_v3 }
 0x5a0   : > { %5743 = vmatmul.mubr.msk.bf16.gmra.mxu1 %vm2914_vm11, %v7572_v34 }
 0x5a1   : > { %5079 = vmatprep.mubr.bf16.mxu1 %v7522_v3 }
 0x5d9   : > { %v4732_v46 = vpop.f32.mrf.mxu0  ;;  %v4785_v7 = vpop.f32.mrf.mxu1 }
 0x5da   : > { %v4733_v63 = vadd.f32 %v4732_v46, %v7616_v31  ;;  %v4786_v1 = vadd.f32 %v4785_v7, %v7616_v31 }
 0x5db   : > { %v4734_v58 = vpop.f32.mrf.mxu0  ;;  %v4787_v37 = vpop.f32.mrf.mxu1 }
 0x5dc   : > { %v4735_v6 = vadd.f32 %v4734_v58, %v7616_v31  ;;  %v4788_v11 = vadd.f32 %v4787_v37, %v7616_v31  ;;  %v4910_v48 = vmax.f32 %v4733_v63, 0.0  ;;  %v4912_v56 = vmax.f32 %v4786_v1, 0.0  ;;  %v7639_v58 = vld [vmem:[%s7843_s7] sm:$0xff]   ;;  %v7650_v37 = vld [vmem:[%s7843_s7 + $0x8] sm:$0xff]  }
 0x5dd   : > { %v4736_v54 = vpop.f32.mrf.mxu0  ;;  %v4789_v35 = vpop.f32.mrf.mxu1 }
 0x5de   : > { %v4737_v13 = vadd.f32 %v4736_v54, %v7618_v43  ;;  %v4790_v2 = vadd.f32 %v4789_v35, %v7618_v43  ;;  %v4911_v18 = vmax.f32 %v4735_v6, 0.0  ;;  %v4913_v50 = vmax.f32 %v4788_v11, 0.0  ;;  %v5238_v35 = vld [vmem:[%s7844_s8] sm:$0xff] }
 0x5df   : > { %v4738_v10 = vpop.f32.mrf.mxu0  ;;  %v4791_v41 = vpop.f32.mrf.mxu1  ;;  %v6070_v54 = vmov 6  }
 0x5e0   : > { %v4739_v49 = vadd.f32 %v4738_v10, %v7618_v43  ;;  %v4792_v19 = vadd.f32 %v4791_v41, %v7618_v43  ;;  %v4918_v27 = vmax.f32 %v4737_v13, 0.0  ;;  %v4920_v23 = vmax.f32 %v4790_v2, 0.0  ;;  %5911 = vset.pattern.permute.xlu1 %v6070_v54  ;;  %5912 = vset.pattern.permute.xlu0 %v6070_v54  ;;  %v5241_v10 = vld [vmem:[%s7844_s8 + $0x18] sm:$0xff] }
 0x5e1   : > { %v4742_v32 = vpop.f32.mrf.mxu0  ;;  %v4795_v62 = vpop.f32.mrf.mxu1  ;;  %4963 = vperm.xlu1 %5911, %v7494_v22   ;;  %4967 = vperm.xlu0 %5912, %v7501_v52   ;;  %v5239_v22 = vld [vmem:[%s7844_s8 + $0x8] sm:$0xff]  ;;  %v6071_v52 = vmov 7  }
 0x5e2   : > { %v4743_v44 = vadd.f32 %v4742_v32, %v7614_v12  ;;  %v4796_v60 = vadd.f32 %v4795_v62, %v7614_v12  ;;  %v4919_v28 = vmax.f32 %v4739_v49, 0.0  ;;  %v4921_v40 = vmax.f32 %v4792_v19, 0.0 }
 0x5e3   : > { %v4744_v59 = vpop.f32.mrf.mxu0  ;;  %v4797_v34 = vpop.f32.mrf.mxu1  ;;  %v4942_v46 = vpack.c.bf16 %v4918_v27, %v4910_v48  ;;  %v4944_v7 = vpack.c.bf16 %v4920_v23, %v4912_v56 }
 0x5e4   : > { %v4745_v8 = vadd.f32 %v4744_v59, %v7614_v12  ;;  %v4798_v20 = vadd.f32 %v4797_v34, %v7614_v12  ;;  %v4926_v26 = vmax.f32 %v4743_v44, 0.0  ;;  %v4928_v33 = vmax.f32 %v4796_v60, 0.0 }
 0x5e5   : > { %v4746_v29 = vpop.f32.mrf.mxu0  ;;  %v4799_v5 = vpop.f32.mrf.mxu1  ;;  %v4943_v15 = vpack.c.bf16 %v4919_v28, %v4911_v18  ;;  %v4945_v21 = vpack.c.bf16 %v4921_v40, %v4913_v50  ;;  %4971 = vperm.xlu1 %5911, %v7477_v16   ;;  %5913 = vset.pattern.permute.xlu0 %v7522_v3  ;;  %v5240_v16 = vld [vmem:[%s7844_s8 + $0x10] sm:$0xff] }
 0x5e6   : > { %v4747_v36 = vadd.f32 %v4746_v29, %v7612_v9  ;;  %v4800_v42 = vadd.f32 %v4799_v5, %v7612_v9  ;;  %v4927_v61 = vmax.f32 %v4745_v8, 0.0  ;;  %v4929_v14 = vmax.f32 %v4798_v20, 0.0  ;;  %5244 = vperm.xlu0 %5913, %v5238_v35  }
 0x5e7   : > { %v4748_v47 = vpop.f32.mrf.mxu0  ;;  %v4801_v38 = vpop.f32.mrf.mxu1 }
 0x5e8   : > { %v4749_v53 = vadd.f32 %v4748_v47, %v7612_v9  ;;  %v4934_v25 = vmax.f32 %v4747_v36, 0.0  ;;  %v4802_v45 = vadd.f32 %v4801_v38, %v7612_v9  ;;  %v4936_v0 = vmax.f32 %v4800_v42, 0.0 }
 0x5e9   : > { %4975 = vperm.xlu1 %5911, %v7487_v55   ;;  %v5366_v55 = vld [vmem:[%s7845_s9] sm:$0x1] }
 0x5ea   : > { %v4935_v39 = vmax.f32 %v4749_v53, 0.0  ;;  %v4937_v51 = vmax.f32 %v4802_v45, 0.0  ;;  %v4950_v57 = vpack.c.bf16 %v4934_v25, %v4926_v26  ;;  %v4952_v17 = vpack.c.bf16 %v4936_v0, %v4928_v33  ;;  %5259 = vperm.xlu0 %5913, %v5241_v10  }
 0x5ec   : > { %v4951_v24 = vpack.c.bf16 %v4935_v39, %v4927_v61  ;;  %v4953_v30 = vpack.c.bf16 %v4937_v51, %v4929_v14 }
 0x5ed   : > { %5914 = vset.pattern.permute.xlu1 %v7522_v3 }
 0x5ee   : > { %5006 = vmatprep.subr.bf16.mxu0 %v4951_v24  ;;  %5059 = vmatprep.subr.bf16.mxu1 %v4953_v30 }
 0x5ef   : > { %5007 = vmatpush1.bf16.msra.mxu0 %v4950_v57  ;;  %5060 = vmatpush1.bf16.msra.mxu1 %v4952_v17 }
 0x5f0   : > { %5008 = vmatprep.subr.bf16.mxu0 %v4943_v15  ;;  %5061 = vmatprep.subr.bf16.mxu1 %v4945_v21 }
 0x5f1   : > { %5249 = vperm.xlu1 %5914, %v5239_v22   ;;  %5916 = vset.pattern.permute.xlu0 %v6071_v52 }
 0x5f3   : > { %5009 = vmatpush1.bf16.msra.mxu0 %v4942_v46  ;;  %5062 = vmatpush1.bf16.msra.mxu1 %v4944_v7 }
 0x5f5   : > { %5254 = vperm.xlu1 %5914, %v5240_v16  }
 0x5f6   : > { %5746 = vmatmul.mubr.msk.bf16.vlgmr.msra.gmra.mxu0 %vm2914_vm11, %v7639_v58  ;;  %5748 = vmatmul.mubr.msk.bf16.vlgmr.msra.gmra.mxu1 %vm2914_vm11, %v7639_v58 }
 0x5f7   : > { %5036 = vmatprep.mubr.bf16.mxu0 %v7522_v3  ;;  %5089 = vmatprep.mubr.bf16.mxu1 %v7522_v3 }
 0x5f9   : > { %5915 = vset.pattern.permute.xlu1 %v6071_v52 }
 0x5fa   : > { %5369 = vperm.xlu1 %5915, %v5366_v55  }
 0x5fe   : > { %5747 = vmatmul.mubr.msk.bf16.gmra.mxu0 %vm2914_vm11, %v7650_v37  ;;  %5749 = vmatmul.mubr.msk.bf16.gmra.mxu1 %vm2914_vm11, %v7650_v37 }
 0x5ff   : > { %5132 = vmatprep.mubr.bf16.mxu0 %v7522_v3  ;;  %5185 = vmatprep.mubr.bf16.mxu1 %v7522_v3 }
 0x656   : > { %v4838_v41 = vpop.f32.mrf.mxu0 }
 0x657   : > { %v4839_v6 = vadd.f32 %v4838_v41, %v7616_v31 }
 0x658   : > { %v4840_v32 = vpop.f32.mrf.mxu0  ;;  %v4891_v62 = vpop.f32.mrf.mxu1 }
 0x659   : > { %v4841_v11 = vadd.f32 %v4840_v32, %v7616_v31  ;;  %v4892_v23 = vadd.f32 %v4891_v62, %v7616_v31  ;;  %v4914_v7 = vmax.f32 %v4839_v6, 0.0 }
 0x65a   : > { %v4842_v59 = vpop.f32.mrf.mxu0  ;;  %v4893_v34 = vpop.f32.mrf.mxu1 }
 0x65b   : > { %v4843_v28 = vadd.f32 %v4842_v59, %v7618_v43  ;;  %v4894_v61 = vadd.f32 %v4893_v34, %v7616_v31  ;;  %v4915_v1 = vmax.f32 %v4841_v11, 0.0  ;;  %v4916_v35 = vmax.f32 %v4892_v23, 0.0 }
 0x65c   : > { %v4844_v29 = vpop.f32.mrf.mxu0  ;;  %v4895_v63 = vpop.f32.mrf.mxu1 }
 0x65d   : > { %v4845_v20 = vadd.f32 %v4844_v29, %v7618_v43  ;;  %v4896_v33 = vadd.f32 %v4895_v63, %v7618_v43  ;;  %v4922_v17 = vmax.f32 %v4843_v28, 0.0  ;;  %v4917_v21 = vmax.f32 %v4894_v61, 0.0  ;;  %v7705_v62 = vpop.permute.xlu1 %4963 }
 0x65e   : > { %v4848_v49 = vpop.f32.mrf.mxu0  ;;  %v4897_v8 = vpop.f32.mrf.mxu1 }
 0x65f   : > { %v4849_v60 = vadd.f32 %v4848_v49, %v7614_v12  ;;  %v4898_v13 = vadd.f32 %v4897_v8, %v7618_v43  ;;  %v4923_v40 = vmax.f32 %v4845_v20, 0.0  ;;  %v4946_v10 = vpack.c.bf16 %v4922_v17, %v4914_v7 }
 0x660   : > { %v4850_v36 = vpop.f32.mrf.mxu0  ;;  %v4901_v5 = vpop.f32.mrf.mxu1 }
 0x661   : > { %v4851_v47 = vadd.f32 %v4850_v36, %v7614_v12  ;;  %v4902_v39 = vadd.f32 %v4901_v5, %v7614_v12  ;;  %v4930_v24 = vmax.f32 %v4849_v60, 0.0  ;;  %v4925_v50 = vmax.f32 %v4898_v13, 0.0  ;;  %v7707_v29 = vpop.permute.xlu1 %4971  ;;  %v7711_v36 = vpop.permute.xlu0 %4967 }
 0x662   : > { %v4852_v44 = vpop.f32.mrf.mxu0  ;;  %v4903_v19 = vpop.f32.mrf.mxu1  ;;  %v4947_v56 = vpack.c.bf16 %v4923_v40, %v4915_v1 }
 0x663   : > { %v4853_v42 = vadd.f32 %v4852_v44, %v7612_v9  ;;  %v4904_v2 = vadd.f32 %v4903_v19, %v7614_v12  ;;  %v4931_v14 = vmax.f32 %v4851_v47, 0.0  ;;  %v4932_v12 = vmax.f32 %v4902_v39, 0.0 }
 0x664   : > { %v4854_v53 = vpop.f32.mrf.mxu0  ;;  %v4905_v38 = vpop.f32.mrf.mxu1  ;;  %v4949_v43 = vpack.c.bf16 %v4925_v50, %v4917_v21 }
 0x665   : > { %v4855_v25 = vadd.f32 %v4854_v53, %v7612_v9  ;;  %v4906_v45 = vadd.f32 %v4905_v38, %v7612_v9  ;;  %v4938_v0 = vmax.f32 %v4853_v42, 0.0  ;;  %v4933_v57 = vmax.f32 %v4904_v2, 0.0  ;;  %v7709_v8 = vpop.permute.xlu1 %4975 }
 0x666   : > { %v4907_v26 = vpop.f32.mrf.mxu1 }
 0x667   : > { %v4939_v51 = vmax.f32 %v4855_v25, 0.0  ;;  %v4908_v18 = vadd.f32 %v4907_v26, %v7612_v9  ;;  %v4940_v27 = vmax.f32 %v4906_v45, 0.0  ;;  %v4954_v48 = vpack.c.bf16 %v4938_v0, %v4930_v24 }
 0x668   : > { %v4924_v9 = vmax.f32 %v4896_v33, 0.0 }
 0x669   : > { %v4955_v30 = vpack.c.bf16 %v4939_v51, %v4931_v14  ;;  %v4941_v15 = vmax.f32 %v4908_v18, 0.0  ;;  %v4956_v54 = vpack.c.bf16 %v4940_v27, %v4932_v12  ;;  %v7728_v51 = vpop.permute.xlu0 %5244 }
 0x66a   : > { %v4948_v22 = vpack.c.bf16 %v4924_v9, %v4916_v35 }
 0x66b   : > { %v4957_v46 = vpack.c.bf16 %v4941_v15, %v4933_v57  ;;  %5112 = vmatprep.subr.bf16.mxu0 %v4955_v30 }
 0x66c   : > { %5113 = vmatpush1.bf16.msra.mxu0 %v4954_v48  ;;  %v7717_v42 = vpop.permute.xlu1 %5249 }
 0x66d   : > { %5114 = vmatprep.subr.bf16.mxu0 %v4947_v56  ;;  %5165 = vmatprep.subr.bf16.mxu1 %v4957_v46 }
 0x66e   : > { %5166 = vmatpush1.bf16.msra.mxu1 %v4956_v54 }
 0x66f   : > { %5167 = vmatprep.subr.bf16.mxu1 %v4949_v43 }
 0x670   : > { %5115 = vmatpush1.bf16.msra.mxu0 %v4946_v10  ;;  %v7736_v56 = vpop.permute.xlu1 %5254 }
 0x672   : > { %5168 = vmatpush1.bf16.msra.mxu1 %v4948_v22  ;;  %v7742_v22 = vpop.permute.xlu0 %5259 }
 0x673   : > { %5750 = vmatmul.mubr.msk.bf16.vlgmr.msra.gmra.mxu0 %vm2914_vm11, %v7639_v58 }
 0x674   : > { %5142 = vmatprep.mubr.bf16.mxu0 %v7522_v3 }
 0x675   : > { %5752 = vmatmul.mubr.msk.bf16.vlgmr.msra.gmra.mxu1 %vm2914_vm11, %v7639_v58 }
 0x676   : > { %5195 = vmatprep.mubr.bf16.mxu1 %v7522_v3 }
 0x67b   : > { %5751 = vmatmul.mubr.msk.bf16.gmra.mxu0 %vm2914_vm11, %v7650_v37 }
 0x67d   : > { %5753 = vmatmul.mubr.msk.bf16.gmra.mxu1 %vm2914_vm11, %v7650_v37 }
 0x6b6   : > { %v5028_v31 = vpop.f32.mrf.mxu0  ;;  %v5081_v16 = vpop.f32.mrf.mxu1 }
 0x6b7   : > { %v5082_v19 = vadd.f32 %v5081_v16, %v7705_v62  ;;  %v5029_v61 = vadd.f32 %v5028_v31, %v7705_v62 }
 0x6b8   : > { %v5030_v52 = vpop.f32.mrf.mxu0  ;;  %v5083_v55 = vpop.f32.mrf.mxu1 }
 0x6b9   : > { %v5031_v11 = vadd.f32 %v5030_v52, %v7705_v62  ;;  %v5084_v60 = vadd.f32 %v5083_v55, %v7705_v62  ;;  %v5208_v39 = vmax.f32 %v5082_v19, 0.0  ;;  %v5206_v17 = vmax.f32 %v5029_v61, 0.0 }
 0x6ba   : > { %v5032_v41 = vpop.f32.mrf.mxu0  ;;  %v5085_v32 = vpop.f32.mrf.mxu1 }
 0x6bb   : > { %v5086_v44 = vadd.f32 %v5085_v32, %v7711_v36  ;;  %v5033_v53 = vadd.f32 %v5032_v41, %v7711_v36  ;;  %v5207_v33 = vmax.f32 %v5031_v11, 0.0  ;;  %v5209_v24 = vmax.f32 %v5084_v60, 0.0 }
 0x6bc   : > { %v5034_v59 = vpop.f32.mrf.mxu0  ;;  %v5087_v34 = vpop.f32.mrf.mxu1  ;;  %v5264_v21 = vmul.f32 %v7728_v51, %v5208_v39  ;;  %v5262_v32 = vmul.f32 %v7728_v51, %v5206_v17 }
 0x6bd   : > { %v5035_v20 = vadd.f32 %v5034_v59, %v7711_v36  ;;  %v5088_v47 = vadd.f32 %v5087_v34, %v7711_v36  ;;  %v5216_v2 = vmax.f32 %v5086_v44, 0.0  ;;  %v5214_v27 = vmax.f32 %v5033_v53, 0.0 }
 0x6be   : > { %v5038_v58 = vpop.f32.mrf.mxu0  ;;  %v5091_v3 = vpop.f32.mrf.mxu1  ;;  %v5263_v35 = vmul.f32 %v7728_v51, %v5207_v33  ;;  %v5265_v31 = vmul.f32 %v7728_v51, %v5209_v24 }
 0x6bf   : > { %v5092_v6 = vadd.f32 %v5091_v3, %v7707_v29  ;;  %v5215_v0 = vmax.f32 %v5035_v20, 0.0  ;;  %v5039_v26 = vadd.f32 %v5038_v58, %v7707_v29  ;;  %v5217_v40 = vmax.f32 %v5088_v47, 0.0 }
 0x6c0   : > { %v5040_v63 = vpop.f32.mrf.mxu0  ;;  %v5093_v49 = vpop.f32.mrf.mxu1  ;;  %v5272_v57 = vmul.f32 %v7717_v42, %v5216_v2  ;;  %v5270_v43 = vmul.f32 %v7717_v42, %v5214_v27 }
 0x6c1   : > { %v5041_v25 = vadd.f32 %v5040_v63, %v7707_v29  ;;  %v5094_v45 = vadd.f32 %v5093_v49, %v7707_v29  ;;  %v5224_v14 = vmax.f32 %v5092_v6, 0.0  ;;  %v5222_v12 = vmax.f32 %v5039_v26, 0.0 }
 0x6c2   : > { %v5042_v37 = vpop.f32.mrf.mxu0  ;;  %v5095_v5 = vpop.f32.mrf.mxu1  ;;  %v5271_v48 = vmul.f32 %v7717_v42, %v5215_v0  ;;  %v5273_v54 = vmul.f32 %v7717_v42, %v5217_v40  ;;  %v5312_v55 = vadd.f32 %v5272_v57, %v5264_v21 }
 0x6c3   : > { %v5096_v28 = vadd.f32 %v5095_v5, %v7709_v8  ;;  %v5043_v50 = vadd.f32 %v5042_v37, %v7709_v8  ;;  %v5223_v30 = vmax.f32 %v5041_v25, 0.0  ;;  %v5225_v15 = vmax.f32 %v5094_v45, 0.0 }
 0x6c4   : > { %v5044_v38 = vpop.f32.mrf.mxu0  ;;  %v5097_v13 = vpop.f32.mrf.mxu1  ;;  %v5280_v46 = vmul.f32 %v7736_v56, %v5224_v14  ;;  %v5278_v59 = vmul.f32 %v7736_v56, %v5222_v12  ;;  %v5303_v34 = vadd.f32 %v5271_v48, %v5263_v35  ;;  %v5321_v49 = vadd.f32 %v5273_v54, %v5265_v31 }
 0x6c5   : > { %v5045_v18 = vadd.f32 %v5044_v38, %v7709_v8  ;;  %v5098_v1 = vadd.f32 %v5097_v13, %v7709_v8  ;;  %v5232_v23 = vmax.f32 %v5096_v28, 0.0  ;;  %v5230_v10 = vmax.f32 %v5043_v50, 0.0 }
 0x6c6   : > { %v5279_v16 = vmul.f32 %v7736_v56, %v5223_v30  ;;  %v5281_v41 = vmul.f32 %v7736_v56, %v5225_v15  ;;  %v5313_v3 = vadd.f32 %v5312_v55, %v5280_v46  ;;  %v5294_v5 = vadd.f32 %v5270_v43, %v5262_v32 }
 0x6c7   : > { %v5231_v7 = vmax.f32 %v5045_v18, 0.0  ;;  %v5233_v9 = vmax.f32 %v5098_v1, 0.0  ;;  %v5288_v52 = vmul.f32 %v7742_v22, %v5232_v23  ;;  %v5286_v37 = vmul.f32 %v7742_v22, %v5230_v10 }
 0x6c8   : > { %v5304_v44 = vadd.f32 %v5303_v34, %v5279_v16  ;;  %v5322_v20 = vadd.f32 %v5321_v49, %v5281_v41  ;;  %v5295_v47 = vadd.f32 %v5294_v5, %v5278_v59 }
 0x6c9   : > { %v5287_v58 = vmul.f32 %v7742_v22, %v5231_v7  ;;  %v5289_v63 = vmul.f32 %v7742_v22, %v5233_v9  ;;  %v5314_v19 = vadd.f32 %v5313_v3, %v5288_v52 }
 0x6ca   : > { %v5296_v60 = vadd.f32 %v5295_v47, %v5286_v37 }
 0x6cb   : > { %v5305_v6 = vadd.f32 %v5304_v44, %v5287_v58  ;;  %v5323_v11 = vadd.f32 %v5322_v20, %v5289_v63  ;;  %v5315_v53 = vrot.slane %v5314_v19, 4 }
 0x6cc   : > { %v5297_v2 = vrot.slane %v5296_v60, 4 }
 0x6cd   : > { %v5306_v38 = vrot.slane %v5305_v6, 4  ;;  %v5324_v13 = vrot.slane %v5323_v11, 4  ;;  %v5316_v25 = vadd.f32 %v5315_v53, %v5314_v19 }
 0x6ce   : > { %v7754_v40 = vadd.f32 %v5297_v2, %v5296_v60 }
 0x6cf   : > { %v5307_v28 = vadd.f32 %v5306_v38, %v5305_v6  ;;  %v5325_v61 = vadd.f32 %v5324_v13, %v5323_v11  ;;  %v5317_v24 = vrot.slane %v5316_v25, 2 }
 0x6d0   : > { %v5299_v21 = vrot.slane %v7754_v40, 2 }
 0x6d1   : > { %v5326_v50 = vrot.slane %v5325_v61, 2  ;;  %v5308_v17 = vrot.slane %v5307_v28, 2  ;;  %v7763_v35 = vadd.f32 %v5317_v24, %v5316_v25 }
 0x6d3   : > { %v7767_v52 = vadd.f32 %v5326_v50, %v5325_v61  ;;  %v7770_v34 = vadd.f32 %v5308_v17, %v5307_v28 }
 0x733   : > { %v5134_v45 = vpop.f32.mrf.mxu0 }
 0x734   : > { %v5135_v39 = vadd.f32 %v5134_v45, %v7705_v62 }
 0x735   : > { %v5136_v0 = vpop.f32.mrf.mxu0  ;;  %v5187_v26 = vpop.f32.mrf.mxu1 }
 0x736   : > { %v5137_v14 = vadd.f32 %v5136_v0, %v7705_v62  ;;  %v5188_v18 = vadd.f32 %v5187_v26, %v7705_v62  ;;  %v5210_v57 = vmax.f32 %v5135_v39, 0.0 }
 0x737   : > { %v5138_v1 = vpop.f32.mrf.mxu0  ;;  %v5189_v33 = vpop.f32.mrf.mxu1 }
 0x738   : > { %v5139_v27 = vadd.f32 %v5138_v1, %v7711_v36  ;;  %v5190_v30 = vadd.f32 %v5189_v33, %v7705_v62  ;;  %v5211_v46 = vmax.f32 %v5137_v14, 0.0  ;;  %v5212_v7 = vmax.f32 %v5188_v18, 0.0 }
 0x739   : > { %v5140_v15 = vpop.f32.mrf.mxu0  ;;  %v5191_v23 = vpop.f32.mrf.mxu1  ;;  %v5266_v55 = vmul.f32 %v7728_v51, %v5210_v57 }
 0x73a   : > { %v5218_v12 = vmax.f32 %v5139_v27, 0.0  ;;  %v5141_v48 = vadd.f32 %v5140_v15, %v7711_v36  ;;  %v5192_v9 = vadd.f32 %v5191_v23, %v7711_v36  ;;  %v5213_v10 = vmax.f32 %v5190_v30, 0.0 }
 0x73b   : > { %v5144_v54 = vpop.f32.mrf.mxu0  ;;  %v5193_v43 = vpop.f32.mrf.mxu1  ;;  %v5267_v37 = vmul.f32 %v7728_v51, %v5211_v46  ;;  %v5268_v5 = vmul.f32 %v7728_v51, %v5212_v7 }
 0x73c   : > { %v5219_v31 = vmax.f32 %v5141_v48, 0.0  ;;  %v5145_v62 = vadd.f32 %v5144_v54, %v7707_v29  ;;  %v5194_v16 = vadd.f32 %v5193_v43, %v7711_v36  ;;  %v5220_v41 = vmax.f32 %v5192_v9, 0.0 }
 0x73d   : > { %v5146_v32 = vpop.f32.mrf.mxu0  ;;  %v5197_v59 = vpop.f32.mrf.mxu1  ;;  %v5274_v58 = vmul.f32 %v7717_v42, %v5218_v12  ;;  %v5269_v47 = vmul.f32 %v7728_v51, %v5213_v10  ;;  %v5328_v48 = vrot.slane %v7767_v52, 1  ;;  %v5300_v9 = vadd.f32 %v5299_v21, %v7754_v40 }
 0x73e   : > { %v5275_v3 = vmul.f32 %v7717_v42, %v5219_v31  ;;  %v5226_v63 = vmax.f32 %v5145_v62, 0.0  ;;  %v5221_v49 = vmax.f32 %v5194_v16, 0.0  ;;  %v5147_v36 = vadd.f32 %v5146_v32, %v7707_v29 }
 0x73f   : > { %v5198_v44 = vadd.f32 %v5197_v59, %v7707_v29  ;;  %v5148_v19 = vpop.f32.mrf.mxu0  ;;  %v5199_v20 = vpop.f32.mrf.mxu1  ;;  %v5276_v6 = vmul.f32 %v7717_v42, %v5220_v41  ;;  %v5330_v28 = vadd.f32 %v5274_v58, %v5266_v55  ;;  %v5310_v41 = vrot.slane %v7770_v34, 1 }
 0x740   : > { %v5282_v11 = vmul.f32 %v7736_v56, %v5226_v63  ;;  %v5149_v60 = vadd.f32 %v5148_v19, %v7709_v8  ;;  %v5277_v53 = vmul.f32 %v7717_v42, %v5221_v49  ;;  %v5227_v38 = vmax.f32 %v5147_v36, 0.0 }
 0x741   : > { %v5228_v13 = vmax.f32 %v5198_v44, 0.0  ;;  %v5200_v2 = vadd.f32 %v5199_v20, %v7707_v29  ;;  %v5150_v25 = vpop.f32.mrf.mxu0  ;;  %v5201_v45 = vpop.f32.mrf.mxu1  ;;  %v5339_v61 = vadd.f32 %v5275_v3, %v5267_v37  ;;  %v5348_v27 = vadd.f32 %v5276_v6, %v5268_v5 }
 0x742   : > { %v5234_v39 = vmax.f32 %v5149_v60, 0.0  ;;  %v5151_v0 = vadd.f32 %v5150_v25, %v7709_v8  ;;  %v5283_v51 = vmul.f32 %v7736_v56, %v5227_v38  ;;  %v5202_v18 = vadd.f32 %v5201_v45, %v7709_v8 }
 0x743   : > { %v5284_v26 = vmul.f32 %v7736_v56, %v5228_v13  ;;  %v5229_v14 = vmax.f32 %v5200_v2, 0.0  ;;  %v5203_v1 = vpop.f32.mrf.mxu1  ;;  %v5331_v42 = vadd.f32 %v5330_v28, %v5282_v11  ;;  %v5357_v50 = vadd.f32 %v5277_v53, %v5269_v47  ;;  %v5370_v47 = vpop.permute.xlu1 %5369 }
 0x744   : > { %v5290_v33 = vmul.f32 %v7742_v22, %v5234_v39  ;;  %v5235_v24 = vmax.f32 %v5151_v0, 0.0  ;;  %v5204_v29 = vadd.f32 %v5203_v1, %v7709_v8  ;;  %v5236_v30 = vmax.f32 %v5202_v18, 0.0 }
 0x745   : > { %v5285_v57 = vmul.f32 %v7736_v56, %v5229_v14  ;;  %v5340_v15 = vadd.f32 %v5339_v61, %v5283_v51  ;;  %v5349_v46 = vadd.f32 %v5348_v27, %v5284_v26  ;;  %v5319_v56 = vrot.slane %v7763_v35, 1 }
 0x746   : > { %v5332_v23 = vadd.f32 %v5331_v42, %v5290_v33  ;;  %v5291_v17 = vmul.f32 %v7742_v22, %v5235_v24  ;;  %v5237_v12 = vmax.f32 %v5204_v29, 0.0  ;;  %v5292_v7 = vmul.f32 %v7742_v22, %v5236_v30 }
 0x747   : > { %v5358_v43 = vadd.f32 %v5357_v50, %v5285_v57  ;;  %v5301_v59 = vrot.slane %v5300_v9, 1  ;;  %v5329_v58 = vadd.f32 %v5328_v48, %v7767_v52  ;;  %v5320_v49 = vadd.f32 %v5319_v56, %v7763_v35 }
 0x748   : > { %v5333_v54 = vrot.slane %v5332_v23, 4  ;;  %v5341_v8 = vadd.f32 %v5340_v15, %v5291_v17  ;;  %v5293_v10 = vmul.f32 %v7742_v22, %v5237_v12  ;;  %v5350_v31 = vadd.f32 %v5349_v46, %v5292_v7 }
 0x749   : > { %v6072_v37 = vmov 1966171168   ;;  %v5311_v19 = vadd.f32 %v5310_v41, %v7770_v34  ;;  %v5302_v6 = vadd.f32 %v5301_v59, %v5300_v9  ;;  %v5375_v52 = vadd.f32 %v5370_v47, %v5329_v58 }
 0x74a   : > { %v5334_v62 = vadd.f32 %v5333_v54, %v5332_v23  ;;  %v5342_v16 = vrot.slane %v5341_v8, 4  ;;  %v5359_v55 = vadd.f32 %v5358_v43, %v5293_v10  ;;  %v5351_v32 = vrot.slane %v5350_v31, 4 }
 0x74b   : > { %v5393_v22 = vunpack.c.l.s4 %v6072_v37  ;;  %v5374_v13 = vadd.f32 %v5370_v47, %v5320_v49  ;;  %v5373_v28 = vadd.f32 %v5370_v47, %v5311_v19  ;;  %v5372_v51 = vadd.f32 %v5370_v47, %v5302_v6 }
 0x74c   : > { %v5335_v3 = vrot.slane %v5334_v62, 2  ;;  %v5343_v63 = vadd.f32 %v5342_v16, %v5341_v8  ;;  %v5360_v40 = vrot.slane %v5359_v55, 4  ;;  %v5352_v21 = vadd.f32 %v5351_v32, %v5350_v31 }
 0x74d   : > { %v5394_v2 = vunpack.c.0.s8 %v5393_v22  ;;  %v5389_v34 = vcombine.low %v5374_v13, %v5375_v52  ;;  %v5388_v33 = vcombine.low %v5372_v51, %v5373_v28 }
 0x74e   : > { %v5336_v5 = vadd.f32 %v5335_v3, %v5334_v62  ;;  %v5344_v36 = vrot.slane %v5343_v63, 2  ;;  %v5361_v44 = vadd.f32 %v5360_v40, %v5359_v55  ;;  %v5353_v20 = vrot.slane %v5352_v21, 2 }
 0x74f   : > { %v5397_v14 = vsub.s32 %v5394_v2, %v6189_v4 }
 0x750   : > { %v5337_v11 = vrot.slane %v5336_v5, 1  ;;  %v5345_v60 = vadd.f32 %v5344_v36, %v5343_v63  ;;  %v5362_v53 = vrot.slane %v5361_v44, 2  ;;  %v5354_v38 = vadd.f32 %v5353_v20, %v5352_v21 }
 0x751   : > { %v5405_v50 = vrot.slane %v5389_v34, %v5397_v14  ;;  %v5398_v30 = vrot.slane %v5388_v33, %v5397_v14 }
 0x752   : > { %v5338_v25 = vadd.f32 %v5337_v11, %v5336_v5  ;;  %v5346_v35 = vrot.slane %v5345_v60, 1  ;;  %v5363_v45 = vadd.f32 %v5362_v53, %v5361_v44  ;;  %v5355_v61 = vrot.slane %v5354_v38, 1 }
 0x753   : > { %v5420_v17 = vcombine.low %v5398_v30, %v5405_v50 }
 0x754   : > { %v5347_v39 = vadd.f32 %v5346_v35, %v5345_v60  ;;  %v5364_v0 = vrot.slane %v5363_v45, 1  ;;  %v5356_v26 = vadd.f32 %v5355_v61, %v5354_v38  ;;  %v5376_v1 = vadd.f32 %v5370_v47, %v5338_v25 }
 0x755   : > { %v5428_v4 = vrot.slane %v5420_v17, %v5397_v14 }
 0x756   : > { %v5365_v18 = vadd.f32 %v5364_v0, %v5363_v45  ;;  %v5377_v42 = vadd.f32 %v5370_v47, %v5347_v39  ;;  %v5378_v29 = vadd.f32 %v5370_v47, %v5356_v26 }
 0x758   : > { %v5379_v24 = vadd.f32 %v5370_v47, %v5365_v18  ;;  %v5390_v27 = vcombine.low %v5376_v1, %v5377_v42 }
 0x75a   : > { %v5391_v57 = vcombine.low %v5378_v29, %v5379_v24  ;;  %v5412_v15 = vrot.slane %v5390_v27, %v5397_v14 }
 0x75c   : > { %v5419_v23 = vrot.slane %v5391_v57, %v5397_v14 }
 0x75e   : > { %v5421_v12 = vcombine.low %v5412_v15, %v5419_v23 }
 0x760   : > { %v5435_v48 = vrot.slane %v5421_v12, %v5397_v14 }
 0x762   : > { %v5436_v46 = vcombine.low %v5428_v4, %v5435_v48 }
 0x764   : > { %5438 = vst [vmem:[%s353_s11] sm:$0xff] %v5436_v46 }
 0x765   : > { %6008 = shalt.err (!%p6005_p3)
}
 0x766   : > { %s6009_s28 = scalar_lea.hbm %s5452_s20, 128  ;;  %s6013_s11 = scalar_lea.hbm %s7846_s10, 512 }
 0x767   : > { %p6010_p4 = scmp.ne.s32.totalorder %s5452_s20, %s6009_s28  ;;  %p6014_p9 = scmp.lt.s32.totalorder %s5452_s20, %s7846_s10 }
 0x768   : > { %p6015_p10 = scmp.lt.s32.totalorder %s6013_s11, %s6009_s28 }
 0x769   : > { %p6011_p7 = pnand %p6010_p4, %p6167_p5 }
 0x76a   : > { %p6016_p11 = por %p6015_p10, %p6014_p9 }
 0x76b   : > { %p6012_p8 = pneg %p6011_p7 }
 0x76d   : > { %p6017_p12 = pnand %p6016_p11, %p6012_p8 }
 0x76f   : > { %6020 = shalt.err (!%p6017_p12)
}
 0x770   : > { %5844 = dma.vmem_to_hbm [thread:$0]  (%p6167_p5), %s5455_s12, 128, %s5452_s20, %s5440_s21  }
 0x771 PF: > { %p5850_p13 = scmp.ge.s32.totalorder %s6055_s16, 2  ;;  %s5466_s0 = sand.u32 1, %s6043_s13  }
 0x772   : > { %s5467_s25 = scalar_lea.sflag [#allocation4], %s5466_s0 }
 0x773   : > { %p5847_p0 = pnand %p5850_p13, %p6171_p6 }
 0x775   : > { %p5848_p1 = pneg %p5847_p0 }
 0x777   : > { %6038 = dma.done.wait (%p5848_p1), %s5467_s25, 128  }
 0x778   : > { %6040 = vsyncadd (%p5848_p1), %s5467_s25, 4294967168  ;;  %p20_p2 = scmp.ge.s32.totalorder %s6154_s19, 6   ;;  %s7871_s13 = smov %s6047_s14 }
 0x779   : > { %s7872_s14 = smov %s6051_s15  ;;  %s7873_s15 = smov %s6165_s22 }
 0x77a   : > { %s7874_s16 = smov %s6154_s19  ;;  %22 = sbr.rel (!%p20_p2) target bundleno = 5 (0x5), region = 95 }
 0x77f   :  { %5472 = vsyncpa [#allocation4], 1 }
 0x780   :  { %5474 = vsyncpa [#allocation4 + $0x1], 1 }

</bundles_post_ra>
